<compile_context>
chip_gen: v5e
topology: v5e:2x2
jax: 0.10.0
libtpu: 0.0.40
codegen_flags: <defaults>
</compile_context>

<pallas_src>
import functools
import math

import jax
import jax.numpy as jnp
from jax.experimental import pallas as pl
from jax.experimental.pallas import tpu as pltpu

# ------------------------- synthetic config -------------------------
B, S, D = 2, 8, 32          # batch, seq_len, hidden size (bert_ebd_dims)
H, DH = 2, 16               # attention heads, head dim
F = 64                      # FFN intermediate size
L = 2                       # encoder layers per BertClassifier
V, P = 100, 64              # vocab size, max position embeddings
C = 2                       # num classes
EXP_THRESHOLD = 0.5         # cfg['exp_threshold']
SOFT_SELECTION = False      # cfg['soft_selection']
SHARE_ENCODER = False       # cfg['share_encoder']
SUPPORT_L, SUPPORT_R = -0.1, 1.1   # HardKuma stretched support

VMEM_SPEC = pl.BlockSpec(memory_space=pltpu.MemorySpace.VMEM)


# ------------------------- in-kernel helpers -------------------------
def _gelu(x):
    # TODO(synk): tanh approximation of GELU (PyTorch nn.GELU default is exact erf).
    return 0.5 * x * (1.0 + jnp.tanh(0.7978845608028654 * (x + 0.044715 * x * x * x)))


def _softplus(x):
    return jnp.maximum(x, 0.0) + jnp.log(1.0 + jnp.exp(-jnp.abs(x)))


def _layernorm(x, g, b):
    mu = jnp.mean(x, axis=-1, keepdims=True)
    var = jnp.mean((x - mu) ** 2, axis=-1, keepdims=True)
    return (x - mu) * jax.lax.rsqrt(var + 1e-12) * g + b


# ------------------------- fused classifier kernel -------------------------
def _classifier_kernel(*refs, with_selector):
    if with_selector:
        (emb_ref, bias_ref, eg_ref, eb_ref,
         wqkv_ref, bqkv_ref, wo_ref, bo_ref,
         l1g_ref, l1b_ref, w1_ref, b1_ref, w2_ref, b2_ref, l2g_ref, l2b_ref,
         pw_ref, pb_ref, cw_ref, cb_ref,
         wab_ref, bab_ref, pm_ref,
         logits_ref, z_ref) = refs
    else:
        (emb_ref, bias_ref, eg_ref, eb_ref,
         wqkv_ref, bqkv_ref, wo_ref, bo_ref,
         l1g_ref, l1b_ref, w1_ref, b1_ref, w2_ref, b2_ref, l2g_ref, l2b_ref,
         pw_ref, pb_ref, cw_ref, cb_ref,
         logits_ref) = refs

    scale = 1.0 / math.sqrt(DH)
    bias = bias_ref[...]                                        # (B, 1, S) additive key mask
    h = _layernorm(emb_ref[...], eg_ref[...], eb_ref[...])      # (B*S, D)

    for l in range(L):                                          # static unroll, L=2
        x = h
        # fused QKV projection: one (B*S, D) x (D, 3D) MXU push
        qkv = jnp.dot(x, wqkv_ref[l], preferred_element_type=jnp.float32) + bqkv_ref[l]
        wo_l = wo_ref[l]                                        # (D, D)

        # per-head attention; output projection folded in as per-head partial
        # matmuls summed up (equivalent to concat(heads) @ Wo, no concat needed)
        ctx_proj = jnp.zeros((B * S, D), jnp.float32)
        for hh in range(H):                                     # static unroll, H=2
            q = qkv[:, hh * DH:(hh + 1) * DH].reshape(B, S, DH)
            k = qkv[:, D + hh * DH:D + (hh + 1) * DH].reshape(B, S, DH)
            v = qkv[:, 2 * D + hh * DH:2 * D + (hh + 1) * DH].reshape(B, S, DH)
            s = jnp.einsum("bqd,bkd->bqk", q, k,
                           preferred_element_type=jnp.float32) * scale
            s = s + bias
            m = jnp.max(s, axis=-1, keepdims=True)
            p = jnp.exp(s - m)
            p = p / jnp.sum(p, axis=-1, keepdims=True)
            c = jnp.einsum("bqk,bkd->bqd", p, v,
                           preferred_element_type=jnp.float32).reshape(B * S, DH)
            ctx_proj = ctx_proj + jnp.dot(
                c, wo_l[hh * DH:(hh + 1) * DH, :],
                preferred_element_type=jnp.float32)

        a = ctx_proj + bo_ref[l]
        h1 = _layernorm(x + a, l1g_ref[l], l1b_ref[l])
        f = jnp.dot(h1, w1_ref[l], preferred_element_type=jnp.float32) + b1_ref[l]
        f = _gelu(f)
        f = jnp.dot(f, w2_ref[l], preferred_element_type=jnp.float32) + b2_ref[l]
        h = _layernorm(h1 + f, l2g_ref[l], l2b_ref[l])

    hidden = h                                                  # (B*S, D)

    # pooler (CLS token) + classification head
    cls_rows = hidden.reshape(B, S, D)[:, 0, :]                 # (B, D)
    pooled = jnp.tanh(
        jnp.dot(cls_rows, pw_ref[...], preferred_element_type=jnp.float32) + pb_ref[...])
    logits_ref[...] = (
        jnp.dot(pooled, cw_ref[...], preferred_element_type=jnp.float32) + cb_ref[...])

    if with_selector:
        # HardKuma rationale selector fused on the encoder tail
        # (hidden never leaves VMEM). wa|wb packed into one (D,2) matmul.
        ab = jnp.dot(hidden, wab_ref[...], preferred_element_type=jnp.float32) + bab_ref[...]
        ab = jnp.clip(_softplus(ab), 1e-4, 1e4)                 # (B*S, 2)
        a_k = ab[:, 0:1]
        b_k = ab[:, 1:2]
        # Deterministic HardKuma gate: Kumaraswamy median (1 - 2^{-1/b})^{1/a},
        # stretched to [SUPPORT_L, SUPPORT_R] and hard-rectified to [0, 1].
        # TODO(synk): training-time reparameterized HardKuma sampling and the exact
        # Kuma mean (requires the Beta function) are replaced by this median gate.
        inner = jnp.clip(1.0 - jnp.exp(-math.log(2.0) / b_k), 1e-12, 1.0)
        med = jnp.exp(jnp.log(inner) / a_k)
        t = med * (SUPPORT_R - SUPPORT_L) + SUPPORT_L
        soft = jnp.clip(t, 0.0, 1.0) * pm_ref[...]              # zero padded positions
        hard = jnp.where(soft >= EXP_THRESHOLD, 1.0, 0.0)       # straight-through value
        lane = jax.lax.broadcasted_iota(jnp.int32, (B * S, 2), 1)
        z_ref[...] = jnp.where(lane == 0, soft, hard)           # packed (B*S, 2) slab


def bert_classifier_fused(params, emb, attn_bias, selector=None, padding_mask=None):
    inputs = [
        emb, attn_bias,
        params["emb_ln_g"], params["emb_ln_b"],
        params["wqkv"], params["bqkv"], params["wo"], params["bo"],
        params["ln1_g"], params["ln1_b"], params["w1"], params["b1"],
        params["w2"], params["b2"], params["ln2_g"], params["ln2_b"],
        params["pool_w"], params["pool_b"], params["cls_w"], params["cls_b"],
    ]
    with_selector = selector is not None
    if with_selector:
        inputs += [selector["wab"], selector["bab"], padding_mask]
        out_shape = (jax.ShapeDtypeStruct((B, C), jnp.float32),
                     jax.ShapeDtypeStruct((B * S, 2), jnp.float32))
        out_specs = (VMEM_SPEC, VMEM_SPEC)
    else:
        out_shape = jax.ShapeDtypeStruct((B, C), jnp.float32)
        out_specs = VMEM_SPEC
    return pl.pallas_call(
        functools.partial(_classifier_kernel, with_selector=with_selector),
        out_shape=out_shape,
        in_specs=[VMEM_SPEC] * len(inputs),
        out_specs=out_specs,
    )(*inputs)


# ------------------------- model composition (glue) -------------------------
def _embed(params, input_ids, positions):
    we = jnp.take(params["word_emb"], input_ids, axis=0)   # (B,S,D) gather = glue
    pe = jnp.take(params["pos_emb"], positions, axis=0)
    return we, pe


def hardkuma_e2e_forward(params, bert_inputs, attention_masks, padding_masks, positions):
    attn_bias = ((1.0 - attention_masks.astype(jnp.float32)) * -1e9).reshape(B, 1, S)
    pad_mask = padding_masks.astype(jnp.float32).reshape(B * S, 1)

    # (auxiliary_cls_p, mtl_exp_output_hidden) = self.bert_mtl(...)
    # + rationale_selector fused onto the encoder tail inside the same kernel.
    we_mtl, pe_mtl = _embed(params["mtl"], bert_inputs, positions)
    mtl_emb = (we_mtl + pe_mtl).reshape(B * S, D)
    aux_cls_p, z = bert_classifier_fused(
        params["mtl"], mtl_emb, attn_bias,
        selector=params["selector"], padding_mask=pad_mask)
    soft_z = z[:, 0].reshape(B, S)
    hard_z = z[:, 1].reshape(B, S)
    # NOTE: hard_z returned as float32 (value-equivalent to the training
    #       straight-through path; PyTorch eval mode returns int64).
    attribution_map = soft_z if SOFT_SELECTION else hard_z

    cls_params = params["mtl"] if SHARE_ENCODER else params["cls"]
    if SHARE_ENCODER:
        we_cls, pe_cls = we_mtl, pe_mtl        # reuse gathered embeddings
    else:
        we_cls, pe_cls = _embed(cls_params, bert_inputs, positions)
    cls_emb = (we_cls * attribution_map[..., None] + pe_cls).reshape(B * S, D)
    cls_p = bert_classifier_fused(cls_params, cls_emb, attn_bias)
    return aux_cls_p, cls_p, soft_z, hard_z


# ------------------------- deterministic parameter init -------------------------
def init_bert_params(key):
    keys = jax.random.split(key, 4 + L)

    def dense(k, din, dout):
        return jax.random.normal(k, (din, dout), jnp.float32) * 0.02

    wqkv, wo, w1, w2 = [], [], [], []
    for i in range(L):
        lk = jax.random.split(keys[4 + i], 6)
        wqkv.append(jnp.concatenate(
            [dense(lk[0], D, D), dense(lk[1], D, D), dense(lk[2], D, D)], axis=1))
        wo.append(dense(lk[3], D, D))
        w1.append(dense(lk[4], D, F))
        w2.append(dense(lk[5], F, D))

    return {
        "word_emb": jax.random.normal(keys[0], (V, D), jnp.float32) * 0.02,
        "pos_emb": jax.random.normal(keys[1], (P, D), jnp.float32) * 0.02,
        "emb_ln_g": jnp.ones((1, D), jnp.float32),
        "emb_ln_b": jnp.zeros((1, D), jnp.float32),
        "wqkv": jnp.stack(wqkv),                       # (L, D, 3D) fused Wq|Wk|Wv
        "bqkv": jnp.zeros((L, 1, 3 * D), jnp.float32),
        "wo": jnp.stack(wo),                           # (L, D, D)
        "bo": jnp.zeros((L, 1, D), jnp.float32),
        "ln1_g": jnp.ones((L, 1, D), jnp.float32),
        "ln1_b": jnp.zeros((L, 1, D), jnp.float32),
        "w1": jnp.stack(w1),                           # (L, D, F)
        "b1": jnp.zeros((L, 1, F), jnp.float32),
        "w2": jnp.stack(w2),                           # (L, F, D)
        "b2": jnp.zeros((L, 1, D), jnp.float32),
        "ln2_g": jnp.ones((L, 1, D), jnp.float32),
        "ln2_b": jnp.zeros((L, 1, D), jnp.float32),
        "pool_w": dense(keys[2], D, D),
        "pool_b": jnp.zeros((1, D), jnp.float32),
        "cls_w": dense(keys[3], D, C),
        "cls_b": jnp.zeros((1, C), jnp.float32),
    }


def init_selector_params(key):
    ka, kb = jax.random.split(key)
    wab = jnp.concatenate(
        [jax.random.normal(ka, (D, 1), jnp.float32) * 0.2,
         jax.random.normal(kb, (D, 1), jnp.float32) * 0.2], axis=1)   # (D, 2) = wa|wb
    return {"wab": wab, "bab": jnp.zeros((1, 2), jnp.float32)}


# ------------------------- main -------------------------
if __name__ == "__main__":
    key = jax.random.PRNGKey(0)
    k_mtl, k_cls, k_sel, k_inp = jax.random.split(key, 4)
    params = {
        "mtl": init_bert_params(k_mtl),
        "cls": init_bert_params(k_cls),
        "selector": init_selector_params(k_sel),
    }

    bert_inputs = jax.random.randint(k_inp, (B, S), 0, V, dtype=jnp.int32)
    attention_masks = jnp.ones((B, S), jnp.int32).at[1, 6:].set(0)
    padding_masks = attention_masks.astype(bool)
    positions = jnp.broadcast_to(jnp.arange(S, dtype=jnp.int32), (B, S))

    fwd = jax.jit(hardkuma_e2e_forward)
    aux_cls_p, cls_p, soft_z, hard_z = fwd(
        params, bert_inputs, attention_masks, padding_masks, positions)
    jax.block_until_ready((aux_cls_p, cls_p, soft_z, hard_z))

    assert aux_cls_p.shape == (B, C) and cls_p.shape == (B, C)
    assert soft_z.shape == (B, S) and hard_z.shape == (B, S)
    assert bool(jnp.all(jnp.isfinite(aux_cls_p))) and bool(jnp.all(jnp.isfinite(cls_p)))
    assert bool(jnp.all((hard_z == 0.0) | (hard_z == 1.0)))
    print("KERNEL_OK")
</pallas_src>

<mosaic_0001>
module attributes {stable_mosaic.version = 11 : i64} {
  func.func @_classifier_kernel(%arg0: memref<16x32xf32, #tpu.memory_space<vmem>>, %arg1: memref<2x1x8xf32, #tpu.memory_space<vmem>>, %arg2: memref<1x32xf32, #tpu.memory_space<vmem>>, %arg3: memref<1x32xf32, #tpu.memory_space<vmem>>, %arg4: memref<2x32x96xf32, #tpu.memory_space<vmem>>, %arg5: memref<2x1x96xf32, #tpu.memory_space<vmem>>, %arg6: memref<2x32x32xf32, #tpu.memory_space<vmem>>, %arg7: memref<2x1x32xf32, #tpu.memory_space<vmem>>, %arg8: memref<2x1x32xf32, #tpu.memory_space<vmem>>, %arg9: memref<2x1x32xf32, #tpu.memory_space<vmem>>, %arg10: memref<2x32x64xf32, #tpu.memory_space<vmem>>, %arg11: memref<2x1x64xf32, #tpu.memory_space<vmem>>, %arg12: memref<2x64x32xf32, #tpu.memory_space<vmem>>, %arg13: memref<2x1x32xf32, #tpu.memory_space<vmem>>, %arg14: memref<2x1x32xf32, #tpu.memory_space<vmem>>, %arg15: memref<2x1x32xf32, #tpu.memory_space<vmem>>, %arg16: memref<32x32xf32, #tpu.memory_space<vmem>>, %arg17: memref<1x32xf32, #tpu.memory_space<vmem>>, %arg18: memref<32x2xf32, #tpu.memory_space<vmem>>, %arg19: memref<1x2xf32, #tpu.memory_space<vmem>>, %arg20: memref<32x2xf32, #tpu.memory_space<vmem>>, %arg21: memref<1x2xf32, #tpu.memory_space<vmem>>, %arg22: memref<16x1xf32, #tpu.memory_space<vmem>>, %arg23: memref<2x2xf32, #tpu.memory_space<vmem>>, %arg24: memref<16x2xf32, #tpu.memory_space<vmem>>) attributes {dimension_semantics = [], scalar_prefetch = 0 : i64, scratch_operands = 0 : i64, tpu.core_type = #tpu.core_type<tc>} {
    %c0 = arith.constant 0 : index
    %c0_0 = arith.constant 0 : index
    %c0_1 = arith.constant 0 : index
    %0 = vector.load %arg1[%c0, %c0_0, %c0_1] : memref<2x1x8xf32, #tpu.memory_space<vmem>>, vector<2x1x8xf32>
    %c0_2 = arith.constant 0 : index
    %c0_3 = arith.constant 0 : index
    %1 = vector.load %arg0[%c0_2, %c0_3] : memref<16x32xf32, #tpu.memory_space<vmem>>, vector<16x32xf32>
    %c0_4 = arith.constant 0 : index
    %c0_5 = arith.constant 0 : index
    %2 = vector.load %arg2[%c0_4, %c0_5] : memref<1x32xf32, #tpu.memory_space<vmem>>, vector<1x32xf32>
    %c0_6 = arith.constant 0 : index
    %c0_7 = arith.constant 0 : index
    %3 = vector.load %arg3[%c0_6, %c0_7] : memref<1x32xf32, #tpu.memory_space<vmem>>, vector<1x32xf32>
    %cst = arith.constant dense<0.000000e+00> : vector<16xf32>
    %4 = vector.multi_reduction <add>, %1, %cst [1] : vector<16x32xf32> to vector<16xf32>
    %5 = vector.shape_cast %4 : vector<16xf32> to vector<16x1xf32>
    %cst_8 = arith.constant 3.200000e+01 : f32
    %6 = vector.broadcast %cst_8 : f32 to vector<16x1xf32>
    %7 = arith.divf %5, %6 : vector<16x1xf32>
    %8 = vector.broadcast %7 : vector<16x1xf32> to vector<16x32xf32>
    %9 = arith.subf %1, %8 : vector<16x32xf32>
    %10 = arith.mulf %9, %9 : vector<16x32xf32>
    %cst_9 = arith.constant dense<0.000000e+00> : vector<16xf32>
    %11 = vector.multi_reduction <add>, %10, %cst_9 [1] : vector<16x32xf32> to vector<16xf32>
    %12 = vector.shape_cast %11 : vector<16xf32> to vector<16x1xf32>
    %cst_10 = arith.constant 3.200000e+01 : f32
    %13 = vector.broadcast %cst_10 : f32 to vector<16x1xf32>
    %14 = arith.divf %12, %13 : vector<16x1xf32>
    %15 = vector.broadcast %7 : vector<16x1xf32> to vector<16x32xf32>
    %16 = arith.subf %1, %15 : vector<16x32xf32>
    %cst_11 = arith.constant 9.99999996E-13 : f32
    %17 = vector.broadcast %cst_11 : f32 to vector<16x1xf32>
    %18 = arith.addf %14, %17 : vector<16x1xf32>
    %19 = math.rsqrt %18 : vector<16x1xf32>
    %20 = vector.broadcast %19 : vector<16x1xf32> to vector<16x32xf32>
    %21 = arith.mulf %16, %20 : vector<16x32xf32>
    %22 = vector.broadcast %2 : vector<1x32xf32> to vector<16x32xf32>
    %23 = arith.mulf %21, %22 : vector<16x32xf32>
    %24 = vector.broadcast %3 : vector<1x32xf32> to vector<16x32xf32>
    %25 = arith.addf %23, %24 : vector<16x32xf32>
    %c0_12 = arith.constant 0 : index
    %c0_13 = arith.constant 0 : index
    %c0_14 = arith.constant 0 : index
    %26 = vector.load %arg4[%c0_12, %c0_13, %c0_14] : memref<2x32x96xf32, #tpu.memory_space<vmem>>, vector<1x32x96xf32>
    %27 = vector.shape_cast %26 : vector<1x32x96xf32> to vector<32x96xf32>
    %cst_15 = arith.constant dense<0.000000e+00> : vector<16x96xf32>
    %28 = tpu.matmul %25, %27, %cst_15 {dimension_numbers = #tpu.dot_dimension_numbers<[1], [0], [0], [1], [0, 0, 1, 1], [], []>} : vector<16x32xf32>, vector<32x96xf32>, vector<16x96xf32> -> vector<16x96xf32>
    %c0_16 = arith.constant 0 : index
    %c0_17 = arith.constant 0 : index
    %c0_18 = arith.constant 0 : index
    %29 = vector.load %arg5[%c0_16, %c0_17, %c0_18] : memref<2x1x96xf32, #tpu.memory_space<vmem>>, vector<1x1x96xf32>
    %30 = vector.shape_cast %29 : vector<1x1x96xf32> to vector<1x96xf32>
    %31 = vector.broadcast %30 : vector<1x96xf32> to vector<16x96xf32>
    %32 = arith.addf %28, %31 : vector<16x96xf32>
    %c0_19 = arith.constant 0 : index
    %c0_20 = arith.constant 0 : index
    %c0_21 = arith.constant 0 : index
    %33 = vector.load %arg6[%c0_19, %c0_20, %c0_21] : memref<2x32x32xf32, #tpu.memory_space<vmem>>, vector<1x32x32xf32>
    %34 = vector.shape_cast %33 : vector<1x32x32xf32> to vector<32x32xf32>
    %cst_22 = arith.constant 0.000000e+00 : f32
    %35 = vector.broadcast %cst_22 : f32 to vector<16x32xf32>
    %36 = vector.extract_strided_slice %32 {offsets = [0, 0], sizes = [16, 16], strides = [1, 1]} : vector<16x96xf32> to vector<16x16xf32>
    %37 = vector.shape_cast %36 : vector<16x16xf32> to vector<2x8x16xf32>
    %38 = vector.extract_strided_slice %32 {offsets = [0, 32], sizes = [16, 16], strides = [1, 1]} : vector<16x96xf32> to vector<16x16xf32>
    %39 = vector.shape_cast %38 : vector<16x16xf32> to vector<2x8x16xf32>
    %40 = vector.extract_strided_slice %32 {offsets = [0, 64], sizes = [16, 16], strides = [1, 1]} : vector<16x96xf32> to vector<16x16xf32>
    %41 = vector.shape_cast %40 : vector<16x16xf32> to vector<2x8x16xf32>
    "tpu.trace_start"() <{level = 10 : i32, message = "bqd,bkd->bqk"}> : () -> ()
    %cst_23 = arith.constant dense<0.000000e+00> : vector<2x8x8xf32>
    %42 = tpu.matmul %37, %39, %cst_23 {dimension_numbers = #tpu.dot_dimension_numbers<[2], [2], [1], [1], [0, 0, 0, 1, 1, 1], [0], [0]>} : vector<2x8x16xf32>, vector<2x8x16xf32>, vector<2x8x8xf32> -> vector<2x8x8xf32>
    "tpu.trace_stop"() : () -> ()
    %cst_24 = arith.constant 2.500000e-01 : f32
    %43 = vector.broadcast %cst_24 : f32 to vector<2x8x8xf32>
    %44 = arith.mulf %42, %43 : vector<2x8x8xf32>
    %45 = vector.broadcast %0 : vector<2x1x8xf32> to vector<2x8x8xf32>
    %46 = arith.addf %44, %45 : vector<2x8x8xf32>
    %cst_25 = arith.constant dense<0xFF800000> : vector<2x8xf32>
    %47 = vector.multi_reduction <maximumf>, %46, %cst_25 [2] : vector<2x8x8xf32> to vector<2x8xf32>
    %48 = vector.shape_cast %47 : vector<2x8xf32> to vector<2x8x1xf32>
    %49 = vector.broadcast %48 : vector<2x8x1xf32> to vector<2x8x8xf32>
    %50 = arith.subf %46, %49 : vector<2x8x8xf32>
    %51 = math.exp %50 : vector<2x8x8xf32>
    %cst_26 = arith.constant dense<0.000000e+00> : vector<2x8xf32>
    %52 = vector.multi_reduction <add>, %51, %cst_26 [2] : vector<2x8x8xf32> to vector<2x8xf32>
    %53 = vector.shape_cast %52 : vector<2x8xf32> to vector<2x8x1xf32>
    %54 = vector.broadcast %53 : vector<2x8x1xf32> to vector<2x8x8xf32>
    %55 = arith.divf %51, %54 : vector<2x8x8xf32>
    "tpu.trace_start"() <{level = 10 : i32, message = "bqk,bkd->bqd"}> : () -> ()
    %cst_27 = arith.constant dense<0.000000e+00> : vector<2x8x16xf32>
    %56 = tpu.matmul %55, %41, %cst_27 {dimension_numbers = #tpu.dot_dimension_numbers<[2], [1], [1], [2], [0, 0, 0, 1, 1, 2], [0], [0]>} : vector<2x8x8xf32>, vector<2x8x16xf32>, vector<2x8x16xf32> -> vector<2x8x16xf32>
    "tpu.trace_stop"() : () -> ()
    %57 = vector.shape_cast %56 : vector<2x8x16xf32> to vector<16x16xf32>
    %58 = vector.extract_strided_slice %34 {offsets = [0, 0], sizes = [16, 32], strides = [1, 1]} : vector<32x32xf32> to vector<16x32xf32>
    %cst_28 = arith.constant dense<0.000000e+00> : vector<16x32xf32>
    %59 = tpu.matmul %57, %58, %cst_28 {dimension_numbers = #tpu.dot_dimension_numbers<[1], [0], [0], [1], [0, 0, 1, 1], [], []>} : vector<16x16xf32>, vector<16x32xf32>, vector<16x32xf32> -> vector<16x32xf32>
    %60 = arith.addf %35, %59 : vector<16x32xf32>
    %61 = vector.extract_strided_slice %32 {offsets = [0, 16], sizes = [16, 16], strides = [1, 1]} : vector<16x96xf32> to vector<16x16xf32>
    %62 = vector.shape_cast %61 : vector<16x16xf32> to vector<2x8x16xf32>
    %63 = vector.extract_strided_slice %32 {offsets = [0, 48], sizes = [16, 16], strides = [1, 1]} : vector<16x96xf32> to vector<16x16xf32>
    %64 = vector.shape_cast %63 : vector<16x16xf32> to vector<2x8x16xf32>
    %65 = vector.extract_strided_slice %32 {offsets = [0, 80], sizes = [16, 16], strides = [1, 1]} : vector<16x96xf32> to vector<16x16xf32>
    %66 = vector.shape_cast %65 : vector<16x16xf32> to vector<2x8x16xf32>
    "tpu.trace_start"() <{level = 10 : i32, message = "bqd,bkd->bqk"}> : () -> ()
    %cst_29 = arith.constant dense<0.000000e+00> : vector<2x8x8xf32>
    %67 = tpu.matmul %62, %64, %cst_29 {dimension_numbers = #tpu.dot_dimension_numbers<[2], [2], [1], [1], [0, 0, 0, 1, 1, 1], [0], [0]>} : vector<2x8x16xf32>, vector<2x8x16xf32>, vector<2x8x8xf32> -> vector<2x8x8xf32>
    "tpu.trace_stop"() : () -> ()
    %cst_30 = arith.constant 2.500000e-01 : f32
    %68 = vector.broadcast %cst_30 : f32 to vector<2x8x8xf32>
    %69 = arith.mulf %67, %68 : vector<2x8x8xf32>
    %70 = vector.broadcast %0 : vector<2x1x8xf32> to vector<2x8x8xf32>
    %71 = arith.addf %69, %70 : vector<2x8x8xf32>
    %cst_31 = arith.constant dense<0xFF800000> : vector<2x8xf32>
    %72 = vector.multi_reduction <maximumf>, %71, %cst_31 [2] : vector<2x8x8xf32> to vector<2x8xf32>
    %73 = vector.shape_cast %72 : vector<2x8xf32> to vector<2x8x1xf32>
    %74 = vector.broadcast %73 : vector<2x8x1xf32> to vector<2x8x8xf32>
    %75 = arith.subf %71, %74 : vector<2x8x8xf32>
    %76 = math.exp %75 : vector<2x8x8xf32>
    %cst_32 = arith.constant dense<0.000000e+00> : vector<2x8xf32>
    %77 = vector.multi_reduction <add>, %76, %cst_32 [2] : vector<2x8x8xf32> to vector<2x8xf32>
    %78 = vector.shape_cast %77 : vector<2x8xf32> to vector<2x8x1xf32>
    %79 = vector.broadcast %78 : vector<2x8x1xf32> to vector<2x8x8xf32>
    %80 = arith.divf %76, %79 : vector<2x8x8xf32>
    "tpu.trace_start"() <{level = 10 : i32, message = "bqk,bkd->bqd"}> : () -> ()
    %cst_33 = arith.constant dense<0.000000e+00> : vector<2x8x16xf32>
    %81 = tpu.matmul %80, %66, %cst_33 {dimension_numbers = #tpu.dot_dimension_numbers<[2], [1], [1], [2], [0, 0, 0, 1, 1, 2], [0], [0]>} : vector<2x8x8xf32>, vector<2x8x16xf32>, vector<2x8x16xf32> -> vector<2x8x16xf32>
    "tpu.trace_stop"() : () -> ()
    %82 = vector.shape_cast %81 : vector<2x8x16xf32> to vector<16x16xf32>
    %83 = vector.extract_strided_slice %34 {offsets = [16, 0], sizes = [16, 32], strides = [1, 1]} : vector<32x32xf32> to vector<16x32xf32>
    %cst_34 = arith.constant dense<0.000000e+00> : vector<16x32xf32>
    %84 = tpu.matmul %82, %83, %cst_34 {dimension_numbers = #tpu.dot_dimension_numbers<[1], [0], [0], [1], [0, 0, 1, 1], [], []>} : vector<16x16xf32>, vector<16x32xf32>, vector<16x32xf32> -> vector<16x32xf32>
    %85 = arith.addf %60, %84 : vector<16x32xf32>
    %c0_35 = arith.constant 0 : index
    %c0_36 = arith.constant 0 : index
    %c0_37 = arith.constant 0 : index
    %86 = vector.load %arg7[%c0_35, %c0_36, %c0_37] : memref<2x1x32xf32, #tpu.memory_space<vmem>>, vector<1x1x32xf32>
    %87 = vector.shape_cast %86 : vector<1x1x32xf32> to vector<1x32xf32>
    %88 = vector.broadcast %87 : vector<1x32xf32> to vector<16x32xf32>
    %89 = arith.addf %85, %88 : vector<16x32xf32>
    %90 = arith.addf %25, %89 : vector<16x32xf32>
    %c0_38 = arith.constant 0 : index
    %c0_39 = arith.constant 0 : index
    %c0_40 = arith.constant 0 : index
    %91 = vector.load %arg8[%c0_38, %c0_39, %c0_40] : memref<2x1x32xf32, #tpu.memory_space<vmem>>, vector<1x1x32xf32>
    %92 = vector.shape_cast %91 : vector<1x1x32xf32> to vector<1x32xf32>
    %c0_41 = arith.constant 0 : index
    %c0_42 = arith.constant 0 : index
    %c0_43 = arith.constant 0 : index
    %93 = vector.load %arg9[%c0_41, %c0_42, %c0_43] : memref<2x1x32xf32, #tpu.memory_space<vmem>>, vector<1x1x32xf32>
    %94 = vector.shape_cast %93 : vector<1x1x32xf32> to vector<1x32xf32>
    %cst_44 = arith.constant dense<0.000000e+00> : vector<16xf32>
    %95 = vector.multi_reduction <add>, %90, %cst_44 [1] : vector<16x32xf32> to vector<16xf32>
    %96 = vector.shape_cast %95 : vector<16xf32> to vector<16x1xf32>
    %cst_45 = arith.constant 3.200000e+01 : f32
    %97 = vector.broadcast %cst_45 : f32 to vector<16x1xf32>
    %98 = arith.divf %96, %97 : vector<16x1xf32>
    %99 = vector.broadcast %98 : vector<16x1xf32> to vector<16x32xf32>
    %100 = arith.subf %90, %99 : vector<16x32xf32>
    %101 = arith.mulf %100, %100 : vector<16x32xf32>
    %cst_46 = arith.constant dense<0.000000e+00> : vector<16xf32>
    %102 = vector.multi_reduction <add>, %101, %cst_46 [1] : vector<16x32xf32> to vector<16xf32>
    %103 = vector.shape_cast %102 : vector<16xf32> to vector<16x1xf32>
    %cst_47 = arith.constant 3.200000e+01 : f32
    %104 = vector.broadcast %cst_47 : f32 to vector<16x1xf32>
    %105 = arith.divf %103, %104 : vector<16x1xf32>
    %106 = vector.broadcast %98 : vector<16x1xf32> to vector<16x32xf32>
    %107 = arith.subf %90, %106 : vector<16x32xf32>
    %cst_48 = arith.constant 9.99999996E-13 : f32
    %108 = vector.broadcast %cst_48 : f32 to vector<16x1xf32>
    %109 = arith.addf %105, %108 : vector<16x1xf32>
    %110 = math.rsqrt %109 : vector<16x1xf32>
    %111 = vector.broadcast %110 : vector<16x1xf32> to vector<16x32xf32>
    %112 = arith.mulf %107, %111 : vector<16x32xf32>
    %113 = vector.broadcast %92 : vector<1x32xf32> to vector<16x32xf32>
    %114 = arith.mulf %112, %113 : vector<16x32xf32>
    %115 = vector.broadcast %94 : vector<1x32xf32> to vector<16x32xf32>
    %116 = arith.addf %114, %115 : vector<16x32xf32>
    %c0_49 = arith.constant 0 : index
    %c0_50 = arith.constant 0 : index
    %c0_51 = arith.constant 0 : index
    %117 = vector.load %arg10[%c0_49, %c0_50, %c0_51] : memref<2x32x64xf32, #tpu.memory_space<vmem>>, vector<1x32x64xf32>
    %118 = vector.shape_cast %117 : vector<1x32x64xf32> to vector<32x64xf32>
    %cst_52 = arith.constant dense<0.000000e+00> : vector<16x64xf32>
    %119 = tpu.matmul %116, %118, %cst_52 {dimension_numbers = #tpu.dot_dimension_numbers<[1], [0], [0], [1], [0, 0, 1, 1], [], []>} : vector<16x32xf32>, vector<32x64xf32>, vector<16x64xf32> -> vector<16x64xf32>
    %c0_53 = arith.constant 0 : index
    %c0_54 = arith.constant 0 : index
    %c0_55 = arith.constant 0 : index
    %120 = vector.load %arg11[%c0_53, %c0_54, %c0_55] : memref<2x1x64xf32, #tpu.memory_space<vmem>>, vector<1x1x64xf32>
    %121 = vector.shape_cast %120 : vector<1x1x64xf32> to vector<1x64xf32>
    %122 = vector.broadcast %121 : vector<1x64xf32> to vector<16x64xf32>
    %123 = arith.addf %119, %122 : vector<16x64xf32>
    %cst_56 = arith.constant 5.000000e-01 : f32
    %124 = vector.broadcast %cst_56 : f32 to vector<16x64xf32>
    %125 = arith.mulf %124, %123 : vector<16x64xf32>
    %cst_57 = arith.constant 4.471500e-02 : f32
    %126 = vector.broadcast %cst_57 : f32 to vector<16x64xf32>
    %127 = arith.mulf %126, %123 : vector<16x64xf32>
    %128 = arith.mulf %127, %123 : vector<16x64xf32>
    %129 = arith.mulf %128, %123 : vector<16x64xf32>
    %130 = arith.addf %123, %129 : vector<16x64xf32>
    %cst_58 = arith.constant 0.797884583 : f32
    %131 = vector.broadcast %cst_58 : f32 to vector<16x64xf32>
    %132 = arith.mulf %131, %130 : vector<16x64xf32>
    %133 = math.tanh %132 : vector<16x64xf32>
    %cst_59 = arith.constant 1.000000e+00 : f32
    %134 = vector.broadcast %cst_59 : f32 to vector<16x64xf32>
    %135 = arith.addf %134, %133 : vector<16x64xf32>
    %136 = arith.mulf %125, %135 : vector<16x64xf32>
    %c0_60 = arith.constant 0 : index
    %c0_61 = arith.constant 0 : index
    %c0_62 = arith.constant 0 : index
    %137 = vector.load %arg12[%c0_60, %c0_61, %c0_62] : memref<2x64x32xf32, #tpu.memory_space<vmem>>, vector<1x64x32xf32>
    %138 = vector.shape_cast %137 : vector<1x64x32xf32> to vector<64x32xf32>
    %cst_63 = arith.constant dense<0.000000e+00> : vector<16x32xf32>
    %139 = tpu.matmul %136, %138, %cst_63 {dimension_numbers = #tpu.dot_dimension_numbers<[1], [0], [0], [1], [0, 0, 1, 1], [], []>} : vector<16x64xf32>, vector<64x32xf32>, vector<16x32xf32> -> vector<16x32xf32>
    %c0_64 = arith.constant 0 : index
    %c0_65 = arith.constant 0 : index
    %c0_66 = arith.constant 0 : index
    %140 = vector.load %arg13[%c0_64, %c0_65, %c0_66] : memref<2x1x32xf32, #tpu.memory_space<vmem>>, vector<1x1x32xf32>
    %141 = vector.shape_cast %140 : vector<1x1x32xf32> to vector<1x32xf32>
    %142 = vector.broadcast %141 : vector<1x32xf32> to vector<16x32xf32>
    %143 = arith.addf %139, %142 : vector<16x32xf32>
    %144 = arith.addf %116, %143 : vector<16x32xf32>
    %c0_67 = arith.constant 0 : index
    %c0_68 = arith.constant 0 : index
    %c0_69 = arith.constant 0 : index
    %145 = vector.load %arg14[%c0_67, %c0_68, %c0_69] : memref<2x1x32xf32, #tpu.memory_space<vmem>>, vector<1x1x32xf32>
    %146 = vector.shape_cast %145 : vector<1x1x32xf32> to vector<1x32xf32>
    %c0_70 = arith.constant 0 : index
    %c0_71 = arith.constant 0 : index
    %c0_72 = arith.constant 0 : index
    %147 = vector.load %arg15[%c0_70, %c0_71, %c0_72] : memref<2x1x32xf32, #tpu.memory_space<vmem>>, vector<1x1x32xf32>
    %148 = vector.shape_cast %147 : vector<1x1x32xf32> to vector<1x32xf32>
    %cst_73 = arith.constant dense<0.000000e+00> : vector<16xf32>
    %149 = vector.multi_reduction <add>, %144, %cst_73 [1] : vector<16x32xf32> to vector<16xf32>
    %150 = vector.shape_cast %149 : vector<16xf32> to vector<16x1xf32>
    %cst_74 = arith.constant 3.200000e+01 : f32
    %151 = vector.broadcast %cst_74 : f32 to vector<16x1xf32>
    %152 = arith.divf %150, %151 : vector<16x1xf32>
    %153 = vector.broadcast %152 : vector<16x1xf32> to vector<16x32xf32>
    %154 = arith.subf %144, %153 : vector<16x32xf32>
    %155 = arith.mulf %154, %154 : vector<16x32xf32>
    %cst_75 = arith.constant dense<0.000000e+00> : vector<16xf32>
    %156 = vector.multi_reduction <add>, %155, %cst_75 [1] : vector<16x32xf32> to vector<16xf32>
    %157 = vector.shape_cast %156 : vector<16xf32> to vector<16x1xf32>
    %cst_76 = arith.constant 3.200000e+01 : f32
    %158 = vector.broadcast %cst_76 : f32 to vector<16x1xf32>
    %159 = arith.divf %157, %158 : vector<16x1xf32>
    %160 = vector.broadcast %152 : vector<16x1xf32> to vector<16x32xf32>
    %161 = arith.subf %144, %160 : vector<16x32xf32>
    %cst_77 = arith.constant 9.99999996E-13 : f32
    %162 = vector.broadcast %cst_77 : f32 to vector<16x1xf32>
    %163 = arith.addf %159, %162 : vector<16x1xf32>
    %164 = math.rsqrt %163 : vector<16x1xf32>
    %165 = vector.broadcast %164 : vector<16x1xf32> to vector<16x32xf32>
    %166 = arith.mulf %161, %165 : vector<16x32xf32>
    %167 = vector.broadcast %146 : vector<1x32xf32> to vector<16x32xf32>
    %168 = arith.mulf %166, %167 : vector<16x32xf32>
    %169 = vector.broadcast %148 : vector<1x32xf32> to vector<16x32xf32>
    %170 = arith.addf %168, %169 : vector<16x32xf32>
    %c1 = arith.constant 1 : index
    %c0_78 = arith.constant 0 : index
    %c0_79 = arith.constant 0 : index
    %171 = vector.load %arg4[%c1, %c0_78, %c0_79] : memref<2x32x96xf32, #tpu.memory_space<vmem>>, vector<1x32x96xf32>
    %172 = vector.shape_cast %171 : vector<1x32x96xf32> to vector<32x96xf32>
    %cst_80 = arith.constant dense<0.000000e+00> : vector<16x96xf32>
    %173 = tpu.matmul %170, %172, %cst_80 {dimension_numbers = #tpu.dot_dimension_numbers<[1], [0], [0], [1], [0, 0, 1, 1], [], []>} : vector<16x32xf32>, vector<32x96xf32>, vector<16x96xf32> -> vector<16x96xf32>
    %c1_81 = arith.constant 1 : index
    %c0_82 = arith.constant 0 : index
    %c0_83 = arith.constant 0 : index
    %174 = vector.load %arg5[%c1_81, %c0_82, %c0_83] : memref<2x1x96xf32, #tpu.memory_space<vmem>>, vector<1x1x96xf32>
    %175 = vector.shape_cast %174 : vector<1x1x96xf32> to vector<1x96xf32>
    %176 = vector.broadcast %175 : vector<1x96xf32> to vector<16x96xf32>
    %177 = arith.addf %173, %176 : vector<16x96xf32>
    %c1_84 = arith.constant 1 : index
    %c0_85 = arith.constant 0 : index
    %c0_86 = arith.constant 0 : index
    %178 = vector.load %arg6[%c1_84, %c0_85, %c0_86] : memref<2x32x32xf32, #tpu.memory_space<vmem>>, vector<1x32x32xf32>
    %179 = vector.shape_cast %178 : vector<1x32x32xf32> to vector<32x32xf32>
    %cst_87 = arith.constant 0.000000e+00 : f32
    %180 = vector.broadcast %cst_87 : f32 to vector<16x32xf32>
    %181 = vector.extract_strided_slice %177 {offsets = [0, 0], sizes = [16, 16], strides = [1, 1]} : vector<16x96xf32> to vector<16x16xf32>
    %182 = vector.shape_cast %181 : vector<16x16xf32> to vector<2x8x16xf32>
    %183 = vector.extract_strided_slice %177 {offsets = [0, 32], sizes = [16, 16], strides = [1, 1]} : vector<16x96xf32> to vector<16x16xf32>
    %184 = vector.shape_cast %183 : vector<16x16xf32> to vector<2x8x16xf32>
    %185 = vector.extract_strided_slice %177 {offsets = [0, 64], sizes = [16, 16], strides = [1, 1]} : vector<16x96xf32> to vector<16x16xf32>
    %186 = vector.shape_cast %185 : vector<16x16xf32> to vector<2x8x16xf32>
    "tpu.trace_start"() <{level = 10 : i32, message = "bqd,bkd->bqk"}> : () -> ()
    %cst_88 = arith.constant dense<0.000000e+00> : vector<2x8x8xf32>
    %187 = tpu.matmul %182, %184, %cst_88 {dimension_numbers = #tpu.dot_dimension_numbers<[2], [2], [1], [1], [0, 0, 0, 1, 1, 1], [0], [0]>} : vector<2x8x16xf32>, vector<2x8x16xf32>, vector<2x8x8xf32> -> vector<2x8x8xf32>
    "tpu.trace_stop"() : () -> ()
    %cst_89 = arith.constant 2.500000e-01 : f32
    %188 = vector.broadcast %cst_89 : f32 to vector<2x8x8xf32>
    %189 = arith.mulf %187, %188 : vector<2x8x8xf32>
    %190 = vector.broadcast %0 : vector<2x1x8xf32> to vector<2x8x8xf32>
    %191 = arith.addf %189, %190 : vector<2x8x8xf32>
    %cst_90 = arith.constant dense<0xFF800000> : vector<2x8xf32>
    %192 = vector.multi_reduction <maximumf>, %191, %cst_90 [2] : vector<2x8x8xf32> to vector<2x8xf32>
    %193 = vector.shape_cast %192 : vector<2x8xf32> to vector<2x8x1xf32>
    %194 = vector.broadcast %193 : vector<2x8x1xf32> to vector<2x8x8xf32>
    %195 = arith.subf %191, %194 : vector<2x8x8xf32>
    %196 = math.exp %195 : vector<2x8x8xf32>
    %cst_91 = arith.constant dense<0.000000e+00> : vector<2x8xf32>
    %197 = vector.multi_reduction <add>, %196, %cst_91 [2] : vector<2x8x8xf32> to vector<2x8xf32>
    %198 = vector.shape_cast %197 : vector<2x8xf32> to vector<2x8x1xf32>
    %199 = vector.broadcast %198 : vector<2x8x1xf32> to vector<2x8x8xf32>
    %200 = arith.divf %196, %199 : vector<2x8x8xf32>
    "tpu.trace_start"() <{level = 10 : i32, message = "bqk,bkd->bqd"}> : () -> ()
    %cst_92 = arith.constant dense<0.000000e+00> : vector<2x8x16xf32>
    %201 = tpu.matmul %200, %186, %cst_92 {dimension_numbers = #tpu.dot_dimension_numbers<[2], [1], [1], [2], [0, 0, 0, 1, 1, 2], [0], [0]>} : vector<2x8x8xf32>, vector<2x8x16xf32>, vector<2x8x16xf32> -> vector<2x8x16xf32>
    "tpu.trace_stop"() : () -> ()
    %202 = vector.shape_cast %201 : vector<2x8x16xf32> to vector<16x16xf32>
    %203 = vector.extract_strided_slice %179 {offsets = [0, 0], sizes = [16, 32], strides = [1, 1]} : vector<32x32xf32> to vector<16x32xf32>
    %cst_93 = arith.constant dense<0.000000e+00> : vector<16x32xf32>
    %204 = tpu.matmul %202, %203, %cst_93 {dimension_numbers = #tpu.dot_dimension_numbers<[1], [0], [0], [1], [0, 0, 1, 1], [], []>} : vector<16x16xf32>, vector<16x32xf32>, vector<16x32xf32> -> vector<16x32xf32>
    %205 = arith.addf %180, %204 : vector<16x32xf32>
    %206 = vector.extract_strided_slice %177 {offsets = [0, 16], sizes = [16, 16], strides = [1, 1]} : vector<16x96xf32> to vector<16x16xf32>
    %207 = vector.shape_cast %206 : vector<16x16xf32> to vector<2x8x16xf32>
    %208 = vector.extract_strided_slice %177 {offsets = [0, 48], sizes = [16, 16], strides = [1, 1]} : vector<16x96xf32> to vector<16x16xf32>
    %209 = vector.shape_cast %208 : vector<16x16xf32> to vector<2x8x16xf32>
    %210 = vector.extract_strided_slice %177 {offsets = [0, 80], sizes = [16, 16], strides = [1, 1]} : vector<16x96xf32> to vector<16x16xf32>
    %211 = vector.shape_cast %210 : vector<16x16xf32> to vector<2x8x16xf32>
    "tpu.trace_start"() <{level = 10 : i32, message = "bqd,bkd->bqk"}> : () -> ()
    %cst_94 = arith.constant dense<0.000000e+00> : vector<2x8x8xf32>
    %212 = tpu.matmul %207, %209, %cst_94 {dimension_numbers = #tpu.dot_dimension_numbers<[2], [2], [1], [1], [0, 0, 0, 1, 1, 1], [0], [0]>} : vector<2x8x16xf32>, vector<2x8x16xf32>, vector<2x8x8xf32> -> vector<2x8x8xf32>
    "tpu.trace_stop"() : () -> ()
    %cst_95 = arith.constant 2.500000e-01 : f32
    %213 = vector.broadcast %cst_95 : f32 to vector<2x8x8xf32>
    %214 = arith.mulf %212, %213 : vector<2x8x8xf32>
    %215 = vector.broadcast %0 : vector<2x1x8xf32> to vector<2x8x8xf32>
    %216 = arith.addf %214, %215 : vector<2x8x8xf32>
    %cst_96 = arith.constant dense<0xFF800000> : vector<2x8xf32>
    %217 = vector.multi_reduction <maximumf>, %216, %cst_96 [2] : vector<2x8x8xf32> to vector<2x8xf32>
    %218 = vector.shape_cast %217 : vector<2x8xf32> to vector<2x8x1xf32>
    %219 = vector.broadcast %218 : vector<2x8x1xf32> to vector<2x8x8xf32>
    %220 = arith.subf %216, %219 : vector<2x8x8xf32>
    %221 = math.exp %220 : vector<2x8x8xf32>
    %cst_97 = arith.constant dense<0.000000e+00> : vector<2x8xf32>
    %222 = vector.multi_reduction <add>, %221, %cst_97 [2] : vector<2x8x8xf32> to vector<2x8xf32>
    %223 = vector.shape_cast %222 : vector<2x8xf32> to vector<2x8x1xf32>
    %224 = vector.broadcast %223 : vector<2x8x1xf32> to vector<2x8x8xf32>
    %225 = arith.divf %221, %224 : vector<2x8x8xf32>
    "tpu.trace_start"() <{level = 10 : i32, message = "bqk,bkd->bqd"}> : () -> ()
    %cst_98 = arith.constant dense<0.000000e+00> : vector<2x8x16xf32>
    %226 = tpu.matmul %225, %211, %cst_98 {dimension_numbers = #tpu.dot_dimension_numbers<[2], [1], [1], [2], [0, 0, 0, 1, 1, 2], [0], [0]>} : vector<2x8x8xf32>, vector<2x8x16xf32>, vector<2x8x16xf32> -> vector<2x8x16xf32>
    "tpu.trace_stop"() : () -> ()
    %227 = vector.shape_cast %226 : vector<2x8x16xf32> to vector<16x16xf32>
    %228 = vector.extract_strided_slice %179 {offsets = [16, 0], sizes = [16, 32], strides = [1, 1]} : vector<32x32xf32> to vector<16x32xf32>
    %cst_99 = arith.constant dense<0.000000e+00> : vector<16x32xf32>
    %229 = tpu.matmul %227, %228, %cst_99 {dimension_numbers = #tpu.dot_dimension_numbers<[1], [0], [0], [1], [0, 0, 1, 1], [], []>} : vector<16x16xf32>, vector<16x32xf32>, vector<16x32xf32> -> vector<16x32xf32>
    %230 = arith.addf %205, %229 : vector<16x32xf32>
    %c1_100 = arith.constant 1 : index
    %c0_101 = arith.constant 0 : index
    %c0_102 = arith.constant 0 : index
    %231 = vector.load %arg7[%c1_100, %c0_101, %c0_102] : memref<2x1x32xf32, #tpu.memory_space<vmem>>, vector<1x1x32xf32>
    %232 = vector.shape_cast %231 : vector<1x1x32xf32> to vector<1x32xf32>
    %233 = vector.broadcast %232 : vector<1x32xf32> to vector<16x32xf32>
    %234 = arith.addf %230, %233 : vector<16x32xf32>
    %235 = arith.addf %170, %234 : vector<16x32xf32>
    %c1_103 = arith.constant 1 : index
    %c0_104 = arith.constant 0 : index
    %c0_105 = arith.constant 0 : index
    %236 = vector.load %arg8[%c1_103, %c0_104, %c0_105] : memref<2x1x32xf32, #tpu.memory_space<vmem>>, vector<1x1x32xf32>
    %237 = vector.shape_cast %236 : vector<1x1x32xf32> to vector<1x32xf32>
    %c1_106 = arith.constant 1 : index
    %c0_107 = arith.constant 0 : index
    %c0_108 = arith.constant 0 : index
    %238 = vector.load %arg9[%c1_106, %c0_107, %c0_108] : memref<2x1x32xf32, #tpu.memory_space<vmem>>, vector<1x1x32xf32>
    %239 = vector.shape_cast %238 : vector<1x1x32xf32> to vector<1x32xf32>
    %cst_109 = arith.constant dense<0.000000e+00> : vector<16xf32>
    %240 = vector.multi_reduction <add>, %235, %cst_109 [1] : vector<16x32xf32> to vector<16xf32>
    %241 = vector.shape_cast %240 : vector<16xf32> to vector<16x1xf32>
    %cst_110 = arith.constant 3.200000e+01 : f32
    %242 = vector.broadcast %cst_110 : f32 to vector<16x1xf32>
    %243 = arith.divf %241, %242 : vector<16x1xf32>
    %244 = vector.broadcast %243 : vector<16x1xf32> to vector<16x32xf32>
    %245 = arith.subf %235, %244 : vector<16x32xf32>
    %246 = arith.mulf %245, %245 : vector<16x32xf32>
    %cst_111 = arith.constant dense<0.000000e+00> : vector<16xf32>
    %247 = vector.multi_reduction <add>, %246, %cst_111 [1] : vector<16x32xf32> to vector<16xf32>
    %248 = vector.shape_cast %247 : vector<16xf32> to vector<16x1xf32>
    %cst_112 = arith.constant 3.200000e+01 : f32
    %249 = vector.broadcast %cst_112 : f32 to vector<16x1xf32>
    %250 = arith.divf %248, %249 : vector<16x1xf32>
    %251 = vector.broadcast %243 : vector<16x1xf32> to vector<16x32xf32>
    %252 = arith.subf %235, %251 : vector<16x32xf32>
    %cst_113 = arith.constant 9.99999996E-13 : f32
    %253 = vector.broadcast %cst_113 : f32 to vector<16x1xf32>
    %254 = arith.addf %250, %253 : vector<16x1xf32>
    %255 = math.rsqrt %254 : vector<16x1xf32>
    %256 = vector.broadcast %255 : vector<16x1xf32> to vector<16x32xf32>
    %257 = arith.mulf %252, %256 : vector<16x32xf32>
    %258 = vector.broadcast %237 : vector<1x32xf32> to vector<16x32xf32>
    %259 = arith.mulf %257, %258 : vector<16x32xf32>
    %260 = vector.broadcast %239 : vector<1x32xf32> to vector<16x32xf32>
    %261 = arith.addf %259, %260 : vector<16x32xf32>
    %c1_114 = arith.constant 1 : index
    %c0_115 = arith.constant 0 : index
    %c0_116 = arith.constant 0 : index
    %262 = vector.load %arg10[%c1_114, %c0_115, %c0_116] : memref<2x32x64xf32, #tpu.memory_space<vmem>>, vector<1x32x64xf32>
    %263 = vector.shape_cast %262 : vector<1x32x64xf32> to vector<32x64xf32>
    %cst_117 = arith.constant dense<0.000000e+00> : vector<16x64xf32>
    %264 = tpu.matmul %261, %263, %cst_117 {dimension_numbers = #tpu.dot_dimension_numbers<[1], [0], [0], [1], [0, 0, 1, 1], [], []>} : vector<16x32xf32>, vector<32x64xf32>, vector<16x64xf32> -> vector<16x64xf32>
    %c1_118 = arith.constant 1 : index
    %c0_119 = arith.constant 0 : index
    %c0_120 = arith.constant 0 : index
    %265 = vector.load %arg11[%c1_118, %c0_119, %c0_120] : memref<2x1x64xf32, #tpu.memory_space<vmem>>, vector<1x1x64xf32>
    %266 = vector.shape_cast %265 : vector<1x1x64xf32> to vector<1x64xf32>
    %267 = vector.broadcast %266 : vector<1x64xf32> to vector<16x64xf32>
    %268 = arith.addf %264, %267 : vector<16x64xf32>
    %cst_121 = arith.constant 5.000000e-01 : f32
    %269 = vector.broadcast %cst_121 : f32 to vector<16x64xf32>
    %270 = arith.mulf %269, %268 : vector<16x64xf32>
    %cst_122 = arith.constant 4.471500e-02 : f32
    %271 = vector.broadcast %cst_122 : f32 to vector<16x64xf32>
    %272 = arith.mulf %271, %268 : vector<16x64xf32>
    %273 = arith.mulf %272, %268 : vector<16x64xf32>
    %274 = arith.mulf %273, %268 : vector<16x64xf32>
    %275 = arith.addf %268, %274 : vector<16x64xf32>
    %cst_123 = arith.constant 0.797884583 : f32
    %276 = vector.broadcast %cst_123 : f32 to vector<16x64xf32>
    %277 = arith.mulf %276, %275 : vector<16x64xf32>
    %278 = math.tanh %277 : vector<16x64xf32>
    %cst_124 = arith.constant 1.000000e+00 : f32
    %279 = vector.broadcast %cst_124 : f32 to vector<16x64xf32>
    %280 = arith.addf %279, %278 : vector<16x64xf32>
    %281 = arith.mulf %270, %280 : vector<16x64xf32>
    %c1_125 = arith.constant 1 : index
    %c0_126 = arith.constant 0 : index
    %c0_127 = arith.constant 0 : index
    %282 = vector.load %arg12[%c1_125, %c0_126, %c0_127] : memref<2x64x32xf32, #tpu.memory_space<vmem>>, vector<1x64x32xf32>
    %283 = vector.shape_cast %282 : vector<1x64x32xf32> to vector<64x32xf32>
    %cst_128 = arith.constant dense<0.000000e+00> : vector<16x32xf32>
    %284 = tpu.matmul %281, %283, %cst_128 {dimension_numbers = #tpu.dot_dimension_numbers<[1], [0], [0], [1], [0, 0, 1, 1], [], []>} : vector<16x64xf32>, vector<64x32xf32>, vector<16x32xf32> -> vector<16x32xf32>
    %c1_129 = arith.constant 1 : index
    %c0_130 = arith.constant 0 : index
    %c0_131 = arith.constant 0 : index
    %285 = vector.load %arg13[%c1_129, %c0_130, %c0_131] : memref<2x1x32xf32, #tpu.memory_space<vmem>>, vector<1x1x32xf32>
    %286 = vector.shape_cast %285 : vector<1x1x32xf32> to vector<1x32xf32>
    %287 = vector.broadcast %286 : vector<1x32xf32> to vector<16x32xf32>
    %288 = arith.addf %284, %287 : vector<16x32xf32>
    %289 = arith.addf %261, %288 : vector<16x32xf32>
    %c1_132 = arith.constant 1 : index
    %c0_133 = arith.constant 0 : index
    %c0_134 = arith.constant 0 : index
    %290 = vector.load %arg14[%c1_132, %c0_133, %c0_134] : memref<2x1x32xf32, #tpu.memory_space<vmem>>, vector<1x1x32xf32>
    %291 = vector.shape_cast %290 : vector<1x1x32xf32> to vector<1x32xf32>
    %c1_135 = arith.constant 1 : index
    %c0_136 = arith.constant 0 : index
    %c0_137 = arith.constant 0 : index
    %292 = vector.load %arg15[%c1_135, %c0_136, %c0_137] : memref<2x1x32xf32, #tpu.memory_space<vmem>>, vector<1x1x32xf32>
    %293 = vector.shape_cast %292 : vector<1x1x32xf32> to vector<1x32xf32>
    %cst_138 = arith.constant dense<0.000000e+00> : vector<16xf32>
    %294 = vector.multi_reduction <add>, %289, %cst_138 [1] : vector<16x32xf32> to vector<16xf32>
    %295 = vector.shape_cast %294 : vector<16xf32> to vector<16x1xf32>
    %cst_139 = arith.constant 3.200000e+01 : f32
    %296 = vector.broadcast %cst_139 : f32 to vector<16x1xf32>
    %297 = arith.divf %295, %296 : vector<16x1xf32>
    %298 = vector.broadcast %297 : vector<16x1xf32> to vector<16x32xf32>
    %299 = arith.subf %289, %298 : vector<16x32xf32>
    %300 = arith.mulf %299, %299 : vector<16x32xf32>
    %cst_140 = arith.constant dense<0.000000e+00> : vector<16xf32>
    %301 = vector.multi_reduction <add>, %300, %cst_140 [1] : vector<16x32xf32> to vector<16xf32>
    %302 = vector.shape_cast %301 : vector<16xf32> to vector<16x1xf32>
    %cst_141 = arith.constant 3.200000e+01 : f32
    %303 = vector.broadcast %cst_141 : f32 to vector<16x1xf32>
    %304 = arith.divf %302, %303 : vector<16x1xf32>
    %305 = vector.broadcast %297 : vector<16x1xf32> to vector<16x32xf32>
    %306 = arith.subf %289, %305 : vector<16x32xf32>
    %cst_142 = arith.constant 9.99999996E-13 : f32
    %307 = vector.broadcast %cst_142 : f32 to vector<16x1xf32>
    %308 = arith.addf %304, %307 : vector<16x1xf32>
    %309 = math.rsqrt %308 : vector<16x1xf32>
    %310 = vector.broadcast %309 : vector<16x1xf32> to vector<16x32xf32>
    %311 = arith.mulf %306, %310 : vector<16x32xf32>
    %312 = vector.broadcast %291 : vector<1x32xf32> to vector<16x32xf32>
    %313 = arith.mulf %311, %312 : vector<16x32xf32>
    %314 = vector.broadcast %293 : vector<1x32xf32> to vector<16x32xf32>
    %315 = arith.addf %313, %314 : vector<16x32xf32>
    %316 = vector.shape_cast %315 : vector<16x32xf32> to vector<2x8x32xf32>
    %317 = vector.extract_strided_slice %316 {offsets = [0, 0, 0], sizes = [2, 1, 32], strides = [1, 1, 1]} : vector<2x8x32xf32> to vector<2x1x32xf32>
    %318 = vector.shape_cast %317 : vector<2x1x32xf32> to vector<2x32xf32>
    %c0_143 = arith.constant 0 : index
    %c0_144 = arith.constant 0 : index
    %319 = vector.load %arg16[%c0_143, %c0_144] : memref<32x32xf32, #tpu.memory_space<vmem>>, vector<32x32xf32>
    %cst_145 = arith.constant dense<0.000000e+00> : vector<2x32xf32>
    %320 = tpu.matmul %318, %319, %cst_145 {dimension_numbers = #tpu.dot_dimension_numbers<[1], [0], [0], [1], [0, 0, 1, 1], [], []>} : vector<2x32xf32>, vector<32x32xf32>, vector<2x32xf32> -> vector<2x32xf32>
    %c0_146 = arith.constant 0 : index
    %c0_147 = arith.constant 0 : index
    %321 = vector.load %arg17[%c0_146, %c0_147] : memref<1x32xf32, #tpu.memory_space<vmem>>, vector<1x32xf32>
    %322 = vector.broadcast %321 : vector<1x32xf32> to vector<2x32xf32>
    %323 = arith.addf %320, %322 : vector<2x32xf32>
    %324 = math.tanh %323 : vector<2x32xf32>
    %c0_148 = arith.constant 0 : index
    %c0_149 = arith.constant 0 : index
    %325 = vector.load %arg18[%c0_148, %c0_149] : memref<32x2xf32, #tpu.memory_space<vmem>>, vector<32x2xf32>
    %cst_150 = arith.constant dense<0.000000e+00> : vector<2x2xf32>
    %326 = tpu.matmul %324, %325, %cst_150 {dimension_numbers = #tpu.dot_dimension_numbers<[1], [0], [0], [1], [0, 0, 1, 1], [], []>} : vector<2x32xf32>, vector<32x2xf32>, vector<2x2xf32> -> vector<2x2xf32>
    %c0_151 = arith.constant 0 : index
    %c0_152 = arith.constant 0 : index
    %327 = vector.load %arg19[%c0_151, %c0_152] : memref<1x2xf32, #tpu.memory_space<vmem>>, vector<1x2xf32>
    %328 = vector.broadcast %327 : vector<1x2xf32> to vector<2x2xf32>
    %329 = arith.addf %326, %328 : vector<2x2xf32>
    %c0_153 = arith.constant 0 : index
    %c0_154 = arith.constant 0 : index
    %330 = vector.load %arg23[%c0_153, %c0_154] : memref<2x2xf32, #tpu.memory_space<vmem>>, vector<2x2xf32>
    tpu.vector_store %arg23[%c0_153, %c0_154], %329 {strides = array<i32>} : memref<2x2xf32, #tpu.memory_space<vmem>>, vector<2x2xf32>,
    %c0_155 = arith.constant 0 : index
    %c0_156 = arith.constant 0 : index
    %331 = vector.load %arg20[%c0_155, %c0_156] : memref<32x2xf32, #tpu.memory_space<vmem>>, vector<32x2xf32>
    %cst_157 = arith.constant dense<0.000000e+00> : vector<16x2xf32>
    %332 = tpu.matmul %315, %331, %cst_157 {dimension_numbers = #tpu.dot_dimension_numbers<[1], [0], [0], [1], [0, 0, 1, 1], [], []>} : vector<16x32xf32>, vector<32x2xf32>, vector<16x2xf32> -> vector<16x2xf32>
    %c0_158 = arith.constant 0 : index
    %c0_159 = arith.constant 0 : index
    %333 = vector.load %arg21[%c0_158, %c0_159] : memref<1x2xf32, #tpu.memory_space<vmem>>, vector<1x2xf32>
    %334 = vector.broadcast %333 : vector<1x2xf32> to vector<16x2xf32>
    %335 = arith.addf %332, %334 : vector<16x2xf32>
    %cst_160 = arith.constant 0.000000e+00 : f32
    %336 = vector.broadcast %cst_160 : f32 to vector<16x2xf32>
    %337 = arith.maximumf %335, %336 : vector<16x2xf32>
    %338 = math.absf %335 : vector<16x2xf32>
    %cst_161 = arith.constant 0.000000e+00 : f32
    %339 = vector.broadcast %cst_161 : f32 to vector<16x2xf32>
    %340 = arith.subf %339, %338 : vector<16x2xf32>
    %341 = math.exp %340 : vector<16x2xf32>
    %cst_162 = arith.constant 1.000000e+00 : f32
    %342 = vector.broadcast %cst_162 : f32 to vector<16x2xf32>
    %343 = arith.addf %342, %341 : vector<16x2xf32>
    %344 = math.log %343 : vector<16x2xf32>
    %345 = arith.addf %337, %344 : vector<16x2xf32>
    %cst_163 = arith.constant 9.99999974E-5 : f32
    %cst_164 = arith.constant 1.000000e+04 : f32
    %346 = vector.broadcast %cst_163 : f32 to vector<16x2xf32>
    %347 = arith.maximumf %346, %345 : vector<16x2xf32>
    %348 = vector.broadcast %cst_164 : f32 to vector<16x2xf32>
    %349 = arith.minimumf %348, %347 : vector<16x2xf32>
    %350 = vector.extract_strided_slice %349 {offsets = [0, 0], sizes = [16, 1], strides = [1, 1]} : vector<16x2xf32> to vector<16x1xf32>
    %351 = vector.extract_strided_slice %349 {offsets = [0, 1], sizes = [16, 1], strides = [1, 1]} : vector<16x2xf32> to vector<16x1xf32>
    %cst_165 = arith.constant -0.693147182 : f32
    %352 = vector.broadcast %cst_165 : f32 to vector<16x1xf32>
    %353 = arith.divf %352, %351 : vector<16x1xf32>
    %354 = math.exp %353 : vector<16x1xf32>
    %cst_166 = arith.constant 1.000000e+00 : f32
    %355 = vector.broadcast %cst_166 : f32 to vector<16x1xf32>
    %356 = arith.subf %355, %354 : vector<16x1xf32>
    %cst_167 = arith.constant 9.99999996E-13 : f32
    %cst_168 = arith.constant 1.000000e+00 : f32
    %357 = vector.broadcast %cst_167 : f32 to vector<16x1xf32>
    %358 = arith.maximumf %357, %356 : vector<16x1xf32>
    %359 = vector.broadcast %cst_168 : f32 to vector<16x1xf32>
    %360 = arith.minimumf %359, %358 : vector<16x1xf32>
    %361 = math.log %360 : vector<16x1xf32>
    %362 = arith.divf %361, %350 : vector<16x1xf32>
    %363 = math.exp %362 : vector<16x1xf32>
    %cst_169 = arith.constant 1.200000e+00 : f32
    %364 = vector.broadcast %cst_169 : f32 to vector<16x1xf32>
    %365 = arith.mulf %363, %364 : vector<16x1xf32>
    %cst_170 = arith.constant -1.000000e-01 : f32
    %366 = vector.broadcast %cst_170 : f32 to vector<16x1xf32>
    %367 = arith.addf %365, %366 : vector<16x1xf32>
    %cst_171 = arith.constant 0.000000e+00 : f32
    %cst_172 = arith.constant 1.000000e+00 : f32
    %368 = vector.broadcast %cst_171 : f32 to vector<16x1xf32>
    %369 = arith.maximumf %368, %367 : vector<16x1xf32>
    %370 = vector.broadcast %cst_172 : f32 to vector<16x1xf32>
    %371 = arith.minimumf %370, %369 : vector<16x1xf32>
    %c0_173 = arith.constant 0 : index
    %c0_174 = arith.constant 0 : index
    %372 = vector.load %arg22[%c0_173, %c0_174] : memref<16x1xf32, #tpu.memory_space<vmem>>, vector<16x1xf32>
    %373 = arith.mulf %371, %372 : vector<16x1xf32>
    %cst_175 = arith.constant 5.000000e-01 : f32
    %374 = vector.broadcast %cst_175 : f32 to vector<16x1xf32>
    %375 = arith.cmpf oge, %373, %374 : vector<16x1xf32>
    %cst_176 = arith.constant 1.000000e+00 : f32
    %cst_177 = arith.constant 0.000000e+00 : f32
    %376 = vector.broadcast %cst_176 : f32 to vector<16x1xf32>
    %377 = vector.broadcast %cst_177 : f32 to vector<16x1xf32>
    %378 = arith.select %375, %376, %377 : vector<16x1xi1>, vector<16x1xf32>
    %379 = tpu.iota {dimensions = array<i32: 1>} : vector<16x2xi32>
    %c0_i32 = arith.constant 0 : i32
    %380 = vector.broadcast %c0_i32 : i32 to vector<16x2xi32>
    %381 = arith.cmpi eq, %379, %380 : vector<16x2xi32>
    %382 = vector.shape_cast %373 : vector<16x1xf32> to vector<16x1xf32>
    %383 = vector.broadcast %382 : vector<16x1xf32> to vector<16x2xf32>
    %384 = vector.shape_cast %378 : vector<16x1xf32> to vector<16x1xf32>
    %385 = vector.broadcast %384 : vector<16x1xf32> to vector<16x2xf32>
    %386 = arith.select %381, %383, %385 : vector<16x2xi1>, vector<16x2xf32>
    %c0_178 = arith.constant 0 : index
    %c0_179 = arith.constant 0 : index
    %387 = vector.load %arg24[%c0_178, %c0_179] : memref<16x2xf32, #tpu.memory_space<vmem>>, vector<16x2xf32>
    tpu.vector_store %arg24[%c0_178, %c0_179], %386 {strides = array<i32>} : memref<16x2xf32, #tpu.memory_space<vmem>>, vector<16x2xf32>,
    return
  }
}

module attributes {stable_mosaic.version = 11 : i64} {
  func.func @_classifier_kernel(%arg0: memref<16x32xf32, #tpu.memory_space<vmem>>, %arg1: memref<2x1x8xf32, #tpu.memory_space<vmem>>, %arg2: memref<1x32xf32, #tpu.memory_space<vmem>>, %arg3: memref<1x32xf32, #tpu.memory_space<vmem>>, %arg4: memref<2x32x96xf32, #tpu.memory_space<vmem>>, %arg5: memref<2x1x96xf32, #tpu.memory_space<vmem>>, %arg6: memref<2x32x32xf32, #tpu.memory_space<vmem>>, %arg7: memref<2x1x32xf32, #tpu.memory_space<vmem>>, %arg8: memref<2x1x32xf32, #tpu.memory_space<vmem>>, %arg9: memref<2x1x32xf32, #tpu.memory_space<vmem>>, %arg10: memref<2x32x64xf32, #tpu.memory_space<vmem>>, %arg11: memref<2x1x64xf32, #tpu.memory_space<vmem>>, %arg12: memref<2x64x32xf32, #tpu.memory_space<vmem>>, %arg13: memref<2x1x32xf32, #tpu.memory_space<vmem>>, %arg14: memref<2x1x32xf32, #tpu.memory_space<vmem>>, %arg15: memref<2x1x32xf32, #tpu.memory_space<vmem>>, %arg16: memref<32x32xf32, #tpu.memory_space<vmem>>, %arg17: memref<1x32xf32, #tpu.memory_space<vmem>>, %arg18: memref<32x2xf32, #tpu.memory_space<vmem>>, %arg19: memref<1x2xf32, #tpu.memory_space<vmem>>, %arg20: memref<2x2xf32, #tpu.memory_space<vmem>>) attributes {dimension_semantics = [], scalar_prefetch = 0 : i64, scratch_operands = 0 : i64, tpu.core_type = #tpu.core_type<tc>} {
    %c0 = arith.constant 0 : index
    %c0_0 = arith.constant 0 : index
    %c0_1 = arith.constant 0 : index
    %0 = vector.load %arg1[%c0, %c0_0, %c0_1] : memref<2x1x8xf32, #tpu.memory_space<vmem>>, vector<2x1x8xf32>
    %c0_2 = arith.constant 0 : index
    %c0_3 = arith.constant 0 : index
    %1 = vector.load %arg0[%c0_2, %c0_3] : memref<16x32xf32, #tpu.memory_space<vmem>>, vector<16x32xf32>
    %c0_4 = arith.constant 0 : index
    %c0_5 = arith.constant 0 : index
    %2 = vector.load %arg2[%c0_4, %c0_5] : memref<1x32xf32, #tpu.memory_space<vmem>>, vector<1x32xf32>
    %c0_6 = arith.constant 0 : index
    %c0_7 = arith.constant 0 : index
    %3 = vector.load %arg3[%c0_6, %c0_7] : memref<1x32xf32, #tpu.memory_space<vmem>>, vector<1x32xf32>
    %cst = arith.constant dense<0.000000e+00> : vector<16xf32>
    %4 = vector.multi_reduction <add>, %1, %cst [1] : vector<16x32xf32> to vector<16xf32>
    %5 = vector.shape_cast %4 : vector<16xf32> to vector<16x1xf32>
    %cst_8 = arith.constant 3.200000e+01 : f32
    %6 = vector.broadcast %cst_8 : f32 to vector<16x1xf32>
    %7 = arith.divf %5, %6 : vector<16x1xf32>
    %8 = vector.broadcast %7 : vector<16x1xf32> to vector<16x32xf32>
    %9 = arith.subf %1, %8 : vector<16x32xf32>
    %10 = arith.mulf %9, %9 : vector<16x32xf32>
    %cst_9 = arith.constant dense<0.000000e+00> : vector<16xf32>
    %11 = vector.multi_reduction <add>, %10, %cst_9 [1] : vector<16x32xf32> to vector<16xf32>
    %12 = vector.shape_cast %11 : vector<16xf32> to vector<16x1xf32>
    %cst_10 = arith.constant 3.200000e+01 : f32
    %13 = vector.broadcast %cst_10 : f32 to vector<16x1xf32>
    %14 = arith.divf %12, %13 : vector<16x1xf32>
    %15 = vector.broadcast %7 : vector<16x1xf32> to vector<16x32xf32>
    %16 = arith.subf %1, %15 : vector<16x32xf32>
    %cst_11 = arith.constant 9.99999996E-13 : f32
    %17 = vector.broadcast %cst_11 : f32 to vector<16x1xf32>
    %18 = arith.addf %14, %17 : vector<16x1xf32>
    %19 = math.rsqrt %18 : vector<16x1xf32>
    %20 = vector.broadcast %19 : vector<16x1xf32> to vector<16x32xf32>
    %21 = arith.mulf %16, %20 : vector<16x32xf32>
    %22 = vector.broadcast %2 : vector<1x32xf32> to vector<16x32xf32>
    %23 = arith.mulf %21, %22 : vector<16x32xf32>
    %24 = vector.broadcast %3 : vector<1x32xf32> to vector<16x32xf32>
    %25 = arith.addf %23, %24 : vector<16x32xf32>
    %c0_12 = arith.constant 0 : index
    %c0_13 = arith.constant 0 : index
    %c0_14 = arith.constant 0 : index
    %26 = vector.load %arg4[%c0_12, %c0_13, %c0_14] : memref<2x32x96xf32, #tpu.memory_space<vmem>>, vector<1x32x96xf32>
    %27 = vector.shape_cast %26 : vector<1x32x96xf32> to vector<32x96xf32>
    %cst_15 = arith.constant dense<0.000000e+00> : vector<16x96xf32>
    %28 = tpu.matmul %25, %27, %cst_15 {dimension_numbers = #tpu.dot_dimension_numbers<[1], [0], [0], [1], [0, 0, 1, 1], [], []>} : vector<16x32xf32>, vector<32x96xf32>, vector<16x96xf32> -> vector<16x96xf32>
    %c0_16 = arith.constant 0 : index
    %c0_17 = arith.constant 0 : index
    %c0_18 = arith.constant 0 : index
    %29 = vector.load %arg5[%c0_16, %c0_17, %c0_18] : memref<2x1x96xf32, #tpu.memory_space<vmem>>, vector<1x1x96xf32>
    %30 = vector.shape_cast %29 : vector<1x1x96xf32> to vector<1x96xf32>
    %31 = vector.broadcast %30 : vector<1x96xf32> to vector<16x96xf32>
    %32 = arith.addf %28, %31 : vector<16x96xf32>
    %c0_19 = arith.constant 0 : index
    %c0_20 = arith.constant 0 : index
    %c0_21 = arith.constant 0 : index
    %33 = vector.load %arg6[%c0_19, %c0_20, %c0_21] : memref<2x32x32xf32, #tpu.memory_space<vmem>>, vector<1x32x32xf32>
    %34 = vector.shape_cast %33 : vector<1x32x32xf32> to vector<32x32xf32>
    %cst_22 = arith.constant 0.000000e+00 : f32
    %35 = vector.broadcast %cst_22 : f32 to vector<16x32xf32>
    %36 = vector.extract_strided_slice %32 {offsets = [0, 0], sizes = [16, 16], strides = [1, 1]} : vector<16x96xf32> to vector<16x16xf32>
    %37 = vector.shape_cast %36 : vector<16x16xf32> to vector<2x8x16xf32>
    %38 = vector.extract_strided_slice %32 {offsets = [0, 32], sizes = [16, 16], strides = [1, 1]} : vector<16x96xf32> to vector<16x16xf32>
    %39 = vector.shape_cast %38 : vector<16x16xf32> to vector<2x8x16xf32>
    %40 = vector.extract_strided_slice %32 {offsets = [0, 64], sizes = [16, 16], strides = [1, 1]} : vector<16x96xf32> to vector<16x16xf32>
    %41 = vector.shape_cast %40 : vector<16x16xf32> to vector<2x8x16xf32>
    "tpu.trace_start"() <{level = 10 : i32, message = "bqd,bkd->bqk"}> : () -> ()
    %cst_23 = arith.constant dense<0.000000e+00> : vector<2x8x8xf32>
    %42 = tpu.matmul %37, %39, %cst_23 {dimension_numbers = #tpu.dot_dimension_numbers<[2], [2], [1], [1], [0, 0, 0, 1, 1, 1], [0], [0]>} : vector<2x8x16xf32>, vector<2x8x16xf32>, vector<2x8x8xf32> -> vector<2x8x8xf32>
    "tpu.trace_stop"() : () -> ()
    %cst_24 = arith.constant 2.500000e-01 : f32
    %43 = vector.broadcast %cst_24 : f32 to vector<2x8x8xf32>
    %44 = arith.mulf %42, %43 : vector<2x8x8xf32>
    %45 = vector.broadcast %0 : vector<2x1x8xf32> to vector<2x8x8xf32>
    %46 = arith.addf %44, %45 : vector<2x8x8xf32>
    %cst_25 = arith.constant dense<0xFF800000> : vector<2x8xf32>
    %47 = vector.multi_reduction <maximumf>, %46, %cst_25 [2] : vector<2x8x8xf32> to vector<2x8xf32>
    %48 = vector.shape_cast %47 : vector<2x8xf32> to vector<2x8x1xf32>
    %49 = vector.broadcast %48 : vector<2x8x1xf32> to vector<2x8x8xf32>
    %50 = arith.subf %46, %49 : vector<2x8x8xf32>
    %51 = math.exp %50 : vector<2x8x8xf32>
    %cst_26 = arith.constant dense<0.000000e+00> : vector<2x8xf32>
    %52 = vector.multi_reduction <add>, %51, %cst_26 [2] : vector<2x8x8xf32> to vector<2x8xf32>
    %53 = vector.shape_cast %52 : vector<2x8xf32> to vector<2x8x1xf32>
    %54 = vector.broadcast %53 : vector<2x8x1xf32> to vector<2x8x8xf32>
    %55 = arith.divf %51, %54 : vector<2x8x8xf32>
    "tpu.trace_start"() <{level = 10 : i32, message = "bqk,bkd->bqd"}> : () -> ()
    %cst_27 = arith.constant dense<0.000000e+00> : vector<2x8x16xf32>
    %56 = tpu.matmul %55, %41, %cst_27 {dimension_numbers = #tpu.dot_dimension_numbers<[2], [1], [1], [2], [0, 0, 0, 1, 1, 2], [0], [0]>} : vector<2x8x8xf32>, vector<2x8x16xf32>, vector<2x8x16xf32> -> vector<2x8x16xf32>
    "tpu.trace_stop"() : () -> ()
    %57 = vector.shape_cast %56 : vector<2x8x16xf32> to vector<16x16xf32>
    %58 = vector.extract_strided_slice %34 {offsets = [0, 0], sizes = [16, 32], strides = [1, 1]} : vector<32x32xf32> to vector<16x32xf32>
    %cst_28 = arith.constant dense<0.000000e+00> : vector<16x32xf32>
    %59 = tpu.matmul %57, %58, %cst_28 {dimension_numbers = #tpu.dot_dimension_numbers<[1], [0], [0], [1], [0, 0, 1, 1], [], []>} : vector<16x16xf32>, vector<16x32xf32>, vector<16x32xf32> -> vector<16x32xf32>
    %60 = arith.addf %35, %59 : vector<16x32xf32>
    %61 = vector.extract_strided_slice %32 {offsets = [0, 16], sizes = [16, 16], strides = [1, 1]} : vector<16x96xf32> to vector<16x16xf32>
    %62 = vector.shape_cast %61 : vector<16x16xf32> to vector<2x8x16xf32>
    %63 = vector.extract_strided_slice %32 {offsets = [0, 48], sizes = [16, 16], strides = [1, 1]} : vector<16x96xf32> to vector<16x16xf32>
    %64 = vector.shape_cast %63 : vector<16x16xf32> to vector<2x8x16xf32>
    %65 = vector.extract_strided_slice %32 {offsets = [0, 80], sizes = [16, 16], strides = [1, 1]} : vector<16x96xf32> to vector<16x16xf32>
    %66 = vector.shape_cast %65 : vector<16x16xf32> to vector<2x8x16xf32>
    "tpu.trace_start"() <{level = 10 : i32, message = "bqd,bkd->bqk"}> : () -> ()
    %cst_29 = arith.constant dense<0.000000e+00> : vector<2x8x8xf32>
    %67 = tpu.matmul %62, %64, %cst_29 {dimension_numbers = #tpu.dot_dimension_numbers<[2], [2], [1], [1], [0, 0, 0, 1, 1, 1], [0], [0]>} : vector<2x8x16xf32>, vector<2x8x16xf32>, vector<2x8x8xf32> -> vector<2x8x8xf32>
    "tpu.trace_stop"() : () -> ()
    %cst_30 = arith.constant 2.500000e-01 : f32
    %68 = vector.broadcast %cst_30 : f32 to vector<2x8x8xf32>
    %69 = arith.mulf %67, %68 : vector<2x8x8xf32>
    %70 = vector.broadcast %0 : vector<2x1x8xf32> to vector<2x8x8xf32>
    %71 = arith.addf %69, %70 : vector<2x8x8xf32>
    %cst_31 = arith.constant dense<0xFF800000> : vector<2x8xf32>
    %72 = vector.multi_reduction <maximumf>, %71, %cst_31 [2] : vector<2x8x8xf32> to vector<2x8xf32>
    %73 = vector.shape_cast %72 : vector<2x8xf32> to vector<2x8x1xf32>
    %74 = vector.broadcast %73 : vector<2x8x1xf32> to vector<2x8x8xf32>
    %75 = arith.subf %71, %74 : vector<2x8x8xf32>
    %76 = math.exp %75 : vector<2x8x8xf32>
    %cst_32 = arith.constant dense<0.000000e+00> : vector<2x8xf32>
    %77 = vector.multi_reduction <add>, %76, %cst_32 [2] : vector<2x8x8xf32> to vector<2x8xf32>
    %78 = vector.shape_cast %77 : vector<2x8xf32> to vector<2x8x1xf32>
    %79 = vector.broadcast %78 : vector<2x8x1xf32> to vector<2x8x8xf32>
    %80 = arith.divf %76, %79 : vector<2x8x8xf32>
    "tpu.trace_start"() <{level = 10 : i32, message = "bqk,bkd->bqd"}> : () -> ()
    %cst_33 = arith.constant dense<0.000000e+00> : vector<2x8x16xf32>
    %81 = tpu.matmul %80, %66, %cst_33 {dimension_numbers = #tpu.dot_dimension_numbers<[2], [1], [1], [2], [0, 0, 0, 1, 1, 2], [0], [0]>} : vector<2x8x8xf32>, vector<2x8x16xf32>, vector<2x8x16xf32> -> vector<2x8x16xf32>
    "tpu.trace_stop"() : () -> ()
    %82 = vector.shape_cast %81 : vector<2x8x16xf32> to vector<16x16xf32>
    %83 = vector.extract_strided_slice %34 {offsets = [16, 0], sizes = [16, 32], strides = [1, 1]} : vector<32x32xf32> to vector<16x32xf32>
    %cst_34 = arith.constant dense<0.000000e+00> : vector<16x32xf32>
    %84 = tpu.matmul %82, %83, %cst_34 {dimension_numbers = #tpu.dot_dimension_numbers<[1], [0], [0], [1], [0, 0, 1, 1], [], []>} : vector<16x16xf32>, vector<16x32xf32>, vector<16x32xf32> -> vector<16x32xf32>
    %85 = arith.addf %60, %84 : vector<16x32xf32>
    %c0_35 = arith.constant 0 : index
    %c0_36 = arith.constant 0 : index
    %c0_37 = arith.constant 0 : index
    %86 = vector.load %arg7[%c0_35, %c0_36, %c0_37] : memref<2x1x32xf32, #tpu.memory_space<vmem>>, vector<1x1x32xf32>
    %87 = vector.shape_cast %86 : vector<1x1x32xf32> to vector<1x32xf32>
    %88 = vector.broadcast %87 : vector<1x32xf32> to vector<16x32xf32>
    %89 = arith.addf %85, %88 : vector<16x32xf32>
    %90 = arith.addf %25, %89 : vector<16x32xf32>
    %c0_38 = arith.constant 0 : index
    %c0_39 = arith.constant 0 : index
    %c0_40 = arith.constant 0 : index
    %91 = vector.load %arg8[%c0_38, %c0_39, %c0_40] : memref<2x1x32xf32, #tpu.memory_space<vmem>>, vector<1x1x32xf32>
    %92 = vector.shape_cast %91 : vector<1x1x32xf32> to vector<1x32xf32>
    %c0_41 = arith.constant 0 : index
    %c0_42 = arith.constant 0 : index
    %c0_43 = arith.constant 0 : index
    %93 = vector.load %arg9[%c0_41, %c0_42, %c0_43] : memref<2x1x32xf32, #tpu.memory_space<vmem>>, vector<1x1x32xf32>
    %94 = vector.shape_cast %93 : vector<1x1x32xf32> to vector<1x32xf32>
    %cst_44 = arith.constant dense<0.000000e+00> : vector<16xf32>
    %95 = vector.multi_reduction <add>, %90, %cst_44 [1] : vector<16x32xf32> to vector<16xf32>
    %96 = vector.shape_cast %95 : vector<16xf32> to vector<16x1xf32>
    %cst_45 = arith.constant 3.200000e+01 : f32
    %97 = vector.broadcast %cst_45 : f32 to vector<16x1xf32>
    %98 = arith.divf %96, %97 : vector<16x1xf32>
    %99 = vector.broadcast %98 : vector<16x1xf32> to vector<16x32xf32>
    %100 = arith.subf %90, %99 : vector<16x32xf32>
    %101 = arith.mulf %100, %100 : vector<16x32xf32>
    %cst_46 = arith.constant dense<0.000000e+00> : vector<16xf32>
    %102 = vector.multi_reduction <add>, %101, %cst_46 [1] : vector<16x32xf32> to vector<16xf32>
    %103 = vector.shape_cast %102 : vector<16xf32> to vector<16x1xf32>
    %cst_47 = arith.constant 3.200000e+01 : f32
    %104 = vector.broadcast %cst_47 : f32 to vector<16x1xf32>
    %105 = arith.divf %103, %104 : vector<16x1xf32>
    %106 = vector.broadcast %98 : vector<16x1xf32> to vector<16x32xf32>
    %107 = arith.subf %90, %106 : vector<16x32xf32>
    %cst_48 = arith.constant 9.99999996E-13 : f32
    %108 = vector.broadcast %cst_48 : f32 to vector<16x1xf32>
    %109 = arith.addf %105, %108 : vector<16x1xf32>
    %110 = math.rsqrt %109 : vector<16x1xf32>
    %111 = vector.broadcast %110 : vector<16x1xf32> to vector<16x32xf32>
    %112 = arith.mulf %107, %111 : vector<16x32xf32>
    %113 = vector.broadcast %92 : vector<1x32xf32> to vector<16x32xf32>
    %114 = arith.mulf %112, %113 : vector<16x32xf32>
    %115 = vector.broadcast %94 : vector<1x32xf32> to vector<16x32xf32>
    %116 = arith.addf %114, %115 : vector<16x32xf32>
    %c0_49 = arith.constant 0 : index
    %c0_50 = arith.constant 0 : index
    %c0_51 = arith.constant 0 : index
    %117 = vector.load %arg10[%c0_49, %c0_50, %c0_51] : memref<2x32x64xf32, #tpu.memory_space<vmem>>, vector<1x32x64xf32>
    %118 = vector.shape_cast %117 : vector<1x32x64xf32> to vector<32x64xf32>
    %cst_52 = arith.constant dense<0.000000e+00> : vector<16x64xf32>
    %119 = tpu.matmul %116, %118, %cst_52 {dimension_numbers = #tpu.dot_dimension_numbers<[1], [0], [0], [1], [0, 0, 1, 1], [], []>} : vector<16x32xf32>, vector<32x64xf32>, vector<16x64xf32> -> vector<16x64xf32>
    %c0_53 = arith.constant 0 : index
    %c0_54 = arith.constant 0 : index
    %c0_55 = arith.constant 0 : index
    %120 = vector.load %arg11[%c0_53, %c0_54, %c0_55] : memref<2x1x64xf32, #tpu.memory_space<vmem>>, vector<1x1x64xf32>
    %121 = vector.shape_cast %120 : vector<1x1x64xf32> to vector<1x64xf32>
    %122 = vector.broadcast %121 : vector<1x64xf32> to vector<16x64xf32>
    %123 = arith.addf %119, %122 : vector<16x64xf32>
    %cst_56 = arith.constant 5.000000e-01 : f32
    %124 = vector.broadcast %cst_56 : f32 to vector<16x64xf32>
    %125 = arith.mulf %124, %123 : vector<16x64xf32>
    %cst_57 = arith.constant 4.471500e-02 : f32
    %126 = vector.broadcast %cst_57 : f32 to vector<16x64xf32>
    %127 = arith.mulf %126, %123 : vector<16x64xf32>
    %128 = arith.mulf %127, %123 : vector<16x64xf32>
    %129 = arith.mulf %128, %123 : vector<16x64xf32>
    %130 = arith.addf %123, %129 : vector<16x64xf32>
    %cst_58 = arith.constant 0.797884583 : f32
    %131 = vector.broadcast %cst_58 : f32 to vector<16x64xf32>
    %132 = arith.mulf %131, %130 : vector<16x64xf32>
    %133 = math.tanh %132 : vector<16x64xf32>
    %cst_59 = arith.constant 1.000000e+00 : f32
    %134 = vector.broadcast %cst_59 : f32 to vector<16x64xf32>
    %135 = arith.addf %134, %133 : vector<16x64xf32>
    %136 = arith.mulf %125, %135 : vector<16x64xf32>
    %c0_60 = arith.constant 0 : index
    %c0_61 = arith.constant 0 : index
    %c0_62 = arith.constant 0 : index
    %137 = vector.load %arg12[%c0_60, %c0_61, %c0_62] : memref<2x64x32xf32, #tpu.memory_space<vmem>>, vector<1x64x32xf32>
    %138 = vector.shape_cast %137 : vector<1x64x32xf32> to vector<64x32xf32>
    %cst_63 = arith.constant dense<0.000000e+00> : vector<16x32xf32>
    %139 = tpu.matmul %136, %138, %cst_63 {dimension_numbers = #tpu.dot_dimension_numbers<[1], [0], [0], [1], [0, 0, 1, 1], [], []>} : vector<16x64xf32>, vector<64x32xf32>, vector<16x32xf32> -> vector<16x32xf32>
    %c0_64 = arith.constant 0 : index
    %c0_65 = arith.constant 0 : index
    %c0_66 = arith.constant 0 : index
    %140 = vector.load %arg13[%c0_64, %c0_65, %c0_66] : memref<2x1x32xf32, #tpu.memory_space<vmem>>, vector<1x1x32xf32>
    %141 = vector.shape_cast %140 : vector<1x1x32xf32> to vector<1x32xf32>
    %142 = vector.broadcast %141 : vector<1x32xf32> to vector<16x32xf32>
    %143 = arith.addf %139, %142 : vector<16x32xf32>
    %144 = arith.addf %116, %143 : vector<16x32xf32>
    %c0_67 = arith.constant 0 : index
    %c0_68 = arith.constant 0 : index
    %c0_69 = arith.constant 0 : index
    %145 = vector.load %arg14[%c0_67, %c0_68, %c0_69] : memref<2x1x32xf32, #tpu.memory_space<vmem>>, vector<1x1x32xf32>
    %146 = vector.shape_cast %145 : vector<1x1x32xf32> to vector<1x32xf32>
    %c0_70 = arith.constant 0 : index
    %c0_71 = arith.constant 0 : index
    %c0_72 = arith.constant 0 : index
    %147 = vector.load %arg15[%c0_70, %c0_71, %c0_72] : memref<2x1x32xf32, #tpu.memory_space<vmem>>, vector<1x1x32xf32>
    %148 = vector.shape_cast %147 : vector<1x1x32xf32> to vector<1x32xf32>
    %cst_73 = arith.constant dense<0.000000e+00> : vector<16xf32>
    %149 = vector.multi_reduction <add>, %144, %cst_73 [1] : vector<16x32xf32> to vector<16xf32>
    %150 = vector.shape_cast %149 : vector<16xf32> to vector<16x1xf32>
    %cst_74 = arith.constant 3.200000e+01 : f32
    %151 = vector.broadcast %cst_74 : f32 to vector<16x1xf32>
    %152 = arith.divf %150, %151 : vector<16x1xf32>
    %153 = vector.broadcast %152 : vector<16x1xf32> to vector<16x32xf32>
    %154 = arith.subf %144, %153 : vector<16x32xf32>
    %155 = arith.mulf %154, %154 : vector<16x32xf32>
    %cst_75 = arith.constant dense<0.000000e+00> : vector<16xf32>
    %156 = vector.multi_reduction <add>, %155, %cst_75 [1] : vector<16x32xf32> to vector<16xf32>
    %157 = vector.shape_cast %156 : vector<16xf32> to vector<16x1xf32>
    %cst_76 = arith.constant 3.200000e+01 : f32
    %158 = vector.broadcast %cst_76 : f32 to vector<16x1xf32>
    %159 = arith.divf %157, %158 : vector<16x1xf32>
    %160 = vector.broadcast %152 : vector<16x1xf32> to vector<16x32xf32>
    %161 = arith.subf %144, %160 : vector<16x32xf32>
    %cst_77 = arith.constant 9.99999996E-13 : f32
    %162 = vector.broadcast %cst_77 : f32 to vector<16x1xf32>
    %163 = arith.addf %159, %162 : vector<16x1xf32>
    %164 = math.rsqrt %163 : vector<16x1xf32>
    %165 = vector.broadcast %164 : vector<16x1xf32> to vector<16x32xf32>
    %166 = arith.mulf %161, %165 : vector<16x32xf32>
    %167 = vector.broadcast %146 : vector<1x32xf32> to vector<16x32xf32>
    %168 = arith.mulf %166, %167 : vector<16x32xf32>
    %169 = vector.broadcast %148 : vector<1x32xf32> to vector<16x32xf32>
    %170 = arith.addf %168, %169 : vector<16x32xf32>
    %c1 = arith.constant 1 : index
    %c0_78 = arith.constant 0 : index
    %c0_79 = arith.constant 0 : index
    %171 = vector.load %arg4[%c1, %c0_78, %c0_79] : memref<2x32x96xf32, #tpu.memory_space<vmem>>, vector<1x32x96xf32>
    %172 = vector.shape_cast %171 : vector<1x32x96xf32> to vector<32x96xf32>
    %cst_80 = arith.constant dense<0.000000e+00> : vector<16x96xf32>
    %173 = tpu.matmul %170, %172, %cst_80 {dimension_numbers = #tpu.dot_dimension_numbers<[1], [0], [0], [1], [0, 0, 1, 1], [], []>} : vector<16x32xf32>, vector<32x96xf32>, vector<16x96xf32> -> vector<16x96xf32>
    %c1_81 = arith.constant 1 : index
    %c0_82 = arith.constant 0 : index
    %c0_83 = arith.constant 0 : index
    %174 = vector.load %arg5[%c1_81, %c0_82, %c0_83] : memref<2x1x96xf32, #tpu.memory_space<vmem>>, vector<1x1x96xf32>
    %175 = vector.shape_cast %174 : vector<1x1x96xf32> to vector<1x96xf32>
    %176 = vector.broadcast %175 : vector<1x96xf32> to vector<16x96xf32>
    %177 = arith.addf %173, %176 : vector<16x96xf32>
    %c1_84 = arith.constant 1 : index
    %c0_85 = arith.constant 0 : index
    %c0_86 = arith.constant 0 : index
    %178 = vector.load %arg6[%c1_84, %c0_85, %c0_86] : memref<2x32x32xf32, #tpu.memory_space<vmem>>, vector<1x32x32xf32>
    %179 = vector.shape_cast %178 : vector<1x32x32xf32> to vector<32x32xf32>
    %cst_87 = arith.constant 0.000000e+00 : f32
    %180 = vector.broadcast %cst_87 : f32 to vector<16x32xf32>
    %181 = vector.extract_strided_slice %177 {offsets = [0, 0], sizes = [16, 16], strides = [1, 1]} : vector<16x96xf32> to vector<16x16xf32>
    %182 = vector.shape_cast %181 : vector<16x16xf32> to vector<2x8x16xf32>
    %183 = vector.extract_strided_slice %177 {offsets = [0, 32], sizes = [16, 16], strides = [1, 1]} : vector<16x96xf32> to vector<16x16xf32>
    %184 = vector.shape_cast %183 : vector<16x16xf32> to vector<2x8x16xf32>
    %185 = vector.extract_strided_slice %177 {offsets = [0, 64], sizes = [16, 16], strides = [1, 1]} : vector<16x96xf32> to vector<16x16xf32>
    %186 = vector.shape_cast %185 : vector<16x16xf32> to vector<2x8x16xf32>
    "tpu.trace_start"() <{level = 10 : i32, message = "bqd,bkd->bqk"}> : () -> ()
    %cst_88 = arith.constant dense<0.000000e+00> : vector<2x8x8xf32>
    %187 = tpu.matmul %182, %184, %cst_88 {dimension_numbers = #tpu.dot_dimension_numbers<[2], [2], [1], [1], [0, 0, 0, 1, 1, 1], [0], [0]>} : vector<2x8x16xf32>, vector<2x8x16xf32>, vector<2x8x8xf32> -> vector<2x8x8xf32>
    "tpu.trace_stop"() : () -> ()
    %cst_89 = arith.constant 2.500000e-01 : f32
    %188 = vector.broadcast %cst_89 : f32 to vector<2x8x8xf32>
    %189 = arith.mulf %187, %188 : vector<2x8x8xf32>
    %190 = vector.broadcast %0 : vector<2x1x8xf32> to vector<2x8x8xf32>
    %191 = arith.addf %189, %190 : vector<2x8x8xf32>
    %cst_90 = arith.constant dense<0xFF800000> : vector<2x8xf32>
    %192 = vector.multi_reduction <maximumf>, %191, %cst_90 [2] : vector<2x8x8xf32> to vector<2x8xf32>
    %193 = vector.shape_cast %192 : vector<2x8xf32> to vector<2x8x1xf32>
    %194 = vector.broadcast %193 : vector<2x8x1xf32> to vector<2x8x8xf32>
    %195 = arith.subf %191, %194 : vector<2x8x8xf32>
    %196 = math.exp %195 : vector<2x8x8xf32>
    %cst_91 = arith.constant dense<0.000000e+00> : vector<2x8xf32>
    %197 = vector.multi_reduction <add>, %196, %cst_91 [2] : vector<2x8x8xf32> to vector<2x8xf32>
    %198 = vector.shape_cast %197 : vector<2x8xf32> to vector<2x8x1xf32>
    %199 = vector.broadcast %198 : vector<2x8x1xf32> to vector<2x8x8xf32>
    %200 = arith.divf %196, %199 : vector<2x8x8xf32>
    "tpu.trace_start"() <{level = 10 : i32, message = "bqk,bkd->bqd"}> : () -> ()
    %cst_92 = arith.constant dense<0.000000e+00> : vector<2x8x16xf32>
    %201 = tpu.matmul %200, %186, %cst_92 {dimension_numbers = #tpu.dot_dimension_numbers<[2], [1], [1], [2], [0, 0, 0, 1, 1, 2], [0], [0]>} : vector<2x8x8xf32>, vector<2x8x16xf32>, vector<2x8x16xf32> -> vector<2x8x16xf32>
    "tpu.trace_stop"() : () -> ()
    %202 = vector.shape_cast %201 : vector<2x8x16xf32> to vector<16x16xf32>
    %203 = vector.extract_strided_slice %179 {offsets = [0, 0], sizes = [16, 32], strides = [1, 1]} : vector<32x32xf32> to vector<16x32xf32>
    %cst_93 = arith.constant dense<0.000000e+00> : vector<16x32xf32>
    %204 = tpu.matmul %202, %203, %cst_93 {dimension_numbers = #tpu.dot_dimension_numbers<[1], [0], [0], [1], [0, 0, 1, 1], [], []>} : vector<16x16xf32>, vector<16x32xf32>, vector<16x32xf32> -> vector<16x32xf32>
    %205 = arith.addf %180, %204 : vector<16x32xf32>
    %206 = vector.extract_strided_slice %177 {offsets = [0, 16], sizes = [16, 16], strides = [1, 1]} : vector<16x96xf32> to vector<16x16xf32>
    %207 = vector.shape_cast %206 : vector<16x16xf32> to vector<2x8x16xf32>
    %208 = vector.extract_strided_slice %177 {offsets = [0, 48], sizes = [16, 16], strides = [1, 1]} : vector<16x96xf32> to vector<16x16xf32>
    %209 = vector.shape_cast %208 : vector<16x16xf32> to vector<2x8x16xf32>
    %210 = vector.extract_strided_slice %177 {offsets = [0, 80], sizes = [16, 16], strides = [1, 1]} : vector<16x96xf32> to vector<16x16xf32>
    %211 = vector.shape_cast %210 : vector<16x16xf32> to vector<2x8x16xf32>
    "tpu.trace_start"() <{level = 10 : i32, message = "bqd,bkd->bqk"}> : () -> ()
    %cst_94 = arith.constant dense<0.000000e+00> : vector<2x8x8xf32>
    %212 = tpu.matmul %207, %209, %cst_94 {dimension_numbers = #tpu.dot_dimension_numbers<[2], [2], [1], [1], [0, 0, 0, 1, 1, 1], [0], [0]>} : vector<2x8x16xf32>, vector<2x8x16xf32>, vector<2x8x8xf32> -> vector<2x8x8xf32>
    "tpu.trace_stop"() : () -> ()
    %cst_95 = arith.constant 2.500000e-01 : f32
    %213 = vector.broadcast %cst_95 : f32 to vector<2x8x8xf32>
    %214 = arith.mulf %212, %213 : vector<2x8x8xf32>
    %215 = vector.broadcast %0 : vector<2x1x8xf32> to vector<2x8x8xf32>
    %216 = arith.addf %214, %215 : vector<2x8x8xf32>
    %cst_96 = arith.constant dense<0xFF800000> : vector<2x8xf32>
    %217 = vector.multi_reduction <maximumf>, %216, %cst_96 [2] : vector<2x8x8xf32> to vector<2x8xf32>
    %218 = vector.shape_cast %217 : vector<2x8xf32> to vector<2x8x1xf32>
    %219 = vector.broadcast %218 : vector<2x8x1xf32> to vector<2x8x8xf32>
    %220 = arith.subf %216, %219 : vector<2x8x8xf32>
    %221 = math.exp %220 : vector<2x8x8xf32>
    %cst_97 = arith.constant dense<0.000000e+00> : vector<2x8xf32>
    %222 = vector.multi_reduction <add>, %221, %cst_97 [2] : vector<2x8x8xf32> to vector<2x8xf32>
    %223 = vector.shape_cast %222 : vector<2x8xf32> to vector<2x8x1xf32>
    %224 = vector.broadcast %223 : vector<2x8x1xf32> to vector<2x8x8xf32>
    %225 = arith.divf %221, %224 : vector<2x8x8xf32>
    "tpu.trace_start"() <{level = 10 : i32, message = "bqk,bkd->bqd"}> : () -> ()
    %cst_98 = arith.constant dense<0.000000e+00> : vector<2x8x16xf32>
    %226 = tpu.matmul %225, %211, %cst_98 {dimension_numbers = #tpu.dot_dimension_numbers<[2], [1], [1], [2], [0, 0, 0, 1, 1, 2], [0], [0]>} : vector<2x8x8xf32>, vector<2x8x16xf32>, vector<2x8x16xf32> -> vector<2x8x16xf32>
    "tpu.trace_stop"() : () -> ()
    %227 = vector.shape_cast %226 : vector<2x8x16xf32> to vector<16x16xf32>
    %228 = vector.extract_strided_slice %179 {offsets = [16, 0], sizes = [16, 32], strides = [1, 1]} : vector<32x32xf32> to vector<16x32xf32>
    %cst_99 = arith.constant dense<0.000000e+00> : vector<16x32xf32>
    %229 = tpu.matmul %227, %228, %cst_99 {dimension_numbers = #tpu.dot_dimension_numbers<[1], [0], [0], [1], [0, 0, 1, 1], [], []>} : vector<16x16xf32>, vector<16x32xf32>, vector<16x32xf32> -> vector<16x32xf32>
    %230 = arith.addf %205, %229 : vector<16x32xf32>
    %c1_100 = arith.constant 1 : index
    %c0_101 = arith.constant 0 : index
    %c0_102 = arith.constant 0 : index
    %231 = vector.load %arg7[%c1_100, %c0_101, %c0_102] : memref<2x1x32xf32, #tpu.memory_space<vmem>>, vector<1x1x32xf32>
    %232 = vector.shape_cast %231 : vector<1x1x32xf32> to vector<1x32xf32>
    %233 = vector.broadcast %232 : vector<1x32xf32> to vector<16x32xf32>
    %234 = arith.addf %230, %233 : vector<16x32xf32>
    %235 = arith.addf %170, %234 : vector<16x32xf32>
    %c1_103 = arith.constant 1 : index
    %c0_104 = arith.constant 0 : index
    %c0_105 = arith.constant 0 : index
    %236 = vector.load %arg8[%c1_103, %c0_104, %c0_105] : memref<2x1x32xf32, #tpu.memory_space<vmem>>, vector<1x1x32xf32>
    %237 = vector.shape_cast %236 : vector<1x1x32xf32> to vector<1x32xf32>
    %c1_106 = arith.constant 1 : index
    %c0_107 = arith.constant 0 : index
    %c0_108 = arith.constant 0 : index
    %238 = vector.load %arg9[%c1_106, %c0_107, %c0_108] : memref<2x1x32xf32, #tpu.memory_space<vmem>>, vector<1x1x32xf32>
    %239 = vector.shape_cast %238 : vector<1x1x32xf32> to vector<1x32xf32>
    %cst_109 = arith.constant dense<0.000000e+00> : vector<16xf32>
    %240 = vector.multi_reduction <add>, %235, %cst_109 [1] : vector<16x32xf32> to vector<16xf32>
    %241 = vector.shape_cast %240 : vector<16xf32> to vector<16x1xf32>
    %cst_110 = arith.constant 3.200000e+01 : f32
    %242 = vector.broadcast %cst_110 : f32 to vector<16x1xf32>
    %243 = arith.divf %241, %242 : vector<16x1xf32>
    %244 = vector.broadcast %243 : vector<16x1xf32> to vector<16x32xf32>
    %245 = arith.subf %235, %244 : vector<16x32xf32>
    %246 = arith.mulf %245, %245 : vector<16x32xf32>
    %cst_111 = arith.constant dense<0.000000e+00> : vector<16xf32>
    %247 = vector.multi_reduction <add>, %246, %cst_111 [1] : vector<16x32xf32> to vector<16xf32>
    %248 = vector.shape_cast %247 : vector<16xf32> to vector<16x1xf32>
    %cst_112 = arith.constant 3.200000e+01 : f32
    %249 = vector.broadcast %cst_112 : f32 to vector<16x1xf32>
    %250 = arith.divf %248, %249 : vector<16x1xf32>
    %251 = vector.broadcast %243 : vector<16x1xf32> to vector<16x32xf32>
    %252 = arith.subf %235, %251 : vector<16x32xf32>
    %cst_113 = arith.constant 9.99999996E-13 : f32
    %253 = vector.broadcast %cst_113 : f32 to vector<16x1xf32>
    %254 = arith.addf %250, %253 : vector<16x1xf32>
    %255 = math.rsqrt %254 : vector<16x1xf32>
    %256 = vector.broadcast %255 : vector<16x1xf32> to vector<16x32xf32>
    %257 = arith.mulf %252, %256 : vector<16x32xf32>
    %258 = vector.broadcast %237 : vector<1x32xf32> to vector<16x32xf32>
    %259 = arith.mulf %257, %258 : vector<16x32xf32>
    %260 = vector.broadcast %239 : vector<1x32xf32> to vector<16x32xf32>
    %261 = arith.addf %259, %260 : vector<16x32xf32>
    %c1_114 = arith.constant 1 : index
    %c0_115 = arith.constant 0 : index
    %c0_116 = arith.constant 0 : index
    %262 = vector.load %arg10[%c1_114, %c0_115, %c0_116] : memref<2x32x64xf32, #tpu.memory_space<vmem>>, vector<1x32x64xf32>
    %263 = vector.shape_cast %262 : vector<1x32x64xf32> to vector<32x64xf32>
    %cst_117 = arith.constant dense<0.000000e+00> : vector<16x64xf32>
    %264 = tpu.matmul %261, %263, %cst_117 {dimension_numbers = #tpu.dot_dimension_numbers<[1], [0], [0], [1], [0, 0, 1, 1], [], []>} : vector<16x32xf32>, vector<32x64xf32>, vector<16x64xf32> -> vector<16x64xf32>
    %c1_118 = arith.constant 1 : index
    %c0_119 = arith.constant 0 : index
    %c0_120 = arith.constant 0 : index
    %265 = vector.load %arg11[%c1_118, %c0_119, %c0_120] : memref<2x1x64xf32, #tpu.memory_space<vmem>>, vector<1x1x64xf32>
    %266 = vector.shape_cast %265 : vector<1x1x64xf32> to vector<1x64xf32>
    %267 = vector.broadcast %266 : vector<1x64xf32> to vector<16x64xf32>
    %268 = arith.addf %264, %267 : vector<16x64xf32>
    %cst_121 = arith.constant 5.000000e-01 : f32
    %269 = vector.broadcast %cst_121 : f32 to vector<16x64xf32>
    %270 = arith.mulf %269, %268 : vector<16x64xf32>
    %cst_122 = arith.constant 4.471500e-02 : f32
    %271 = vector.broadcast %cst_122 : f32 to vector<16x64xf32>
    %272 = arith.mulf %271, %268 : vector<16x64xf32>
    %273 = arith.mulf %272, %268 : vector<16x64xf32>
    %274 = arith.mulf %273, %268 : vector<16x64xf32>
    %275 = arith.addf %268, %274 : vector<16x64xf32>
    %cst_123 = arith.constant 0.797884583 : f32
    %276 = vector.broadcast %cst_123 : f32 to vector<16x64xf32>
    %277 = arith.mulf %276, %275 : vector<16x64xf32>
    %278 = math.tanh %277 : vector<16x64xf32>
    %cst_124 = arith.constant 1.000000e+00 : f32
    %279 = vector.broadcast %cst_124 : f32 to vector<16x64xf32>
    %280 = arith.addf %279, %278 : vector<16x64xf32>
    %281 = arith.mulf %270, %280 : vector<16x64xf32>
    %c1_125 = arith.constant 1 : index
    %c0_126 = arith.constant 0 : index
    %c0_127 = arith.constant 0 : index
    %282 = vector.load %arg12[%c1_125, %c0_126, %c0_127] : memref<2x64x32xf32, #tpu.memory_space<vmem>>, vector<1x64x32xf32>
    %283 = vector.shape_cast %282 : vector<1x64x32xf32> to vector<64x32xf32>
    %cst_128 = arith.constant dense<0.000000e+00> : vector<16x32xf32>
    %284 = tpu.matmul %281, %283, %cst_128 {dimension_numbers = #tpu.dot_dimension_numbers<[1], [0], [0], [1], [0, 0, 1, 1], [], []>} : vector<16x64xf32>, vector<64x32xf32>, vector<16x32xf32> -> vector<16x32xf32>
    %c1_129 = arith.constant 1 : index
    %c0_130 = arith.constant 0 : index
    %c0_131 = arith.constant 0 : index
    %285 = vector.load %arg13[%c1_129, %c0_130, %c0_131] : memref<2x1x32xf32, #tpu.memory_space<vmem>>, vector<1x1x32xf32>
    %286 = vector.shape_cast %285 : vector<1x1x32xf32> to vector<1x32xf32>
    %287 = vector.broadcast %286 : vector<1x32xf32> to vector<16x32xf32>
    %288 = arith.addf %284, %287 : vector<16x32xf32>
    %289 = arith.addf %261, %288 : vector<16x32xf32>
    %c1_132 = arith.constant 1 : index
    %c0_133 = arith.constant 0 : index
    %c0_134 = arith.constant 0 : index
    %290 = vector.load %arg14[%c1_132, %c0_133, %c0_134] : memref<2x1x32xf32, #tpu.memory_space<vmem>>, vector<1x1x32xf32>
    %291 = vector.shape_cast %290 : vector<1x1x32xf32> to vector<1x32xf32>
    %c1_135 = arith.constant 1 : index
    %c0_136 = arith.constant 0 : index
    %c0_137 = arith.constant 0 : index
    %292 = vector.load %arg15[%c1_135, %c0_136, %c0_137] : memref<2x1x32xf32, #tpu.memory_space<vmem>>, vector<1x1x32xf32>
    %293 = vector.shape_cast %292 : vector<1x1x32xf32> to vector<1x32xf32>
    %cst_138 = arith.constant dense<0.000000e+00> : vector<16xf32>
    %294 = vector.multi_reduction <add>, %289, %cst_138 [1] : vector<16x32xf32> to vector<16xf32>
    %295 = vector.shape_cast %294 : vector<16xf32> to vector<16x1xf32>
    %cst_139 = arith.constant 3.200000e+01 : f32
    %296 = vector.broadcast %cst_139 : f32 to vector<16x1xf32>
    %297 = arith.divf %295, %296 : vector<16x1xf32>
    %298 = vector.broadcast %297 : vector<16x1xf32> to vector<16x32xf32>
    %299 = arith.subf %289, %298 : vector<16x32xf32>
    %300 = arith.mulf %299, %299 : vector<16x32xf32>
    %cst_140 = arith.constant dense<0.000000e+00> : vector<16xf32>
    %301 = vector.multi_reduction <add>, %300, %cst_140 [1] : vector<16x32xf32> to vector<16xf32>
    %302 = vector.shape_cast %301 : vector<16xf32> to vector<16x1xf32>
    %cst_141 = arith.constant 3.200000e+01 : f32
    %303 = vector.broadcast %cst_141 : f32 to vector<16x1xf32>
    %304 = arith.divf %302, %303 : vector<16x1xf32>
    %305 = vector.broadcast %297 : vector<16x1xf32> to vector<16x32xf32>
    %306 = arith.subf %289, %305 : vector<16x32xf32>
    %cst_142 = arith.constant 9.99999996E-13 : f32
    %307 = vector.broadcast %cst_142 : f32 to vector<16x1xf32>
    %308 = arith.addf %304, %307 : vector<16x1xf32>
    %309 = math.rsqrt %308 : vector<16x1xf32>
    %310 = vector.broadcast %309 : vector<16x1xf32> to vector<16x32xf32>
    %311 = arith.mulf %306, %310 : vector<16x32xf32>
    %312 = vector.broadcast %291 : vector<1x32xf32> to vector<16x32xf32>
    %313 = arith.mulf %311, %312 : vector<16x32xf32>
    %314 = vector.broadcast %293 : vector<1x32xf32> to vector<16x32xf32>
    %315 = arith.addf %313, %314 : vector<16x32xf32>
    %316 = vector.shape_cast %315 : vector<16x32xf32> to vector<2x8x32xf32>
    %317 = vector.extract_strided_slice %316 {offsets = [0, 0, 0], sizes = [2, 1, 32], strides = [1, 1, 1]} : vector<2x8x32xf32> to vector<2x1x32xf32>
    %318 = vector.shape_cast %317 : vector<2x1x32xf32> to vector<2x32xf32>
    %c0_143 = arith.constant 0 : index
    %c0_144 = arith.constant 0 : index
    %319 = vector.load %arg16[%c0_143, %c0_144] : memref<32x32xf32, #tpu.memory_space<vmem>>, vector<32x32xf32>
    %cst_145 = arith.constant dense<0.000000e+00> : vector<2x32xf32>
    %320 = tpu.matmul %318, %319, %cst_145 {dimension_numbers = #tpu.dot_dimension_numbers<[1], [0], [0], [1], [0, 0, 1, 1], [], []>} : vector<2x32xf32>, vector<32x32xf32>, vector<2x32xf32> -> vector<2x32xf32>
    %c0_146 = arith.constant 0 : index
    %c0_147 = arith.constant 0 : index
    %321 = vector.load %arg17[%c0_146, %c0_147] : memref<1x32xf32, #tpu.memory_space<vmem>>, vector<1x32xf32>
    %322 = vector.broadcast %321 : vector<1x32xf32> to vector<2x32xf32>
    %323 = arith.addf %320, %322 : vector<2x32xf32>
    %324 = math.tanh %323 : vector<2x32xf32>
    %c0_148 = arith.constant 0 : index
    %c0_149 = arith.constant 0 : index
    %325 = vector.load %arg18[%c0_148, %c0_149] : memref<32x2xf32, #tpu.memory_space<vmem>>, vector<32x2xf32>
    %cst_150 = arith.constant dense<0.000000e+00> : vector<2x2xf32>
    %326 = tpu.matmul %324, %325, %cst_150 {dimension_numbers = #tpu.dot_dimension_numbers<[1], [0], [0], [1], [0, 0, 1, 1], [], []>} : vector<2x32xf32>, vector<32x2xf32>, vector<2x2xf32> -> vector<2x2xf32>
    %c0_151 = arith.constant 0 : index
    %c0_152 = arith.constant 0 : index
    %327 = vector.load %arg19[%c0_151, %c0_152] : memref<1x2xf32, #tpu.memory_space<vmem>>, vector<1x2xf32>
    %328 = vector.broadcast %327 : vector<1x2xf32> to vector<2x2xf32>
    %329 = arith.addf %326, %328 : vector<2x2xf32>
    %c0_153 = arith.constant 0 : index
    %c0_154 = arith.constant 0 : index
    %330 = vector.load %arg20[%c0_153, %c0_154] : memref<2x2xf32, #tpu.memory_space<vmem>>, vector<2x2xf32>
    tpu.vector_store %arg20[%c0_153, %c0_154], %329 {strides = array<i32>} : memref<2x2xf32, #tpu.memory_space<vmem>>, vector<2x2xf32>,
    return
  }
}

</mosaic_0001>

<bundles_post_ra>
// kernel: mul.7
= control target key start
LH: loop header
LB: loop body
LE: loop exit
PB: predicated region body
PF: predicated region fallthrough
CT: control target
= control target key end

     0   :  { %vm7_vm0 = vcmask 64512   ;;  %s39_s0 = inlined_call_operand.vmem [shape: f32[16], index: 0, kind: input, shape index: {}]   ;;  %s40_s1 = inlined_call_operand.vmem [shape: f32[2,8], index: 1, kind: output, shape index: {}]  }
   0x1   :  { %v4_v0 = vld [vmem:[%s39_s0] sm:$0x1]  ;;  %s22_s0 = smov 120  }
   0x2   :  { %5 = vst [vmem:[#allocation1] sm:$0x1] %v4_v0 }
   0x9   :  { %v9_v1 = vld [vmem:[#allocation1] sm:$0x1]  }
   0xa   :  { %v6_v2 = vld [vmem:[#allocation1] sm:$0x1]   ;;  %10 = vrot.lane.b32.xlu0 %v9_v1, %s22_s0 }
   0xb   :  { %8 = vst.msk [vmem:[#allocation0] sm:$0x1] %vm7_vm0, %v6_v2  }
  0x7c   :  { %v11_v3 = vpop.permute.xlu0 %10  }
  0x7d   :  { %14 = vst.msk [vmem:[#allocation0 + $0x1] sm:$0x1] %vm7_vm0, %v11_v3  }
  0x84   :  { %v17_v4 = vld [vmem:[#allocation0] sm:$0x3] }
  0x85   :  { %20 = vst [vmem:[%s40_s1] sm:$0x3] %v17_v4 }

// kernel: squeeze.3
= control target key start
LH: loop header
LB: loop body
LE: loop exit
PB: predicated region body
PF: predicated region fallthrough
CT: control target
= control target key end

     0   :  { %s80_s0 = inlined_call_operand.vmem [shape: f32[16], index: 0, kind: input, shape index: {}]   ;;  %s81_s1 = inlined_call_operand.hbm [shape: f32[2,8], index: 1, kind: output, shape index: {}]  }
   0x1   :  { %v5_v0 = vld [vmem:[%s80_s0] sm:$0x1] }
   0x2   :  { %2 = vsyncpa [#allocation1], 0  ;;  %6 = vst [vmem:[#allocation3] sm:$0x1] %v5_v0  ;;  %vm8_vm0 = vcmask 64512   ;;  %s62_s0 = smov 120  }
   0x3   :  { %s63_s8 = smov [#allocation0]   ;;  %s27_s1 = sshll.u32 %s81_s1, 4  ;;  %s28_s1 = int_to_ptr.hbm [resolvable:$true] %s27_s1 }
   0x4   :  { %s25_s9 = sshll.u32 %s63_s8, 4  ;;  %s26_s9 = int_to_ptr.vmem [resolvable:$true] %s25_s9 }
   0x9   :  { %v10_v1 = vld [vmem:[#allocation3] sm:$0x1]  }
   0xa   :  { %v7_v2 = vld [vmem:[#allocation3] sm:$0x1]   ;;  %11 = vrot.lane.b32.xlu0 %v10_v1, %s62_s0 }
   0xb   :  { %9 = vst.msk [vmem:[#allocation2] sm:$0x1] %vm8_vm0, %v7_v2  }
  0x7c   :  { %v12_v3 = vpop.permute.xlu0 %11  }
  0x7d   :  { %15 = vst.msk [vmem:[#allocation2 + $0x1] sm:$0x1] %vm8_vm0, %v12_v3  }
  0x84   :  { %v18_v4 = vld [vmem:[#allocation2] sm:$0x3] }
  0x85   :  { %21 = vst [vmem:[#allocation0] sm:$0x3] %v18_v4 }
  0x86   :  { %30 = dma.vmem_to_hbm [thread:$0]  %s26_s9, 32, %s28_s1, [#allocation1]  }
  0x87   :  { %60 = dma.done.wait [#allocation1], 32  }
  0x88   :  { %61 = vsyncadd [#allocation1], 4294967264 }
  0x89   :  { %33 = vsyncpa [#allocation1], 1 }

// kernel: hardkuma_e2e_forward.3
= control target key start
LH: loop header
LB: loop body
LE: loop exit
PB: predicated region body
PF: predicated region fallthrough
CT: control target
= control target key end

     0   :  { %s2260_s0 = inlined_call_operand.vmem [shape: f32[16,32], index: 0, kind: input, shape index: {}]   ;;  %s2261_s1 = inlined_call_operand.vmem [shape: f32[2,1,8], index: 1, kind: input, shape index: {}]   ;;  %s2262_s2 = inlined_call_operand.vmem [shape: f32[1,32], index: 2, kind: input, shape index: {}]   ;;  %s2263_s3 = inlined_call_operand.vmem [shape: f32[1,32], index: 3, kind: input, shape index: {}]   ;;  %s2264_s4 = inlined_call_operand.vmem [shape: f32[2,32,96], index: 4, kind: input, shape index: {}]   ;;  %s2265_s5 = inlined_call_operand.vmem [shape: f32[2,1,96], index: 5, kind: input, shape index: {}]   ;;  %s2266_s6 = inlined_call_operand.vmem [shape: f32[2,32,32], index: 6, kind: input, shape index: {}]   ;;  %s2267_s7 = inlined_call_operand.vmem [shape: f32[2,1,32], index: 7, kind: input, shape index: {}]   ;;  %s2268_s8 = inlined_call_operand.vmem [shape: f32[2,1,32], index: 8, kind: input, shape index: {}]   ;;  %s2269_s9 = inlined_call_operand.vmem [shape: f32[2,1,32], index: 9, kind: input, shape index: {}]   ;;  %s2270_s10 = inlined_call_operand.vmem [shape: f32[2,32,64], index: 10, kind: input, shape index: {}]   ;;  %s2271_s11 = inlined_call_operand.vmem [shape: f32[2,1,64], index: 11, kind: input, shape index: {}]   ;;  %s2272_s12 = inlined_call_operand.vmem [shape: f32[2,64,32], index: 12, kind: input, shape index: {}]   ;;  %s2273_s13 = inlined_call_operand.vmem [shape: f32[2,1,32], index: 13, kind: input, shape index: {}]   ;;  %s2274_s14 = inlined_call_operand.vmem [shape: f32[2,1,32], index: 14, kind: input, shape index: {}]   ;;  %s2275_s15 = inlined_call_operand.vmem [shape: f32[2,1,32], index: 15, kind: input, shape index: {}]   ;;  %s2276_s16 = inlined_call_operand.vmem [shape: f32[32,32], index: 16, kind: input, shape index: {}]   ;;  %s2277_s17 = inlined_call_operand.vmem [shape: f32[1,32], index: 17, kind: input, shape index: {}]   ;;  %s2278_s18 = inlined_call_operand.vmem [shape: f32[32,2], index: 18, kind: input, shape index: {}]   ;;  %s2279_s19 = inlined_call_operand.vmem [shape: f32[1,2], index: 19, kind: input, shape index: {}]   ;;  %s2280_s20 = inlined_call_operand.hbm [shape: f32[2,2], index: 20, kind: output, shape index: {}]  }
   0x1   :  { %2285 = sst [smem:[#allocation5_spill]] %s2260_s0 }
   0x2   :  { %2286 = sst [smem:[#allocation6_spill]] %s2261_s1 }
   0x3   :  { %2287 = sst [smem:[#allocation7_spill]] %s2262_s2 }
   0x4   :  { %2288 = sst [smem:[#allocation8_spill]] %s2263_s3 }
   0x5   :  { %2289 = sst [smem:[#allocation9_spill]] %s2264_s4 }
   0x6   :  { %s2290_s23 = sld [smem:[#allocation5_spill]]  ;;  %vm72_vm0 = vcmask 261120  }
   0xc   :  { %v68_v0 = vld [vmem:[%s2290_s23] sm:$0xff]  ;;  %v69_v1 = vld [vmem:[%s2290_s23 + $0x8] sm:$0xff] }
   0xd   :  { %v73_v2 = vsel %vm72_vm0, %v68_v0, 0.0  ;;  %v76_v3 = vsel %vm72_vm0, %v69_v1, 0.0 }
   0xe   :  { %74 = vadd.xlane.f32.xlu0 %v73_v2 }
   0xf   :  { %25 = vsyncpa [#allocation3], 0  ;;  %v1713_v4 = vmov 32.0   ;;  %s2291_s26 = sld [smem:[#allocation9_spill]]  ;;  %v1603_v53 = vld [vmem:[%s2265_s5] ss:$0 sm:$0xff] }
  0x10   :  { %1623 = vrcp.f32 %v1713_v4  ;;  %s2292_s22 = sld [smem:[#allocation7_spill]]  ;;  %s1714_s27 = smov 80   ;;  %vm178_vm8 = vcmask 130048   ;;  %vm240_vm9 = vcmask 64512  }
  0x11   :  { %s2293_s2 = sld [smem:[#allocation8_spill]]  ;;  %s1715_s28 = smov 112  }
  0x12   :  { %s1716_s4 = smov 96   ;;  %s2294_s0 = sld [smem:[#allocation6_spill]] }
  0x13   :  { %s2284_s23 = smov 48  }
  0x15   :  { %v137_v21 = vld [vmem:[%s2291_s26 + $0x18] sm:$0xff]  ;;  %v136_v22 = vld [vmem:[%s2291_s26 + $0x10] sm:$0xff]  ;;  %v135_v23 = vld [vmem:[%s2291_s26 + $0x8] sm:$0xff] }
  0x16   :  { %77 = vadd.xlane.f32.xlu0 %v76_v3  ;;  %v1624_v5 = vpop.eup %1623  ;;  %160 = vmatpush.msra.mxu0 %v137_v21  ;;  %v134_v24 = vld [vmem:[%s2291_s26] sm:$0xff] }
  0x17   :  { %v80_v6 = vmul.f32 32.0, %v1624_v5  ;;  %vm84_vm1 = vweird.f32 %v1624_v5  ;;  %v1601_v39 = vld [vmem:[%s2292_s22] ss:$0 sm:$0xff]  ;;  %s1717_s22 = smov 64  }
  0x18   :  { %161 = vmatpush.msra.mxu0 %v136_v22  ;;  %v1602_v43 = vld [vmem:[%s2293_s2] ss:$0 sm:$0xff] }
  0x19   :  { %v81_v7 = vsub.f32 1.0, %v80_v6  ;;  %v1898_v3 = vld [vmem:[%s2294_s0] ss:$0 sm:$0xff] }
  0x1a   :  { %162 = vmatpush.msra.mxu0 %v135_v23 }
  0x1b   :  { %v82_v8 = vmul.f32 %v1624_v5, %v81_v7 }
  0x1c   :  { %163 = vmatpush.msra.mxu0 %v134_v24 }
  0x1d   :  { %v83_v9 = vadd.f32 %v1624_v5, %v82_v8 }
  0x1f   :  { %v1833_v10 = vsel %vm84_vm1, %v1624_v5, %v83_v9 }
  0x81   :  { %v75_v11 = vpop.xlane.xlu0 %74 }
  0x82   :  { %v86_v12 = vmul.f32 %v1833_v10, %v75_v11 }
  0x84   :  { %v88_v13 = vsub.f32 %v68_v0, %v86_v12  ;;  %v1893_v0 = vld [vmem:[%s2294_s0 + $0x1] ss:$0 sm:$0xff] }
  0x86   :  { %v90_v14 = vmul.f32 %v88_v13, %v88_v13 }
  0x88   :  { %v92_v15 = vsel %vm72_vm0, %v90_v14, 0.0 }
  0x89   :  { %93 = vadd.xlane.f32.xlu1 %v92_v15  ;;  %v78_v16 = vpop.xlane.xlu0 %77 }
  0x8a   :  { %v87_v17 = vmul.f32 %v1833_v10, %v78_v16 }
  0x8c   :  { %v89_v18 = vsub.f32 %v69_v1, %v87_v17 }
  0x8e   :  { %v91_v19 = vmul.f32 %v89_v18, %v89_v18 }
  0x90   :  { %v95_v20 = vsel %vm72_vm0, %v91_v19, 0.0 }
  0x91   :  { %96 = vadd.xlane.f32.xlu1 %v95_v20 }
  0xfc   :  { %v94_v25 = vpop.xlane.xlu1 %93 }
  0xfd   :  { %v98_v26 = vmul.f32 %v94_v25, %v1833_v10 }
  0xff   :  { %v100_v27 = vadd.f32 1e-12, %v98_v26 }
 0x101   :  { %1625 = vrsqrt.f32 %v100_v27  ;;  %vm108_vm3 = vweird.f32 %v100_v27 }
 0x104   :  { %v97_v28 = vpop.xlane.xlu1 %96 }
 0x105   :  { %v99_v29 = vmul.f32 %v97_v28, %v1833_v10 }
 0x107   :  { %v1626_v30 = vpop.eup %1625  ;;  %v101_v31 = vadd.f32 1e-12, %v99_v29 }
 0x108   :  { %v103_v32 = vmul.f32 %v1626_v30, %v100_v27  ;;  %vm109_vm2 = vweird.f32 %v1626_v30 }
 0x109   :  { %1627 = vrsqrt.f32 %v101_v31  ;;  %vm110_vm4 = vmor %vm108_vm3, %vm109_vm2  ;;  %vm118_vm6 = vweird.f32 %v101_v31 }
 0x10a   :  { %v104_v33 = vmul.f32 %v1626_v30, %v103_v32 }
 0x10c   :  { %v105_v34 = vmul.f32 0.5, %v104_v33 }
 0x10e   :  { %v106_v35 = vsub.f32 1.5, %v105_v34 }
 0x10f   :  { %v1628_v36 = vpop.eup %1627 }
 0x110   :  { %v107_v37 = vmul.f32 %v1626_v30, %v106_v35  ;;  %v113_v38 = vmul.f32 %v1628_v36, %v101_v31  ;;  %vm119_vm5 = vweird.f32 %v1628_v36 }
 0x111   :  { %vm120_vm7 = vmor %vm118_vm6, %vm119_vm5 }
 0x112   :  { %v111_v40 = vsel %vm110_vm4, %v1626_v30, %v107_v37  ;;  %v114_v41 = vmul.f32 %v1628_v36, %v113_v38 }
 0x113   :  { %v122_v42 = vmul.f32 %v111_v40, %v88_v13 }
 0x114   :  { %v115_v44 = vmul.f32 0.5, %v114_v41 }
 0x115   :  { %v127_v45 = vmul.f32 %v1601_v39, %v122_v42 }
 0x116   :  { %v116_v46 = vsub.f32 1.5, %v115_v44 }
 0x117   :  { %v1859_v47 = vadd.f32 %v1602_v43, %v127_v45 }
 0x118   :  { %v117_v48 = vmul.f32 %v1628_v36, %v116_v46 }
 0x119   :  { %1510 = vmatmul.msk.f32.vlgmr.msra.gmra.mxu0 %vm72_vm0, %v1859_v47 }
 0x11a   :  { %v121_v49 = vsel %vm120_vm7, %v1628_v36, %v117_v48 }
 0x11b   :  { %v123_v50 = vmul.f32 %v121_v49, %v89_v18 }
 0x11d   :  { %v128_v51 = vmul.f32 %v1601_v39, %v123_v50 }
 0x11f   :  { %v1863_v52 = vadd.f32 %v1602_v43, %v128_v51 }
 0x121   :  { %1511 = vmatmul.msk.f32.gmra.mxu0 %vm72_vm0, %v1863_v52 }
 0x196   :  { %v165_v54 = vpop.f32.mrf.mxu0 }
 0x197   :  { %v1870_v55 = vadd.f32 %v1603_v53, %v165_v54 }
 0x199   :  { %343 = vrot.lane.b32.xlu0 %v1870_v55, %s1714_s27  ;;  %341 = vrot.lane.b32.xlu1 %v1870_v55, %s1715_s28 }
 0x19e   :  { %v168_v56 = vpop.f32.mrf.mxu0 }
 0x19f   :  { %v169_v57 = vadd.f32 %v1603_v53, %v168_v56 }
 0x1a1   :  { %204 = vrot.lane.b32.xlu2 %v169_v57, %s1716_s4 }
 0x1a9   :  { %176 = vrot.lane.b32.xlu2 %v1870_v55, %s1716_s4 }
 0x1b1   :  { %371 = vrot.lane.b32.xlu2 %v169_v57, %s1714_s27 }
 0x1b9   :  { %369 = vrot.lane.b32.xlu2 %v169_v57, %s1715_s28 }
 0x1fb   :  { %v205_v58 = vpop.permute.xlu2 %204 }
 0x1fc   :  { %1514 = vmatpush.xpose.msk.msra.mxu2 %vm178_vm8, %v205_v58 }
 0x1ff   :  { %1515 = vmatmul.msk.f32.vlgmr.msra.gmra.mxu2 %vm178_vm8, %v169_v57 }
 0x203   :  { %v177_v59 = vpop.permute.xlu2 %176 }
 0x204   :  { %1512 = vmatpush.xpose.msk.msra.mxu1 %vm178_vm8, %v177_v59 }
 0x207   :  { %1513 = vmatmul.msk.f32.vlgmr.msra.gmra.mxu1 %vm178_vm8, %v1870_v55 }
 0x20b   :  { %v372_v60 = vpop.permute.xlu2 %371  ;;  %v344_v61 = vpop.permute.xlu0 %343 }
 0x20c   :  { %1520 = vmatpush.xpose.msk.msrb.mxu2 %vm178_vm8, %v372_v60  ;;  %1518 = vmatpush.xpose.msk.msrb.mxu1 %vm178_vm8, %v344_v61  ;;  %v342_v62 = vpop.permute.xlu1 %341 }
 0x20f   :  { %1519 = vmatmul.msk.f32.vlgmr.msrb.gmra.mxu1 %vm178_vm8, %v342_v62 }
 0x213   :  { %v370_v63 = vpop.permute.xlu2 %369 }
 0x214   :  { %1521 = vmatmul.msk.f32.vlgmr.msrb.gmra.mxu2 %vm178_vm8, %v370_v63 }
 0x282   :  { %v227_v1 = vpop.f32.mrf.mxu2 }
 0x283   :  { %v231_v2 = vmul.f32 0.25, %v227_v1 }
 0x284   :  { %v200_v4 = vpop.f32.mrf.mxu1 }
 0x285   :  { %v230_v5 = vmul.f32 0.25, %v200_v4  ;;  %v239_v6 = vadd.f32 %v1893_v0, %v231_v2 }
 0x287   :  { %v244_v7 = vsel %vm240_vm9, %v239_v6, -inf  ;;  %v238_v8 = vadd.f32 %v1898_v3, %v230_v5 }
 0x288   :  { %245 = vmax.xlane.f32.xlu2 %v244_v7 }
 0x289   :  { %v241_v9 = vsel %vm240_vm9, %v238_v8, -inf }
 0x28a   :  { %242 = vmax.xlane.f32.xlu1 %v241_v9 }
 0x28c   :  { %v366_v11 = vpop.f32.mrf.mxu1 }
 0x28d   :  { %v397_v12 = vmul.f32 0.25, %v366_v11 }
 0x28f   :  { %v399_v13 = vadd.f32 %v1898_v3, %v397_v12 }
 0x291   :  { %v401_v14 = vsel %vm240_vm9, %v399_v13, -inf }
 0x292   :  { %402 = vmax.xlane.f32.xlu0 %v401_v14 }
 0x297   :  { %v394_v15 = vpop.f32.mrf.mxu2 }
 0x298   :  { %v398_v16 = vmul.f32 0.25, %v394_v15 }
 0x29a   :  { %v400_v17 = vadd.f32 %v1893_v0, %v398_v16 }
 0x29c   :  { %v404_v18 = vsel %vm240_vm9, %v400_v17, -inf }
 0x29d   :  { %405 = vmax.xlane.f32.xlu2 %v404_v18 }
 0x2a3   :  { %315 = vrot.lane.b32.xlu1 %v169_v57, %s1717_s22 }
 0x2ab   :  { %475 = vrot.lane.b32.xlu1 %v169_v57, %s2284_s23 }
 0x2fb   :  { %v246_v19 = vpop.xlane.xlu2 %245 }
 0x2fc   :  { %v248_v22 = vsub.f32 %v239_v6, %v246_v19 }
 0x2fd   :  { %v243_v20 = vpop.xlane.xlu1 %242 }
 0x2fe   :  { %v247_v21 = vsub.f32 %v238_v8, %v243_v20  ;;  %v251_v24 = vmul.f32 1.442695, %v248_v22 }
 0x300   :  { %v249_v23 = vmul.f32 1.442695, %v247_v21  ;;  %v172_v21 = vld [vmem:[%s2266_s6 + $0x8] sm:$0xff] }
 0x302   :  { %1629 = vpow2.f32 %v249_v23 }
 0x303   :  { %1631 = vpow2.f32 %v251_v24 }
 0x305   :  { %v403_v25 = vpop.xlane.xlu0 %402 }
 0x306   :  { %v407_v26 = vsub.f32 %v399_v13, %v403_v25 }
 0x308   :  { %v1910_v27 = vpop.eup %1629  ;;  %v409_v28 = vmul.f32 1.442695, %v407_v26 }
 0x309   :  { %v253_v29 = vsel %vm240_vm9, %v1910_v27, 0.0  ;;  %v1914_v30 = vpop.eup %1631 }
 0x30a   :  { %254 = vadd.xlane.f32.xlu0 %v253_v29  ;;  %1633 = vpow2.f32 %v409_v28  ;;  %v256_v34 = vsel %vm240_vm9, %v1914_v30, 0.0 }
 0x310   :  { %v406_v31 = vpop.xlane.xlu2 %405  ;;  %v1916_v32 = vpop.eup %1633 }
 0x311   :  { %v408_v33 = vsub.f32 %v400_v17, %v406_v31  ;;  %v413_v35 = vsel %vm240_vm9, %v1916_v32, 0.0 }
 0x312   :  { %257 = vadd.xlane.f32.xlu0 %v256_v34  ;;  %414 = vadd.xlane.f32.xlu2 %v413_v35 }
 0x313   :  { %v411_v36 = vmul.f32 1.442695, %v408_v33 }
 0x315   :  { %1635 = vpow2.f32 %v411_v36  ;;  %v316_v37 = vpop.permute.xlu1 %315  ;;  %v171_v36 = vld [vmem:[%s2266_s6] sm:$0xff] }
 0x316   :  { %336 = vmatpush.msra.mxu3 %v316_v37  ;;  %v174_v37 = vld [vmem:[%s2266_s6 + $0x18] sm:$0xff] }
 0x317   :  { %521 = vmatpush.msra.mxu2 %v174_v37  ;;  %v685_v37 = vld [vmem:[%s2272_s12 + $0x38] sm:$0xff] }
 0x31b   :  { %v1922_v38 = vpop.eup %1635 }
 0x31c   :  { %v416_v39 = vsel %vm240_vm9, %v1922_v38, 0.0 }
 0x31d   :  { %417 = vadd.xlane.f32.xlu2 %v416_v39  ;;  %v476_v40 = vpop.permute.xlu1 %475 }
 0x31e   :  { %496 = vmatpush.msra.mxu1 %v476_v40 }
 0x320   :  { %705 = vmatpush.msrb.mxu1 %v685_v37 }
 0x326   :  { %449 = vrot.lane.b32.xlu0 %v1870_v55, %s2284_s23 }
 0x335   :  { %289 = vrot.lane.b32.xlu2 %v1870_v55, %s1717_s22 }
 0x37d   :  { %v255_v41 = vpop.xlane.xlu0 %254 }
 0x37e   :  { %1637 = vrcp.f32 %v255_v41  ;;  %vm264_vm11 = vweird.f32 %v255_v41  ;;  %v270_v56 = vand.u32 2147483648, %v255_v41  ;;  %v268_v55 = vand.u32 2147483647, %v255_v41 }
 0x380   :  { %v271_v4 = vor.u32 1.1754944e-38, %v270_v56  ;;  %vm269_vm15 = vcmp.eq.f32.partialorder %v268_v55, 8.507059e+37 }
 0x384   :  { %v1638_v42 = vpop.eup %1637 }
 0x385   :  { %v260_v43 = vmul.f32 %v1638_v42, %v255_v41  ;;  %v258_v44 = vpop.xlane.xlu0 %257  ;;  %v415_v45 = vpop.xlane.xlu2 %414  ;;  %vm265_vm10 = vweird.f32 %v1638_v42 }
 0x386   :  { %1639 = vrcp.f32 %v258_v44  ;;  %v285_v59 = vand.u32 2147483648, %v258_v44  ;;  %v283_v61 = vand.u32 2147483647, %v258_v44  ;;  %vm1930_vm12 = vmor %vm264_vm11, %vm265_vm10  ;;  %vm279_vm14 = vweird.f32 %v258_v44 }
 0x387   :  { %v261_v46 = vsub.f32 1.0, %v260_v43  ;;  %1641 = vrcp.f32 %v415_v45  ;;  %v430_v11 = vand.u32 2147483648, %v415_v45  ;;  %vm424_vm4 = vweird.f32 %v415_v45  ;;  %v1606_v43 = vld [vmem:[%s2267_s7] ss:$0 sm:$0xff] }
 0x388   :  { %v286_v6 = vor.u32 1.1754944e-38, %v285_v59  ;;  %vm284_vm2 = vcmp.eq.f32.partialorder %v283_v61, 8.507059e+37  ;;  %v428_v14 = vand.u32 2147483647, %v415_v45 }
 0x389   :  { %v262_v48 = vmul.f32 %v1638_v42, %v261_v46  ;;  %v431_v23 = vor.u32 1.1754944e-38, %v430_v11 }
 0x38a   :  { %vm429_vm6 = vcmp.eq.f32.partialorder %v428_v14, 8.507059e+37 }
 0x38b   :  { %v263_v53 = vadd.f32 %v1638_v42, %v262_v48 }
 0x38c   :  { %v1640_v49 = vpop.eup %1639 }
 0x38d   :  { %v1642_v50 = vpop.eup %1641  ;;  %v275_v51 = vmul.f32 %v1640_v49, %v258_v44  ;;  %vm280_vm13 = vweird.f32 %v1640_v49  ;;  %v267_v2 = vsel %vm1930_vm12, %v1638_v42, %v263_v53 }
 0x38e   :  { %v420_v54 = vmul.f32 %v1642_v50, %v415_v45  ;;  %vm281_vm1 = vmor %vm279_vm14, %vm280_vm13  ;;  %vm425_vm3 = vweird.f32 %v1642_v50  ;;  %v272_v9 = vsel %vm269_vm15, %v271_v4, %v267_v2  ;;  %v625_v4 = vld [vmem:[%s2270_s10 + $0x10] sm:$0xff] }
 0x38f   :  { %v276_v57 = vsub.f32 1.0, %v275_v51  ;;  %vm1937_vm5 = vmor %vm424_vm4, %vm425_vm3  ;;  %v273_v20 = vmul.f32 %v1910_v27, %v272_v9  ;;  %vm690_vm4 = vcmask 523264  }
 0x390   :  { %v421_v58 = vsub.f32 1.0, %v420_v54  ;;  %v418_v60 = vpop.xlane.xlu2 %417 }
 0x391   :  { %v277_v63 = vmul.f32 %v1640_v49, %v276_v57  ;;  %1643 = vrcp.f32 %v418_v60  ;;  %v445_v25 = vand.u32 2147483648, %v418_v60  ;;  %v443_v27 = vand.u32 2147483647, %v418_v60 }
 0x392   :  { %v422_v1 = vmul.f32 %v1642_v50, %v421_v58  ;;  %vm439_vm10 = vweird.f32 %v418_v60 }
 0x393   :  { %v278_v5 = vadd.f32 %v1640_v49, %v277_v63  ;;  %vm444_vm12 = vcmp.eq.f32.partialorder %v443_v27, 8.507059e+37 }
 0x394   :  { %v423_v7 = vadd.f32 %v1642_v50, %v422_v1 }
 0x395   :  { %v282_v8 = vsel %vm281_vm1, %v1640_v49, %v278_v5  ;;  %v624_v5 = vld [vmem:[%s2270_s10 + $0x8] sm:$0xff] }
 0x396   :  { %v287_v12 = vsel %vm284_vm2, %v286_v6, %v282_v8  ;;  %v427_v22 = vsel %vm1937_vm5, %v1642_v50, %v423_v7  ;;  %v623_v6 = vld [vmem:[%s2270_s10] sm:$0xff] }
 0x397   :  { %v1644_v13 = vpop.eup %1643  ;;  %v288_v15 = vmul.f32 %v1914_v30, %v287_v12  ;;  %v432_v28 = vsel %vm429_vm6, %v431_v23, %v427_v22  ;;  %v446_v30 = vor.u32 1.1754944e-38, %v445_v25  ;;  %v1607_v22 = vld [vmem:[%s2268_s8] ss:$0 sm:$0xff] }
 0x398   :  { %v435_v17 = vmul.f32 %v1644_v13, %v418_v60  ;;  %v290_v18 = vpop.permute.xlu2 %289  ;;  %v450_v19 = vpop.permute.xlu0 %449  ;;  %vm440_vm7 = vweird.f32 %v1644_v13  ;;  %v433_v31 = vmul.f32 %v1916_v32, %v432_v28  ;;  %v173_v32 = vld [vmem:[%s2266_s6 + $0x10] sm:$0xff] }
 0x399   :  { %310 = vmatpush.msrb.mxu0 %v290_v18  ;;  %1517 = vmatmul.msk.f32.vlgmr.msra.gmra.mxu3 %vm240_vm9, %v288_v15  ;;  %vm441_vm11 = vmor %vm439_vm10, %vm440_vm7 }
 0x39a   :  { %v436_v24 = vsub.f32 1.0, %v435_v17  ;;  %470 = vmatpush.msrb.mxu3 %v450_v19  ;;  %1516 = vmatmul.msk.f32.vlgmr.msrb.gmra.mxu0 %vm240_vm9, %v273_v20 }
 0x39b   :  { %550 = vmatpush.msra.mxu0 %v172_v21  ;;  %522 = vmatpush.msra.mxu2 %v173_v32  ;;  %v684_v32 = vld [vmem:[%s2272_s12 + $0x30] sm:$0xff] }
 0x39c   :  { %v437_v26 = vmul.f32 %v1644_v13, %v436_v24  ;;  %706 = vmatpush.msrb.mxu1 %v684_v32 }
 0x39d   :  { %551 = vmatpush.msra.mxu0 %v171_v36 }
 0x39e   :  { %v438_v29 = vadd.f32 %v1644_v13, %v437_v26  ;;  %v1608_v26 = vld [vmem:[%s2269_s9] ss:$0 sm:$0xff] }
 0x3a0   :  { %v442_v33 = vsel %vm441_vm11, %v1644_v13, %v438_v29 }
 0x3a1   :  { %v447_v34 = vsel %vm444_vm12, %v446_v30, %v442_v33  ;;  %1522 = vmatmul.msk.f32.vlgmr.msrb.gmra.mxu3 %vm240_vm9, %v433_v31 }
 0x3a2   :  { %v448_v35 = vmul.f32 %v1922_v38, %v447_v34 }
 0x3a4   :  { %1523 = vmatmul.msk.f32.vlgmr.msra.gmra.mxu1 %vm240_vm9, %v448_v35 }
 0x417   :  { %v312_v39 = vpop.f32.mrf.mxu0 }
 0x418   :  { %1526 = vmatmul.msk.f32.vlgmr.msra.gmra.mxu0 %vm178_vm8, %v312_v39  ;;  %v683_v39 = vld [vmem:[%s2272_s12 + $0x28] sm:$0xff] }
 0x419   :  { %707 = vmatpush.msrb.mxu1 %v683_v39 }
 0x41c   :  { %v338_v38 = vpop.f32.mrf.mxu3 }
 0x420   :  { %1527 = vmatmul.msk.f32.gmra.mxu0 %vm178_vm8, %v338_v38  ;;  %v682_v38 = vld [vmem:[%s2272_s12 + $0x20] sm:$0xff] }
 0x421   :  { %v498_v41 = vpop.f32.mrf.mxu1  ;;  %708 = vmatpush.msrb.mxu1 %v682_v38 }
 0x424   :  { %v472_v40 = vpop.f32.mrf.mxu3 }
 0x425   :  { %1524 = vmatmul.msk.f32.vlgmr.msra.gmra.mxu2 %vm178_vm8, %v472_v40  ;;  %v681_v40 = vld [vmem:[%s2272_s12 + $0x18] sm:$0xff] }
 0x426   :  { %709 = vmatpush.msrb.mxu1 %v681_v40 }
 0x42d   :  { %1525 = vmatmul.msk.f32.gmra.mxu2 %vm178_vm8, %v498_v41  ;;  %v680_v41 = vld [vmem:[%s2272_s12 + $0x10] sm:$0xff] }
 0x42e   :  { %710 = vmatpush.msrb.mxu1 %v680_v41 }
 0x495   :  { %v553_v42 = vpop.f32.mrf.mxu0 }
 0x49d   :  { %v556_v50 = vpop.f32.mrf.mxu0 }
 0x4a8   :  { %v524_v44 = vpop.f32.mrf.mxu2 }
 0x4a9   :  { %v554_v45 = vadd.f32 %v553_v42, %v524_v44  ;;  %v679_v42 = vld [vmem:[%s2272_s12 + $0x8] sm:$0xff]  ;;  %v1609_v44 = vld [vmem:[%s2271_s11] ss:$0 sm:$0xff] }
 0x4aa   :  { %711 = vmatpush.msrb.mxu1 %v679_v42 }
 0x4ab   :  { %v563_v46 = vadd.f32 %v1606_v43, %v554_v45 }
 0x4ad   :  { %v565_v48 = vadd.f32 %v563_v46, %v1859_v47 }
 0x4af   :  { %v569_v49 = vsel %vm72_vm0, %v565_v48, 0.0 }
 0x4b0   :  { %570 = vadd.xlane.f32.xlu0 %v569_v49  ;;  %v527_v51 = vpop.f32.mrf.mxu2 }
 0x4b1   :  { %v557_v53 = vadd.f32 %v556_v50, %v527_v51 }
 0x4b3   :  { %v564_v54 = vadd.f32 %v1606_v43, %v557_v53  ;;  %v678_v43 = vld [vmem:[%s2272_s12] sm:$0xff] }
 0x4b4   :  { %712 = vmatpush.msrb.mxu1 %v678_v43  ;;  %v1611_v43 = vld [vmem:[%s2274_s14] ss:$0 sm:$0xff] }
 0x4b5   :  { %v566_v56 = vadd.f32 %v564_v54, %v1863_v52  ;;  %v626_v52 = vld [vmem:[%s2270_s10 + $0x18] sm:$0xff] }
 0x4b6   :  { %649 = vmatpush.msra.mxu3 %v626_v52 }
 0x4b7   :  { %v572_v57 = vsel %vm72_vm0, %v566_v56, 0.0 }
 0x4b8   :  { %573 = vadd.xlane.f32.xlu1 %v572_v57  ;;  %650 = vmatpush.msra.mxu3 %v625_v4 }
 0x4ba   :  { %651 = vmatpush.msra.mxu3 %v624_v5  ;;  %v1610_v5 = vld [vmem:[%s2273_s13] ss:$0 sm:$0xff] }
 0x4bc   :  { %652 = vmatpush.msra.mxu3 %v623_v6 }
 0x523   :  { %v571_v55 = vpop.xlane.xlu0 %570 }
 0x524   :  { %v575_v58 = vmul.f32 %v571_v55, %v1833_v10 }
 0x526   :  { %v577_v59 = vsub.f32 %v565_v48, %v575_v58 }
 0x528   :  { %v579_v60 = vmul.f32 %v577_v59, %v577_v59 }
 0x52a   :  { %v581_v61 = vsel %vm72_vm0, %v579_v60, 0.0 }
 0x52b   :  { %582 = vadd.xlane.f32.xlu2 %v581_v61  ;;  %v574_v47 = vpop.xlane.xlu1 %573 }
 0x52c   :  { %v576_v62 = vmul.f32 %v574_v47, %v1833_v10 }
 0x52e   :  { %v578_v63 = vsub.f32 %v566_v56, %v576_v62 }
 0x530   :  { %v580_v1 = vmul.f32 %v578_v63, %v578_v63 }
 0x532   :  { %v584_v2 = vsel %vm72_vm0, %v580_v1, 0.0 }
 0x533   :  { %585 = vadd.xlane.f32.xlu0 %v584_v2 }
 0x59e   :  { %v583_v7 = vpop.xlane.xlu2 %582 }
 0x59f   :  { %v587_v8 = vmul.f32 %v583_v7, %v1833_v10 }
 0x5a1   :  { %v589_v9 = vadd.f32 1e-12, %v587_v8 }
 0x5a3   :  { %1645 = vrsqrt.f32 %v589_v9  ;;  %vm597_vm14 = vweird.f32 %v589_v9 }
 0x5a6   :  { %v586_v11 = vpop.xlane.xlu0 %585 }
 0x5a7   :  { %v588_v12 = vmul.f32 %v586_v11, %v1833_v10 }
 0x5a9   :  { %v1646_v13 = vpop.eup %1645  ;;  %v590_v14 = vadd.f32 1e-12, %v588_v12 }
 0x5aa   :  { %v592_v15 = vmul.f32 %v1646_v13, %v589_v9  ;;  %vm598_vm13 = vweird.f32 %v1646_v13 }
 0x5ab   :  { %1647 = vrsqrt.f32 %v590_v14  ;;  %vm599_vm15 = vmor %vm597_vm14, %vm598_vm13  ;;  %vm607_vm2 = vweird.f32 %v590_v14 }
 0x5ac   :  { %v593_v16 = vmul.f32 %v1646_v13, %v592_v15 }
 0x5ae   :  { %v594_v17 = vmul.f32 0.5, %v593_v16 }
 0x5b0   :  { %v595_v18 = vsub.f32 1.5, %v594_v17 }
 0x5b1   :  { %v1648_v19 = vpop.eup %1647 }
 0x5b2   :  { %v596_v20 = vmul.f32 %v1646_v13, %v595_v18  ;;  %v602_v21 = vmul.f32 %v1648_v19, %v590_v14  ;;  %vm608_vm1 = vweird.f32 %v1648_v19 }
 0x5b3   :  { %vm609_vm3 = vmor %vm607_vm2, %vm608_vm1 }
 0x5b4   :  { %v600_v23 = vsel %vm599_vm15, %v1646_v13, %v596_v20  ;;  %v603_v24 = vmul.f32 %v1648_v19, %v602_v21 }
 0x5b5   :  { %v611_v25 = vmul.f32 %v600_v23, %v577_v59 }
 0x5b6   :  { %v604_v27 = vmul.f32 0.5, %v603_v24 }
 0x5b7   :  { %v616_v28 = vmul.f32 %v1607_v22, %v611_v25  ;;  %v1535_v25 = vld [vmem:[%s2291_s26 + $0x38] sm:$0xff] }
 0x5b8   :  { %v605_v29 = vsub.f32 1.5, %v604_v27  ;;  %806 = vmatpush.msrb.mxu2 %v1535_v25  ;;  %v1533_v27 = vld [vmem:[%s2291_s26 + $0x28] sm:$0xff] }
 0x5b9   :  { %v621_v30 = vadd.f32 %v1608_v26, %v616_v28  ;;  %v1532_v28 = vld [vmem:[%s2291_s26 + $0x20] sm:$0xff] }
 0x5ba   :  { %v606_v31 = vmul.f32 %v1648_v19, %v605_v29 }
 0x5bb   :  { %1528 = vmatmul.msk.f32.vlgmr.msra.gmra.mxu3 %vm72_vm0, %v621_v30 }
 0x5bc   :  { %v610_v33 = vsel %vm609_vm3, %v1648_v19, %v606_v31 }
 0x5bd   :  { %v612_v34 = vmul.f32 %v610_v33, %v578_v63 }
 0x5bf   :  { %v617_v35 = vmul.f32 %v1607_v22, %v612_v34 }
 0x5c1   :  { %v622_v36 = vadd.f32 %v1608_v26, %v617_v35  ;;  %v1534_v26 = vld [vmem:[%s2291_s26 + $0x30] sm:$0xff] }
 0x5c2   :  { %807 = vmatpush.msrb.mxu2 %v1534_v26 }
 0x5c3   :  { %1529 = vmatmul.msk.f32.gmra.mxu3 %vm72_vm0, %v622_v36 }
 0x5c4   :  { %808 = vmatpush.msrb.mxu2 %v1533_v27 }
 0x5c6   :  { %809 = vmatpush.msrb.mxu2 %v1532_v28 }
 0x63e   :  { %v654_v45 = vpop.f32.mrf.mxu3 }
 0x63f   :  { %v655_v46 = vadd.f32 %v1609_v44, %v654_v45 }
 0x641   :  { %v662_v48 = vmul.f32 0.044715, %v655_v46  ;;  %v660_v47 = vmul.f32 0.5, %v655_v46 }
 0x643   :  { %v664_v49 = vmul.f32 %v662_v48, %v655_v46  ;;  %v1612_v48 = vld [vmem:[%s2275_s15] ss:$0 sm:$0xff] }
 0x645   :  { %v666_v50 = vmul.f32 %v664_v49, %v655_v46 }
 0x646   :  { %v657_v51 = vpop.f32.mrf.mxu3 }
 0x647   :  { %v668_v53 = vadd.f32 %v666_v50, %v655_v46  ;;  %v658_v54 = vadd.f32 %v1609_v44, %v657_v51 }
 0x649   :  { %v670_v56 = vmul.f32 0.7978846, %v668_v53  ;;  %v663_v57 = vmul.f32 0.044715, %v658_v54  ;;  %v661_v2 = vmul.f32 0.5, %v658_v54 }
 0x64b   :  { %1649 = vtanh.f32 %v670_v56  ;;  %v665_v55 = vmul.f32 %v663_v57, %v658_v54 }
 0x64d   :  { %v667_v58 = vmul.f32 %v665_v55, %v658_v54 }
 0x64f   :  { %v669_v59 = vadd.f32 %v667_v58, %v658_v54 }
 0x651   :  { %v1650_v60 = vpop.eup %1649  ;;  %v671_v61 = vmul.f32 0.7978846, %v669_v59  ;;  %v1613_v59 = vld [vmem:[%s2265_s5 + $0x1] ss:$0 sm:$0xff]  ;;  %s2299_s5 = smov 48  }
 0x652   :  { %v674_v62 = vadd.f32 1.0, %v1650_v60 }
 0x653   :  { %1651 = vtanh.f32 %v671_v61 }
 0x654   :  { %v676_v63 = vmul.f32 %v674_v62, %v660_v47 }
 0x656   :  { %1530 = vmatmul.msk.f32.vlgmr.msrb.gmra.mxu1 %vm690_vm4, %v676_v63 }
 0x659   :  { %v1652_v1 = vpop.eup %1651 }
 0x65a   :  { %v675_v52 = vadd.f32 1.0, %v1652_v1 }
 0x65c   :  { %v677_v4 = vmul.f32 %v675_v52, %v661_v2 }
 0x65e   :  { %1531 = vmatmul.msk.f32.gmra.mxu1 %vm690_vm4, %v677_v4 }
 0x6d3   :  { %v714_v6 = vpop.f32.mrf.mxu1 }
 0x6d4   :  { %v715_v7 = vadd.f32 %v1610_v5, %v714_v6 }
 0x6d6   :  { %v720_v8 = vadd.f32 %v715_v7, %v621_v30 }
 0x6d8   :  { %v724_v9 = vsel %vm72_vm0, %v720_v8, 0.0 }
 0x6d9   :  { %725 = vadd.xlane.f32.xlu1 %v724_v9 }
 0x6db   :  { %v717_v11 = vpop.f32.mrf.mxu1 }
 0x6dc   :  { %v718_v12 = vadd.f32 %v1610_v5, %v717_v11 }
 0x6de   :  { %v721_v13 = vadd.f32 %v718_v12, %v622_v36 }
 0x6e0   :  { %v727_v14 = vsel %vm72_vm0, %v721_v13, 0.0 }
 0x6e1   :  { %728 = vadd.xlane.f32.xlu2 %v727_v14 }
 0x74c   :  { %v726_v15 = vpop.xlane.xlu1 %725 }
 0x74d   :  { %v730_v16 = vmul.f32 %v726_v15, %v1833_v10 }
 0x74f   :  { %v732_v17 = vsub.f32 %v720_v8, %v730_v16 }
 0x751   :  { %v734_v18 = vmul.f32 %v732_v17, %v732_v17 }
 0x753   :  { %v736_v19 = vsel %vm72_vm0, %v734_v18, 0.0 }
 0x754   :  { %v729_v20 = vpop.xlane.xlu2 %728  ;;  %737 = vadd.xlane.f32.xlu0 %v736_v19 }
 0x755   :  { %v731_v21 = vmul.f32 %v729_v20, %v1833_v10 }
 0x757   :  { %v733_v22 = vsub.f32 %v721_v13, %v731_v21 }
 0x759   :  { %v735_v23 = vmul.f32 %v733_v22, %v733_v22 }
 0x75b   :  { %v739_v24 = vsel %vm72_vm0, %v735_v23, 0.0 }
 0x75c   :  { %740 = vadd.xlane.f32.xlu1 %v739_v24 }
 0x7c7   :  { %v738_v29 = vpop.xlane.xlu0 %737 }
 0x7c8   :  { %v742_v30 = vmul.f32 %v738_v29, %v1833_v10 }
 0x7ca   :  { %v744_v31 = vadd.f32 1e-12, %v742_v30 }
 0x7cc   :  { %1653 = vrsqrt.f32 %v744_v31  ;;  %vm752_vm6 = vweird.f32 %v744_v31 }
 0x7cf   :  { %v741_v33 = vpop.xlane.xlu1 %740 }
 0x7d0   :  { %v743_v34 = vmul.f32 %v741_v33, %v1833_v10 }
 0x7d2   :  { %v1654_v35 = vpop.eup %1653  ;;  %v745_v36 = vadd.f32 1e-12, %v743_v34 }
 0x7d3   :  { %v747_v37 = vmul.f32 %v1654_v35, %v744_v31  ;;  %vm753_vm5 = vweird.f32 %v1654_v35 }
 0x7d4   :  { %1655 = vrsqrt.f32 %v745_v36  ;;  %vm754_vm7 = vmor %vm752_vm6, %vm753_vm5  ;;  %vm762_vm11 = vweird.f32 %v745_v36 }
 0x7d5   :  { %v748_v32 = vmul.f32 %v1654_v35, %v747_v37 }
 0x7d7   :  { %v749_v39 = vmul.f32 0.5, %v748_v32 }
 0x7d9   :  { %v750_v38 = vsub.f32 1.5, %v749_v39 }
 0x7da   :  { %v1656_v40 = vpop.eup %1655 }
 0x7db   :  { %v751_v41 = vmul.f32 %v1654_v35, %v750_v38  ;;  %v757_v42 = vmul.f32 %v1656_v40, %v745_v36  ;;  %vm763_vm10 = vweird.f32 %v1656_v40 }
 0x7dc   :  { %vm764_vm12 = vmor %vm762_vm11, %vm763_vm10 }
 0x7dd   :  { %v755_v44 = vsel %vm754_vm7, %v1654_v35, %v751_v41  ;;  %v758_v45 = vmul.f32 %v1656_v40, %v757_v42 }
 0x7de   :  { %v766_v46 = vmul.f32 %v755_v44, %v732_v17 }
 0x7df   :  { %v759_v49 = vmul.f32 0.5, %v758_v45 }
 0x7e0   :  { %v771_v50 = vmul.f32 %v1611_v43, %v766_v46 }
 0x7e1   :  { %v760_v51 = vsub.f32 1.5, %v759_v49  ;;  %v1540_v49 = vld [vmem:[%s2266_s6 + $0x28] sm:$0xff] }
 0x7e2   :  { %v2057_v53 = vadd.f32 %v1612_v48, %v771_v50 }
 0x7e3   :  { %v761_v54 = vmul.f32 %v1656_v40, %v760_v51 }
 0x7e4   :  { %1537 = vmatmul.msk.f32.vlgmr.msrb.gmra.mxu2 %vm72_vm0, %v2057_v53 }
 0x7e5   :  { %v765_v56 = vsel %vm764_vm12, %v1656_v40, %v761_v54 }
 0x7e6   :  { %v767_v57 = vmul.f32 %v765_v56, %v733_v22 }
 0x7e8   :  { %v772_v55 = vmul.f32 %v1611_v43, %v767_v57 }
 0x7ea   :  { %v2061_v58 = vadd.f32 %v1612_v48, %v772_v55 }
 0x7ec   :  { %1538 = vmatmul.msk.f32.gmra.mxu2 %vm72_vm0, %v2061_v58 }
 0x867   :  { %v811_v60 = vpop.f32.mrf.mxu2 }
 0x868   :  { %v2068_v61 = vadd.f32 %v1613_v59, %v811_v60 }
 0x86a   :  { %823 = vrot.lane.b32.xlu0 %v2068_v61, %s1716_s4 }
 0x86f   :  { %v814_v47 = vpop.f32.mrf.mxu2 }
 0x870   :  { %v2072_v62 = vadd.f32 %v1613_v59, %v814_v47 }
 0x872   :  { %1008 = vrot.lane.b32.xlu0 %v2072_v62, %s1715_s28  ;;  %1010 = vrot.lane.b32.xlu1 %v2072_v62, %s1714_s27  ;;  %v1591_v41 = vpack.i.bf16 %v2072_v62, %v2068_v61 }
 0x873   :  { %850 = vrot.lane.b32.xlu2 %v2072_v62, %s1716_s4 }
 0x87a   :  { %980 = vrot.lane.b32.xlu1 %v2068_v61, %s1715_s28 }
 0x87b   :  { %982 = vrot.lane.b32.xlu2 %v2068_v61, %s1714_s27 }
 0x8cd   :  { %v851_v63 = vpop.permute.xlu2 %850 }
 0x8ce   :  { %1545 = vmatpush.xpose.msk.msrb.mxu3 %vm178_vm8, %v851_v63 }
 0x8d1   :  { %1546 = vmatmul.msk.f32.vlgmr.msrb.gmra.mxu3 %vm178_vm8, %v2072_v62 }
 0x8d5   :  { %v983_v1 = vpop.permute.xlu2 %982 }
 0x8d6   :  { %1549 = vmatpush.xpose.msk.msra.mxu1 %vm178_vm8, %v983_v1 }
 0x8dc   :  { %v824_v2 = vpop.permute.xlu0 %823 }
 0x8dd   :  { %1543 = vmatpush.xpose.msk.msrb.mxu0 %vm178_vm8, %v824_v2 }
 0x8e0   :  { %1544 = vmatmul.msk.f32.vlgmr.msrb.gmra.mxu0 %vm178_vm8, %v2068_v61 }
 0x8e4   :  { %v1011_v52 = vpop.permute.xlu1 %1010  ;;  %v1009_v4 = vpop.permute.xlu0 %1008 }
 0x8e5   :  { %1551 = vmatpush.xpose.msk.msra.mxu2 %vm178_vm8, %v1011_v52 }
 0x8e8   :  { %1552 = vmatmul.msk.f32.vlgmr.msra.gmra.mxu2 %vm178_vm8, %v1009_v4 }
 0x8e9   :  { %1189 = vmatpush.msrb.mxu2 %v1540_v49 }
 0x8ec   :  { %v981_v5 = vpop.permute.xlu1 %980 }
 0x8ed   :  { %1550 = vmatmul.msk.f32.vlgmr.msra.gmra.mxu1 %vm178_vm8, %v981_v5 }
 0x954   :  { %v873_v6 = vpop.f32.mrf.mxu3 }
 0x955   :  { %v877_v7 = vmul.f32 0.25, %v873_v6 }
 0x957   :  { %v879_v8 = vadd.f32 %v1893_v0, %v877_v7 }
 0x959   :  { %v883_v9 = vsel %vm240_vm9, %v879_v8, -inf }
 0x95a   :  { %884 = vmax.xlane.f32.xlu2 %v883_v9 }
 0x95d   :  { %v846_v11 = vpop.f32.mrf.mxu0 }
 0x95e   :  { %v876_v12 = vmul.f32 0.25, %v846_v11 }
 0x960   :  { %v878_v13 = vadd.f32 %v1898_v3, %v876_v12 }
 0x962   :  { %v880_v14 = vsel %vm240_vm9, %v878_v13, -inf }
 0x963   :  { %881 = vmax.xlane.f32.xlu0 %v880_v14 }
 0x96a   :  { %v1005_v15 = vpop.f32.mrf.mxu1 }
 0x96b   :  { %v1036_v16 = vmul.f32 0.25, %v1005_v15  ;;  %v1033_v17 = vpop.f32.mrf.mxu2 }
 0x96c   :  { %v1037_v18 = vmul.f32 0.25, %v1033_v17 }
 0x96d   :  { %v1038_v19 = vadd.f32 %v1898_v3, %v1036_v16 }
 0x96e   :  { %v1039_v20 = vadd.f32 %v1893_v0, %v1037_v18 }
 0x96f   :  { %v1040_v21 = vsel %vm240_vm9, %v1038_v19, -inf }
 0x970   :  { %1041 = vmax.xlane.f32.xlu1 %v1040_v21  ;;  %v1043_v22 = vsel %vm240_vm9, %v1039_v20, -inf }
 0x971   :  { %1044 = vmax.xlane.f32.xlu0 %v1043_v22 }
 0x9cd   :  { %v885_v23 = vpop.xlane.xlu2 %884 }
 0x9ce   :  { %v887_v24 = vsub.f32 %v879_v8, %v885_v23 }
 0x9d0   :  { %v890_v25 = vmul.f32 1.442695, %v887_v24 }
 0x9d2   :  { %1657 = vpow2.f32 %v890_v25 }
 0x9d6   :  { %v882_v26 = vpop.xlane.xlu0 %881 }
 0x9d7   :  { %v886_v27 = vsub.f32 %v878_v13, %v882_v26 }
 0x9d8   :  { %v2102_v28 = vpop.eup %1657 }
 0x9d9   :  { %v888_v29 = vmul.f32 1.442695, %v886_v27  ;;  %v895_v3 = vsel %vm240_vm9, %v2102_v28, 0.0 }
 0x9da   :  { %896 = vadd.xlane.f32.xlu1 %v895_v3 }
 0x9db   :  { %1659 = vpow2.f32 %v888_v29 }
 0x9e1   :  { %v2106_v0 = vpop.eup %1659 }
 0x9e2   :  { %v892_v30 = vsel %vm240_vm9, %v2106_v0, 0.0 }
 0x9e3   :  { %893 = vadd.xlane.f32.xlu2 %v892_v30  ;;  %v1042_v31 = vpop.xlane.xlu1 %1041 }
 0x9e4   :  { %v1046_v33 = vsub.f32 %v1038_v19, %v1042_v31  ;;  %v1045_v34 = vpop.xlane.xlu0 %1044 }
 0x9e5   :  { %v1047_v35 = vsub.f32 %v1039_v20, %v1045_v34 }
 0x9e6   :  { %v1048_v36 = vmul.f32 1.442695, %v1046_v33 }
 0x9e7   :  { %v1050_v37 = vmul.f32 1.442695, %v1047_v35 }
 0x9e8   :  { %1661 = vpow2.f32 %v1048_v36 }
 0x9e9   :  { %1663 = vpow2.f32 %v1050_v37  ;;  %v1539_v37 = vld [vmem:[%s2266_s6 + $0x20] sm:$0xff] }
 0x9ea   :  { %1190 = vmatpush.msrb.mxu2 %v1539_v37  ;;  %v1575_v37 = vld [vmem:[%s2272_s12 + $0x70] sm:$0xff] }
 0x9ee   :  { %v2110_v32 = vpop.eup %1661 }
 0x9ef   :  { %v2112_v39 = vpop.eup %1663  ;;  %v1052_v38 = vsel %vm240_vm9, %v2110_v32, 0.0 }
 0x9f0   :  { %1053 = vadd.xlane.f32.xlu0 %v1052_v38  ;;  %v1055_v40 = vsel %vm240_vm9, %v2112_v39, 0.0  ;;  %v1542_v38 = vld [vmem:[%s2266_s6 + $0x38] sm:$0xff] }
 0x9f1   :  { %1056 = vadd.xlane.f32.xlu2 %v1055_v40  ;;  %1160 = vmatpush.msrb.mxu1 %v1542_v38  ;;  %v1574_v38 = vld [vmem:[%s2272_s12 + $0x68] sm:$0xff] }
 0x9f3   :  { %1592 = vrot.lane.b32.xlu1 %v1591_v41, %s1717_s22 }
 0xa04   :  { %1597 = vrot.lane.b32.xlu0 %v1591_v41, %s2299_s5 }
 0xa4d   :  { %v897_v42 = vpop.xlane.xlu1 %896 }
 0xa4e   :  { %1665 = vrcp.f32 %v897_v42  ;;  %v924_v54 = vand.u32 2147483648, %v897_v42  ;;  %vm918_vm14 = vweird.f32 %v897_v42  ;;  %v922_v57 = vand.u32 2147483647, %v897_v42 }
 0xa50   :  { %v925_v61 = vor.u32 1.1754944e-38, %v924_v54  ;;  %vm923_vm2 = vcmp.eq.f32.partialorder %v922_v57, 8.507059e+37 }
 0xa54   :  { %v1666_v43 = vpop.eup %1665 }
 0xa55   :  { %v914_v44 = vmul.f32 %v1666_v43, %v897_v42  ;;  %vm919_vm13 = vweird.f32 %v1666_v43 }
 0xa56   :  { %v894_v45 = vpop.xlane.xlu2 %893  ;;  %vm920_vm15 = vmor %vm918_vm14, %vm919_vm13 }
 0xa57   :  { %v915_v46 = vsub.f32 1.0, %v914_v44  ;;  %1667 = vrcp.f32 %v894_v45  ;;  %v909_v60 = vand.u32 2147483648, %v894_v45  ;;  %v907_v62 = vand.u32 2147483647, %v894_v45  ;;  %v1614_v44 = vld [vmem:[%s2267_s7 + $0x1] ss:$0 sm:$0xff] }
 0xa58   :  { %vm903_vm3 = vweird.f32 %v894_v45 }
 0xa59   :  { %v916_v48 = vmul.f32 %v1666_v43, %v915_v46  ;;  %v910_v4 = vor.u32 1.1754944e-38, %v909_v60  ;;  %vm908_vm6 = vcmp.eq.f32.partialorder %v907_v62, 8.507059e+37 }
 0xa5b   :  { %v917_v51 = vadd.f32 %v1666_v43, %v916_v48 }
 0xa5d   :  { %v1668_v50 = vpop.eup %1667  ;;  %v921_v59 = vsel %vm920_vm15, %v1666_v43, %v917_v51 }
 0xa5e   :  { %v899_v56 = vmul.f32 %v1668_v50, %v894_v45  ;;  %vm904_vm1 = vweird.f32 %v1668_v50  ;;  %v926_v1 = vsel %vm923_vm2, %v925_v61, %v921_v59 }
 0xa5f   :  { %vm905_vm5 = vmor %vm903_vm3, %vm904_vm1  ;;  %v927_v11 = vmul.f32 %v2102_v28, %v926_v1 }
 0xa60   :  { %v900_v55 = vsub.f32 1.0, %v899_v56 }
 0xa62   :  { %v901_v47 = vmul.f32 %v1668_v50, %v900_v55 }
 0xa63   :  { %v1054_v63 = vpop.xlane.xlu0 %1053 }
 0xa64   :  { %v902_v2 = vadd.f32 %v1668_v50, %v901_v47  ;;  %1669 = vrcp.f32 %v1054_v63  ;;  %v1057_v52 = vpop.xlane.xlu2 %1056  ;;  %v1069_v20 = vand.u32 2147483648, %v1054_v63  ;;  %v1067_v22 = vand.u32 2147483647, %v1054_v63 }
 0xa65   :  { %v1593_v5 = vpop.permute.xlu1 %1592  ;;  %1671 = vrcp.f32 %v1057_v52  ;;  %v1084_v21 = vand.u32 2147483648, %v1057_v52  ;;  %v1082_v24 = vand.u32 2147483647, %v1057_v52  ;;  %vm1063_vm11 = vweird.f32 %v1054_v63 }
 0xa66   :  { %v906_v6 = vsel %vm905_vm5, %v1668_v50, %v902_v2  ;;  %v1595_v7 = vunpack.i.h.bf16 %v1593_v5  ;;  %v1594_v8 = vunpack.i.l.bf16 %v1593_v5  ;;  %vm1078_vm13 = vweird.f32 %v1057_v52  ;;  %v1564_v5 = vld [vmem:[%s2270_s10 + $0x30] sm:$0xff] }
 0xa67   :  { %v911_v9 = vsel %vm908_vm6, %v910_v4, %v906_v6  ;;  %v1070_v28 = vor.u32 1.1754944e-38, %v1069_v20  ;;  %v1085_v29 = vor.u32 1.1754944e-38, %v1084_v21  ;;  %vm1068_vm15 = vcmp.eq.f32.partialorder %v1067_v22, 8.507059e+37  ;;  %v1563_v6 = vld [vmem:[%s2270_s10 + $0x28] sm:$0xff] }
 0xa68   :  { %949 = vmatpush.msra.mxu0 %v1594_v8  ;;  %975 = vmatpush.msra.mxu3 %v1595_v7  ;;  %v912_v12 = vmul.f32 %v2106_v0, %v911_v9  ;;  %vm1083_vm1 = vcmp.eq.f32.partialorder %v1082_v24, 8.507059e+37  ;;  %v1562_v7 = vld [vmem:[%s2270_s10 + $0x20] sm:$0xff] }
 0xa69   :  { %1548 = vmatmul.msk.f32.vlgmr.msra.gmra.mxu3 %vm240_vm9, %v927_v11 }
 0xa6a   :  { %v1670_v13 = vpop.eup %1669  ;;  %1547 = vmatmul.msk.f32.vlgmr.msra.gmra.mxu0 %vm240_vm9, %v912_v12 }
 0xa6b   :  { %v1672_v14 = vpop.eup %1671  ;;  %v1059_v15 = vmul.f32 %v1670_v13, %v1054_v63  ;;  %vm1064_vm7 = vweird.f32 %v1670_v13 }
 0xa6c   :  { %v1074_v16 = vmul.f32 %v1672_v14, %v1057_v52  ;;  %vm1079_vm10 = vweird.f32 %v1672_v14  ;;  %vm1065_vm12 = vmor %vm1063_vm11, %vm1064_vm7 }
 0xa6d   :  { %v1060_v17 = vsub.f32 1.0, %v1059_v15  ;;  %vm1080_vm14 = vmor %vm1078_vm13, %vm1079_vm10 }
 0xa6e   :  { %v1075_v18 = vsub.f32 1.0, %v1074_v16 }
 0xa6f   :  { %v1061_v19 = vmul.f32 %v1670_v13, %v1060_v17 }
 0xa70   :  { %v1076_v23 = vmul.f32 %v1672_v14, %v1075_v18 }
 0xa71   :  { %v1062_v25 = vadd.f32 %v1670_v13, %v1061_v19 }
 0xa72   :  { %v1077_v26 = vadd.f32 %v1672_v14, %v1076_v23  ;;  %v1615_v23 = vld [vmem:[%s2268_s8 + $0x1] ss:$0 sm:$0xff] }
 0xa73   :  { %v1066_v27 = vsel %vm1065_vm12, %v1670_v13, %v1062_v25 }
 0xa74   :  { %v1081_v3 = vsel %vm1080_vm14, %v1672_v14, %v1077_v26  ;;  %v1071_v0 = vsel %vm1068_vm15, %v1070_v28, %v1066_v27  ;;  %v1616_v27 = vld [vmem:[%s2269_s9 + $0x1] ss:$0 sm:$0xff]  ;;  %vm1436_vm14 = vcmask 1041409   ;;  %vm1492_vm15 = vcmask 9216  }
 0xa75   :  { %v1086_v30 = vsel %vm1083_vm1, %v1085_v29, %v1081_v3  ;;  %v1072_v35 = vmul.f32 %v2110_v32, %v1071_v0  ;;  %v1541_v32 = vld [vmem:[%s2266_s6 + $0x30] sm:$0xff] }
 0xa76   :  { %v1598_v31 = vpop.permute.xlu0 %1597  ;;  %v1087_v36 = vmul.f32 %v2112_v39, %v1086_v30  ;;  %1161 = vmatpush.msrb.mxu1 %v1541_v32  ;;  %v1573_v32 = vld [vmem:[%s2272_s12 + $0x60] sm:$0xff] }
 0xa77   :  { %v1600_v33 = vunpack.i.h.bf16 %v1598_v31  ;;  %v1599_v34 = vunpack.i.l.bf16 %v1598_v31 }
 0xa79   :  { %1109 = vmatpush.msrb.mxu0 %v1599_v34  ;;  %1135 = vmatpush.msrb.mxu3 %v1600_v33 }
 0xa7a   :  { %1553 = vmatmul.msk.f32.vlgmr.msrb.gmra.mxu0 %vm240_vm9, %v1072_v35  ;;  %1554 = vmatmul.msk.f32.vlgmr.msrb.gmra.mxu3 %vm240_vm9, %v1087_v36  ;;  %v1576_v36 = vld [vmem:[%s2272_s12 + $0x78] sm:$0xff] }
 0xa7b   :  { %1350 = vmatpush.msra.mxu3 %v1576_v36 }
 0xa7d   :  { %1351 = vmatpush.msra.mxu3 %v1575_v37 }
 0xa7f   :  { %1352 = vmatpush.msra.mxu3 %v1574_v38 }
 0xa81   :  { %1353 = vmatpush.msra.mxu3 %v1573_v32 }
 0xae7   :  { %v951_v39 = vpop.f32.mrf.mxu0 }
 0xae8   :  { %1557 = vmatmul.msk.f32.vlgmr.msrb.gmra.mxu2 %vm178_vm8, %v951_v39  ;;  %v1572_v39 = vld [vmem:[%s2272_s12 + $0x58] sm:$0xff] }
 0xae9   :  { %1354 = vmatpush.msra.mxu3 %v1572_v39 }
 0xaec   :  { %v977_v40 = vpop.f32.mrf.mxu3 }
 0xaf0   :  { %1558 = vmatmul.msk.f32.gmra.mxu2 %vm178_vm8, %v977_v40  ;;  %v1571_v40 = vld [vmem:[%s2272_s12 + $0x50] sm:$0xff] }
 0xaf1   :  { %1355 = vmatpush.msra.mxu3 %v1571_v40 }
 0xaf7   :  { %v1111_v41 = vpop.f32.mrf.mxu0 }
 0xaf8   :  { %1555 = vmatmul.msk.f32.vlgmr.msrb.gmra.mxu1 %vm178_vm8, %v1111_v41  ;;  %v1570_v41 = vld [vmem:[%s2272_s12 + $0x48] sm:$0xff] }
 0xaf9   :  { %1356 = vmatpush.msra.mxu3 %v1570_v41 }
 0xafd   :  { %v1137_v42 = vpop.f32.mrf.mxu3 }
 0xb00   :  { %1556 = vmatmul.msk.f32.gmra.mxu1 %vm178_vm8, %v1137_v42  ;;  %v1569_v42 = vld [vmem:[%s2272_s12 + $0x40] sm:$0xff] }
 0xb01   :  { %1357 = vmatpush.msra.mxu3 %v1569_v42  ;;  %v1619_v42 = vld [vmem:[%s2274_s14 + $0x1] ss:$0 sm:$0xff] }
 0xb6b   :  { %v1192_v43 = vpop.f32.mrf.mxu2 }
 0xb73   :  { %v1195_v51 = vpop.f32.mrf.mxu2 }
 0xb75   :  { %v1163_v45 = vpop.f32.mrf.mxu1 }
 0xb76   :  { %v1193_v46 = vadd.f32 %v1192_v43, %v1163_v45  ;;  %v1617_v43 = vld [vmem:[%s2271_s11 + $0x1] ss:$0 sm:$0xff] }
 0xb78   :  { %v1203_v48 = vadd.f32 %v1614_v44, %v1193_v46 }
 0xb7a   :  { %v1205_v49 = vadd.f32 %v1203_v48, %v2057_v53 }
 0xb7c   :  { %v1211_v50 = vsel %vm72_vm0, %v1205_v49, 0.0 }
 0xb7d   :  { %1212 = vadd.xlane.f32.xlu2 %v1211_v50  ;;  %v1166_v54 = vpop.f32.mrf.mxu1 }
 0xb7e   :  { %v1196_v56 = vadd.f32 %v1195_v51, %v1166_v54 }
 0xb80   :  { %v1204_v57 = vadd.f32 %v1614_v44, %v1196_v56 }
 0xb82   :  { %v1206_v55 = vadd.f32 %v1204_v57, %v2061_v58  ;;  %v1565_v58 = vld [vmem:[%s2270_s10 + $0x38] sm:$0xff]  ;;  %s1719_s10 = smov [#allocation2]  }
 0xb83   :  { %1293 = vmatpush.msra.mxu0 %v1565_v58  ;;  %v1618_v58 = vld [vmem:[%s2273_s13 + $0x1] ss:$0 sm:$0xff]  ;;  %s1499_s11 = sshll.u32 %s1719_s10, 4  ;;  %s1501_s13 = sshll.u32 %s2280_s20, 4  ;;  %s1500_s11 = int_to_ptr.vmem [resolvable:$true] %s1499_s11  ;;  %s1502_s13 = int_to_ptr.hbm [resolvable:$true] %s1501_s13 }
 0xb84   :  { %v1214_v59 = vsel %vm72_vm0, %v1206_v55, 0.0 }
 0xb85   :  { %1215 = vadd.xlane.f32.xlu2 %v1214_v59  ;;  %1294 = vmatpush.msra.mxu0 %v1564_v5 }
 0xb87   :  { %1295 = vmatpush.msra.mxu0 %v1563_v6 }
 0xb89   :  { %1296 = vmatpush.msra.mxu0 %v1562_v7 }
 0xbf0   :  { %v1213_v60 = vpop.xlane.xlu2 %1212 }
 0xbf1   :  { %v1217_v61 = vmul.f32 %v1213_v60, %v1833_v10 }
 0xbf3   :  { %v1219_v47 = vsub.f32 %v1205_v49, %v1217_v61 }
 0xbf5   :  { %v1221_v62 = vmul.f32 %v1219_v47, %v1219_v47 }
 0xbf7   :  { %v1223_v63 = vsel %vm72_vm0, %v1221_v62, 0.0 }
 0xbf8   :  { %1224 = vadd.xlane.f32.xlu2 %v1223_v63  ;;  %v1216_v53 = vpop.xlane.xlu2 %1215 }
 0xbf9   :  { %v1218_v1 = vmul.f32 %v1216_v53, %v1833_v10 }
 0xbfb   :  { %v1220_v2 = vsub.f32 %v1206_v55, %v1218_v1 }
 0xbfd   :  { %v1222_v52 = vmul.f32 %v1220_v2, %v1220_v2 }
 0xbff   :  { %v1226_v4 = vsel %vm72_vm0, %v1222_v52, 0.0 }
 0xc00   :  { %1227 = vadd.xlane.f32.xlu0 %v1226_v4 }
 0xc6b   :  { %v1225_v8 = vpop.xlane.xlu2 %1224 }
 0xc6c   :  { %v1229_v9 = vmul.f32 %v1225_v8, %v1833_v10 }
 0xc6e   :  { %v1231_v11 = vadd.f32 1e-12, %v1229_v9 }
 0xc70   :  { %1673 = vrsqrt.f32 %v1231_v11  ;;  %vm1239_vm9 = vweird.f32 %v1231_v11 }
 0xc73   :  { %v1228_v12 = vpop.xlane.xlu0 %1227 }
 0xc74   :  { %v1230_v13 = vmul.f32 %v1228_v12, %v1833_v10 }
 0xc76   :  { %v1674_v14 = vpop.eup %1673  ;;  %v1232_v15 = vadd.f32 1e-12, %v1230_v13 }
 0xc77   :  { %v1234_v16 = vmul.f32 %v1674_v14, %v1231_v11  ;;  %vm1240_vm8 = vweird.f32 %v1674_v14 }
 0xc78   :  { %1675 = vrsqrt.f32 %v1232_v15  ;;  %vm1241_vm2 = vmor %vm1239_vm9, %vm1240_vm8  ;;  %vm1249_vm5 = vweird.f32 %v1232_v15 }
 0xc79   :  { %v1235_v17 = vmul.f32 %v1674_v14, %v1234_v16 }
 0xc7b   :  { %v1236_v18 = vmul.f32 0.5, %v1235_v17 }
 0xc7d   :  { %v1237_v19 = vsub.f32 1.5, %v1236_v18 }
 0xc7e   :  { %v1676_v20 = vpop.eup %1675 }
 0xc7f   :  { %v1238_v21 = vmul.f32 %v1674_v14, %v1237_v19  ;;  %v1244_v22 = vmul.f32 %v1676_v20, %v1232_v15  ;;  %vm1250_vm3 = vweird.f32 %v1676_v20 }
 0xc80   :  { %vm1251_vm6 = vmor %vm1249_vm5, %vm1250_vm3 }
 0xc81   :  { %v1242_v24 = vsel %vm1241_vm2, %v1674_v14, %v1238_v21  ;;  %v1245_v25 = vmul.f32 %v1676_v20, %v1244_v22 }
 0xc82   :  { %v1253_v26 = vmul.f32 %v1242_v24, %v1219_v47 }
 0xc83   :  { %v1246_v28 = vmul.f32 0.5, %v1245_v25  ;;  %v1428_v25 = vld [vmem:[%s2276_s16 + $0x18] sm:$0xff] }
 0xc84   :  { %v1258_v29 = vmul.f32 %v1615_v23, %v1253_v26  ;;  %1452 = vmatpush.msra.mxu1 %v1428_v25 }
 0xc85   :  { %v1247_v3 = vsub.f32 1.5, %v1246_v28  ;;  %v1426_v28 = vld [vmem:[%s2276_s16 + $0x8] sm:$0xff] }
 0xc86   :  { %v1263_v0 = vadd.f32 %v1616_v27, %v1258_v29 }
 0xc87   :  { %v1248_v30 = vmul.f32 %v1676_v20, %v1247_v3  ;;  %v1425_v3 = vld [vmem:[%s2276_s16] sm:$0xff] }
 0xc88   :  { %1567 = vmatmul.msk.f32.vlgmr.msra.gmra.mxu0 %vm72_vm0, %v1263_v0 }
 0xc89   :  { %v1252_v31 = vsel %vm1251_vm6, %v1676_v20, %v1248_v30 }
 0xc8a   :  { %v1254_v33 = vmul.f32 %v1252_v31, %v1220_v2 }
 0xc8c   :  { %v1259_v34 = vmul.f32 %v1615_v23, %v1254_v33 }
 0xc8e   :  { %v1264_v35 = vadd.f32 %v1616_v27, %v1259_v34  ;;  %v1427_v27 = vld [vmem:[%s2276_s16 + $0x10] sm:$0xff] }
 0xc8f   :  { %1453 = vmatpush.msra.mxu1 %v1427_v27 }
 0xc90   :  { %1568 = vmatmul.msk.f32.gmra.mxu0 %vm72_vm0, %v1264_v35 }
 0xc91   :  { %1454 = vmatpush.msra.mxu1 %v1426_v28 }
 0xc93   :  { %1455 = vmatpush.msra.mxu1 %v1425_v3 }
 0xd05   :  { %v1298_v44 = vpop.f32.mrf.mxu0 }
 0xd06   :  { %v1299_v45 = vadd.f32 %v1617_v43, %v1298_v44 }
 0xd08   :  { %v1306_v46 = vmul.f32 0.044715, %v1299_v45  ;;  %v1304_v62 = vmul.f32 0.5, %v1299_v45 }
 0xd0a   :  { %v1308_v48 = vmul.f32 %v1306_v46, %v1299_v45  ;;  %v1620_v46 = vld [vmem:[%s2275_s15 + $0x1] ss:$0 sm:$0xff] }
 0xd0c   :  { %v1310_v49 = vmul.f32 %v1308_v48, %v1299_v45 }
 0xd0d   :  { %v1301_v50 = vpop.f32.mrf.mxu0 }
 0xd0e   :  { %v1312_v51 = vadd.f32 %v1310_v49, %v1299_v45  ;;  %v1302_v54 = vadd.f32 %v1617_v43, %v1301_v50 }
 0xd10   :  { %v1314_v56 = vmul.f32 0.7978846, %v1312_v51  ;;  %v1307_v57 = vmul.f32 0.044715, %v1302_v54  ;;  %v1305_v2 = vmul.f32 0.5, %v1302_v54 }
 0xd12   :  { %1677 = vtanh.f32 %v1314_v56  ;;  %v1309_v55 = vmul.f32 %v1307_v57, %v1302_v54 }
 0xd14   :  { %v1311_v59 = vmul.f32 %v1309_v55, %v1302_v54 }
 0xd16   :  { %v1313_v60 = vadd.f32 %v1311_v59, %v1302_v54  ;;  %v1464_v59 = vld [vmem:[%s2278_s18 + $0x18] sm:$0xff] }
 0xd17   :  { %1484 = vmatpush.msra.mxu2 %v1464_v59 }
 0xd18   :  { %v1678_v61 = vpop.eup %1677  ;;  %v1315_v47 = vmul.f32 0.7978846, %v1313_v60  ;;  %v1463_v60 = vld [vmem:[%s2278_s18 + $0x10] sm:$0xff] }
 0xd19   :  { %v1318_v63 = vadd.f32 1.0, %v1678_v61  ;;  %v1462_v61 = vld [vmem:[%s2278_s18 + $0x8] sm:$0xff]  ;;  %1485 = vmatpush.msra.mxu2 %v1463_v60 }
 0xd1a   :  { %1679 = vtanh.f32 %v1315_v47  ;;  %v1461_v47 = vld [vmem:[%s2278_s18] sm:$0xff] }
 0xd1b   :  { %v1320_v53 = vmul.f32 %v1318_v63, %v1304_v62  ;;  %1486 = vmatpush.msra.mxu2 %v1462_v61  ;;  %v1621_v62 = vld [vmem:[%s2277_s17] ss:$0 sm:$0xff] }
 0xd1d   :  { %1578 = vmatmul.msk.f32.vlgmr.msra.gmra.mxu3 %vm690_vm4, %v1320_v53  ;;  %1487 = vmatpush.msra.mxu2 %v1461_v47 }
 0xd20   :  { %v1680_v1 = vpop.eup %1679 }
 0xd21   :  { %v1319_v52 = vadd.f32 1.0, %v1680_v1 }
 0xd23   :  { %v1321_v4 = vmul.f32 %v1319_v52, %v1305_v2  ;;  %v1622_v2 = vld [vmem:[%s2279_s19] ss:$0 sm:$0xff] }
 0xd25   :  { %1579 = vmatmul.msk.f32.gmra.mxu3 %vm690_vm4, %v1321_v4 }
 0xda0   :  { %v1359_v5 = vpop.f32.mrf.mxu3 }
 0xda1   :  { %v1360_v6 = vadd.f32 %v1618_v58, %v1359_v5 }
 0xda3   :  { %v1365_v7 = vadd.f32 %v1360_v6, %v1263_v0 }
 0xda5   :  { %v1371_v8 = vsel %vm72_vm0, %v1365_v7, 0.0 }
 0xda6   :  { %1372 = vadd.xlane.f32.xlu2 %v1371_v8 }
 0xda8   :  { %v1362_v9 = vpop.f32.mrf.mxu3 }
 0xda9   :  { %v1363_v11 = vadd.f32 %v1618_v58, %v1362_v9 }
 0xdab   :  { %v1366_v12 = vadd.f32 %v1363_v11, %v1264_v35 }
 0xdad   :  { %v1374_v13 = vsel %vm72_vm0, %v1366_v12, 0.0 }
 0xdae   :  { %1375 = vadd.xlane.f32.xlu1 %v1374_v13 }
 0xe19   :  { %v1373_v14 = vpop.xlane.xlu2 %1372 }
 0xe1a   :  { %v1377_v17 = vmul.f32 %v1373_v14, %v1833_v10 }
 0xe1c   :  { %v1379_v20 = vsub.f32 %v1365_v7, %v1377_v17 }
 0xe1e   :  { %v1381_v22 = vmul.f32 %v1379_v20, %v1379_v20 }
 0xe20   :  { %v1383_v23 = vsel %vm72_vm0, %v1381_v22, 0.0 }
 0xe21   :  { %v1376_v15 = vpop.xlane.xlu1 %1375 }
 0xe22   :  { %v1378_v16 = vmul.f32 %v1376_v15, %v1833_v10 }
 0xe24   :  { %v1380_v18 = vsub.f32 %v1366_v12, %v1378_v16 }
 0xe26   :  { %v1382_v19 = vmul.f32 %v1380_v18, %v1380_v18 }
 0xe28   :  { %v1386_v21 = vsel %vm72_vm0, %v1382_v19, 0.0 }
 0xe29   :  { %1387 = vadd.xlane.f32.xlu2 %v1386_v21 }
 0xe31   :  { %1384 = vadd.xlane.f32.xlu2 %v1383_v23 }
 0xe9c   :  { %v1388_v24 = vpop.xlane.xlu2 %1387 }
 0xe9d   :  { %v1390_v26 = vmul.f32 %v1388_v24, %v1833_v10 }
 0xe9f   :  { %v1392_v29 = vadd.f32 1e-12, %v1390_v26 }
 0xea1   :  { %1681 = vrsqrt.f32 %v1392_v29  ;;  %vm1409_vm7 = vweird.f32 %v1392_v29 }
 0xea4   :  { %v1385_v0 = vpop.xlane.xlu2 %1384 }
 0xea5   :  { %v1389_v30 = vmul.f32 %v1385_v0, %v1833_v10 }
 0xea7   :  { %v1682_v31 = vpop.eup %1681  ;;  %v1391_v33 = vadd.f32 1e-12, %v1389_v30 }
 0xea8   :  { %v1404_v34 = vmul.f32 %v1682_v31, %v1392_v29  ;;  %vm1410_vm4 = vweird.f32 %v1682_v31 }
 0xea9   :  { %1683 = vrsqrt.f32 %v1391_v33  ;;  %vm1411_vm10 = vmor %vm1409_vm7, %vm1410_vm4  ;;  %vm1399_vm12 = vweird.f32 %v1391_v33 }
 0xeaa   :  { %v1405_v35 = vmul.f32 %v1682_v31, %v1404_v34 }
 0xeac   :  { %v1406_v36 = vmul.f32 0.5, %v1405_v35 }
 0xeae   :  { %v1407_v37 = vsub.f32 1.5, %v1406_v36 }
 0xeaf   :  { %v1684_v38 = vpop.eup %1683 }
 0xeb0   :  { %v1408_v32 = vmul.f32 %v1682_v31, %v1407_v37  ;;  %v1394_v39 = vmul.f32 %v1684_v38, %v1391_v33  ;;  %vm1400_vm11 = vweird.f32 %v1684_v38 }
 0xeb1   :  { %vm1401_vm13 = vmor %vm1399_vm12, %vm1400_vm11 }
 0xeb2   :  { %v1412_v40 = vsel %vm1411_vm10, %v1682_v31, %v1408_v32  ;;  %v1395_v41 = vmul.f32 %v1684_v38, %v1394_v39 }
 0xeb3   :  { %v1414_v10 = vmul.f32 %v1412_v40, %v1380_v18 }
 0xeb4   :  { %v1396_v43 = vmul.f32 0.5, %v1395_v41 }
 0xeb5   :  { %v1419_v45 = vmul.f32 %v1619_v42, %v1414_v10 }
 0xeb6   :  { %v1397_v44 = vsub.f32 1.5, %v1396_v43 }
 0xeb7   :  { %v1424_v51 = vadd.f32 %v1620_v46, %v1419_v45 }
 0xeb8   :  { %v1398_v48 = vmul.f32 %v1684_v38, %v1397_v44 }
 0xeb9   :  { %v1435_v57 = vrot.slane %v1424_v51, 7 }
 0xeba   :  { %v1402_v49 = vsel %vm1401_vm13, %v1684_v38, %v1398_v48 }
 0xebb   :  { %v1413_v50 = vmul.f32 %v1402_v49, %v1379_v20 }
 0xebd   :  { %v1418_v54 = vmul.f32 %v1619_v42, %v1413_v50 }
 0xebf   :  { %v1423_v56 = vadd.f32 %v1620_v46, %v1418_v54 }
 0xec1   :  { %v1437_v55 = vsel %vm1436_vm14, %v1435_v57, %v1423_v56 }
 0xec2   :  { %1582 = vmatmul.msk.f32.vlgmr.msra.gmra.mxu1 %vm72_vm0, %v1437_v55 }
 0xf3f   :  { %v1457_v63 = vpop.f32.mrf.mxu1 }
 0xf40   :  { %v1458_v53 = vadd.f32 %v1621_v62, %v1457_v63 }
 0xf42   :  { %1685 = vtanh.f32 %v1458_v53 }
 0xf48   :  { %v1686_v1 = vpop.eup %1685 }
 0xf49   :  { %1583 = vmatmul.msk.f32.vlgmr.msra.gmra.mxu2 %vm72_vm0, %v1686_v1 }
 0xfcc   :  { %v1489_v52 = vpop.f32.mrf.mxu2 }
 0xfcd   :  { %v1490_v4 = vadd.f32 %v1622_v2, %v1489_v52 }
 0xfcf   :  { %1493 = vst.msk [vmem:[#allocation2] sm:$0x3] %vm1492_vm15, %v1490_v4 }
 0xfd0   :  { %1504 = dma.vmem_to_hbm [thread:$0]  %s1500_s11, 32, %s1502_s13, [#allocation3]  }
 0xfd1   :  { %1711 = dma.done.wait [#allocation3], 32  }
 0xfd2   :  { %1712 = vsyncadd [#allocation3], 4294967264 }
 0xfd3   :  { %1509 = vsyncpa [#allocation3], 1 }

// kernel: hardkuma_e2e_forward.2
= control target key start
LH: loop header
LB: loop body
LE: loop exit
PB: predicated region body
PF: predicated region fallthrough
CT: control target
= control target key end

     0   :  { %s2555_s0 = inlined_call_operand.vmem [shape: f32[16,32], index: 0, kind: input, shape index: {}]   ;;  %s2556_s1 = inlined_call_operand.vmem [shape: f32[2,1,8], index: 1, kind: input, shape index: {}]   ;;  %s2557_s2 = inlined_call_operand.vmem [shape: f32[1,32], index: 2, kind: input, shape index: {}]   ;;  %s2558_s3 = inlined_call_operand.vmem [shape: f32[1,32], index: 3, kind: input, shape index: {}]   ;;  %s2559_s4 = inlined_call_operand.vmem [shape: f32[2,32,96], index: 4, kind: input, shape index: {}]   ;;  %s2560_s5 = inlined_call_operand.vmem [shape: f32[2,1,96], index: 5, kind: input, shape index: {}]   ;;  %s2561_s6 = inlined_call_operand.vmem [shape: f32[2,32,32], index: 6, kind: input, shape index: {}]   ;;  %s2562_s7 = inlined_call_operand.vmem [shape: f32[2,1,32], index: 7, kind: input, shape index: {}]   ;;  %s2563_s8 = inlined_call_operand.vmem [shape: f32[2,1,32], index: 8, kind: input, shape index: {}]   ;;  %s2564_s9 = inlined_call_operand.vmem [shape: f32[2,1,32], index: 9, kind: input, shape index: {}]   ;;  %s2565_s10 = inlined_call_operand.vmem [shape: f32[2,32,64], index: 10, kind: input, shape index: {}]   ;;  %s2566_s11 = inlined_call_operand.vmem [shape: f32[2,1,64], index: 11, kind: input, shape index: {}]   ;;  %s2567_s12 = inlined_call_operand.vmem [shape: f32[2,64,32], index: 12, kind: input, shape index: {}]   ;;  %s2568_s13 = inlined_call_operand.vmem [shape: f32[2,1,32], index: 13, kind: input, shape index: {}]   ;;  %s2569_s14 = inlined_call_operand.vmem [shape: f32[2,1,32], index: 14, kind: input, shape index: {}]   ;;  %s2570_s15 = inlined_call_operand.vmem [shape: f32[2,1,32], index: 15, kind: input, shape index: {}]   ;;  %s2571_s16 = inlined_call_operand.vmem [shape: f32[32,32], index: 16, kind: input, shape index: {}]   ;;  %s2572_s17 = inlined_call_operand.vmem [shape: f32[1,32], index: 17, kind: input, shape index: {}]   ;;  %s2573_s18 = inlined_call_operand.vmem [shape: f32[32,2], index: 18, kind: input, shape index: {}]   ;;  %s2574_s19 = inlined_call_operand.vmem [shape: f32[1,2], index: 19, kind: input, shape index: {}]   ;;  %s2575_s20 = inlined_call_operand.vmem [shape: f32[32,2], index: 20, kind: input, shape index: {}]   ;;  %s2576_s21 = inlined_call_operand.vmem [shape: f32[1,2], index: 21, kind: input, shape index: {}]   ;;  %s2577_s22 = inlined_call_operand.vmem [shape: f32[16,1], index: 22, kind: input, shape index: {}]   ;;  %s2578_s23 = inlined_call_operand.hbm [shape: f32[2,2], index: 23, kind: output, shape index: {0}]   ;;  %s2579_s24 = inlined_call_operand.vmem [shape: f32[16,2], index: 24, kind: output, shape index: {1}]  }
   0x1   :  { %2595 = sst [smem:[#allocation5_spill]] %s2555_s0 }
   0x2   :  { %2596 = sst [smem:[#allocation6_spill]] %s2556_s1 }
   0x3   :  { %2597 = sst [smem:[#allocation7_spill]] %s2557_s2 }
   0x4   :  { %2598 = sst [smem:[#allocation8_spill]] %s2558_s3 }
   0x5   :  { %2599 = sst [smem:[#allocation9_spill]] %s2559_s4 }
   0x6   :  { %2600 = sst [smem:[#allocation10_spill]] %s2560_s5 }
   0x7   :  { %2601 = sst [smem:[#allocation11_spill]] %s2561_s6 }
   0x8   :  { %2602 = sst [smem:[#allocation12_spill]] %s2562_s7 }
   0x9   :  { %2603 = sst [smem:[#allocation13_spill]] %s2563_s8 }
   0xa   :  { %s2604_s27 = sld [smem:[#allocation5_spill]]  ;;  %vm83_vm0 = vcmask 261120  }
  0x10   :  { %v79_v0 = vld [vmem:[%s2604_s27] sm:$0xff]  ;;  %v80_v1 = vld [vmem:[%s2604_s27 + $0x8] sm:$0xff] }
  0x11   :  { %v84_v2 = vsel %vm83_vm0, %v79_v0, 0.0  ;;  %v87_v3 = vsel %vm83_vm0, %v80_v1, 0.0 }
  0x12   :  { %85 = vadd.xlane.f32.xlu0 %v84_v2 }
  0x13   :  { %30 = vsyncpa [#allocation3], 0  ;;  %v1969_v4 = vmov 32.0   ;;  %s2605_s0 = sld [smem:[#allocation9_spill]]  ;;  %s2589_s30 = smov 80   ;;  %vm189_vm8 = vcmask 130048  }
  0x14   :  { %1851 = vrcp.f32 %v1969_v4  ;;  %s2606_s26 = sld [smem:[#allocation7_spill]]  ;;  %s2593_s3 = smov 96   ;;  %vm251_vm9 = vcmask 64512  }
  0x15   :  { %s2607_s6 = sld [smem:[#allocation8_spill]]  ;;  %s2591_s25 = smov 112  }
  0x16   :  { %s2608_s7 = sld [smem:[#allocation10_spill]]  ;;  %s2588_s27 = smov 64  }
  0x17   :  { %s2609_s1 = sld [smem:[#allocation6_spill]]  ;;  %s2587_s28 = smov 48  }
  0x18   :  { %s2610_s29 = sld [smem:[#allocation11_spill]]  ;;  %s2615_s5 = smov 80  }
  0x19   :  { %v148_v21 = vld [vmem:[%s2605_s0 + $0x18] sm:$0xff]  ;;  %v147_v22 = vld [vmem:[%s2605_s0 + $0x10] sm:$0xff]  ;;  %v146_v23 = vld [vmem:[%s2605_s0 + $0x8] sm:$0xff]  ;;  %s2611_s4 = sld [smem:[#allocation12_spill]] }
  0x1a   :  { %88 = vadd.xlane.f32.xlu0 %v87_v3  ;;  %v1852_v5 = vpop.eup %1851  ;;  %171 = vmatpush.msra.mxu0 %v148_v21  ;;  %v145_v24 = vld [vmem:[%s2605_s0] sm:$0xff] }
  0x1b   :  { %v91_v6 = vmul.f32 32.0, %v1852_v5  ;;  %vm95_vm1 = vweird.f32 %v1852_v5  ;;  %v1828_v39 = vld [vmem:[%s2606_s26] ss:$0 sm:$0xff] }
  0x1c   :  { %172 = vmatpush.msra.mxu0 %v147_v22  ;;  %v1829_v43 = vld [vmem:[%s2607_s6] ss:$0 sm:$0xff] }
  0x1d   :  { %v92_v7 = vsub.f32 1.0, %v91_v6  ;;  %v1830_v53 = vld [vmem:[%s2608_s7] ss:$0 sm:$0xff] }
  0x1e   :  { %173 = vmatpush.msra.mxu0 %v146_v23 }
  0x1f   :  { %v93_v8 = vmul.f32 %v1852_v5, %v92_v7 }
  0x20   :  { %174 = vmatpush.msra.mxu0 %v145_v24 }
  0x21   :  { %v94_v9 = vadd.f32 %v1852_v5, %v93_v8 }
  0x23   :  { %v2112_v10 = vsel %vm95_vm1, %v1852_v5, %v94_v9  ;;  %v2185_v5 = vld [vmem:[%s2609_s1 + $0x1] ss:$0 sm:$0xff] }
  0x85   :  { %v86_v11 = vpop.xlane.xlu0 %85 }
  0x86   :  { %v97_v12 = vmul.f32 %v2112_v10, %v86_v11 }
  0x88   :  { %v99_v13 = vsub.f32 %v79_v0, %v97_v12  ;;  %v2178_v0 = vld [vmem:[%s2609_s1] ss:$0 sm:$0xff]  ;;  %s2612_s1 = sld [smem:[#allocation13_spill]] }
  0x8a   :  { %v101_v14 = vmul.f32 %v99_v13, %v99_v13 }
  0x8c   :  { %v103_v15 = vsel %vm83_vm0, %v101_v14, 0.0 }
  0x8d   :  { %104 = vadd.xlane.f32.xlu1 %v103_v15  ;;  %v89_v16 = vpop.xlane.xlu0 %88 }
  0x8e   :  { %v98_v17 = vmul.f32 %v2112_v10, %v89_v16 }
  0x90   :  { %v100_v18 = vsub.f32 %v80_v1, %v98_v17 }
  0x92   :  { %v102_v19 = vmul.f32 %v100_v18, %v100_v18 }
  0x94   :  { %v106_v20 = vsel %vm83_vm0, %v102_v19, 0.0 }
  0x95   :  { %107 = vadd.xlane.f32.xlu1 %v106_v20 }
 0x100   :  { %v105_v25 = vpop.xlane.xlu1 %104 }
 0x101   :  { %v109_v26 = vmul.f32 %v105_v25, %v2112_v10 }
 0x103   :  { %v111_v27 = vadd.f32 1e-12, %v109_v26 }
 0x105   :  { %1853 = vrsqrt.f32 %v111_v27  ;;  %vm119_vm3 = vweird.f32 %v111_v27 }
 0x108   :  { %v108_v28 = vpop.xlane.xlu1 %107 }
 0x109   :  { %v110_v29 = vmul.f32 %v108_v28, %v2112_v10 }
 0x10b   :  { %v1854_v30 = vpop.eup %1853  ;;  %v112_v31 = vadd.f32 1e-12, %v110_v29 }
 0x10c   :  { %v114_v32 = vmul.f32 %v1854_v30, %v111_v27  ;;  %vm120_vm2 = vweird.f32 %v1854_v30 }
 0x10d   :  { %1855 = vrsqrt.f32 %v112_v31  ;;  %vm121_vm4 = vmor %vm119_vm3, %vm120_vm2  ;;  %vm129_vm5 = vweird.f32 %v112_v31 }
 0x10e   :  { %v115_v33 = vmul.f32 %v1854_v30, %v114_v32 }
 0x110   :  { %v116_v34 = vmul.f32 0.5, %v115_v33 }
 0x112   :  { %v117_v35 = vsub.f32 1.5, %v116_v34 }
 0x113   :  { %v1856_v36 = vpop.eup %1855 }
 0x114   :  { %v118_v37 = vmul.f32 %v1854_v30, %v117_v35  ;;  %v124_v38 = vmul.f32 %v1856_v36, %v112_v31  ;;  %vm130_vm6 = vweird.f32 %v1856_v36 }
 0x115   :  { %vm131_vm7 = vmor %vm129_vm5, %vm130_vm6 }
 0x116   :  { %v122_v40 = vsel %vm121_vm4, %v1854_v30, %v118_v37  ;;  %v125_v41 = vmul.f32 %v1856_v36, %v124_v38 }
 0x117   :  { %v133_v42 = vmul.f32 %v122_v40, %v99_v13 }
 0x118   :  { %v126_v44 = vmul.f32 0.5, %v125_v41 }
 0x119   :  { %v138_v45 = vmul.f32 %v1828_v39, %v133_v42 }
 0x11a   :  { %v127_v46 = vsub.f32 1.5, %v126_v44 }
 0x11b   :  { %v2138_v47 = vadd.f32 %v1829_v43, %v138_v45 }
 0x11c   :  { %v128_v48 = vmul.f32 %v1856_v36, %v127_v46 }
 0x11d   :  { %1720 = vmatmul.msk.f32.vlgmr.msra.gmra.mxu0 %vm83_vm0, %v2138_v47 }
 0x11e   :  { %v132_v49 = vsel %vm131_vm7, %v1856_v36, %v128_v48 }
 0x11f   :  { %v134_v50 = vmul.f32 %v132_v49, %v100_v18 }
 0x121   :  { %v139_v51 = vmul.f32 %v1828_v39, %v134_v50 }
 0x123   :  { %v2142_v52 = vadd.f32 %v1829_v43, %v139_v51 }
 0x125   :  { %1721 = vmatmul.msk.f32.gmra.mxu0 %vm83_vm0, %v2142_v52 }
 0x19a   :  { %v176_v54 = vpop.f32.mrf.mxu0 }
 0x19b   :  { %v2149_v55 = vadd.f32 %v1830_v53, %v176_v54 }
 0x19d   :  { %354 = vrot.lane.b32.xlu0 %v2149_v55, %s2589_s30  ;;  %187 = vrot.lane.b32.xlu2 %v2149_v55, %s2593_s3 }
 0x19e   :  { %352 = vrot.lane.b32.xlu1 %v2149_v55, %s2591_s25 }
 0x1a2   :  { %v179_v56 = vpop.f32.mrf.mxu0 }
 0x1a3   :  { %v2157_v57 = vadd.f32 %v1830_v53, %v179_v56 }
 0x1a5   :  { %215 = vrot.lane.b32.xlu2 %v2157_v57, %s2593_s3  ;;  %v1806_v35 = vpack.i.bf16 %v2157_v57, %v2149_v55 }
 0x1ad   :  { %382 = vrot.lane.b32.xlu2 %v2157_v57, %s2589_s30  ;;  %s2617_s30 = smov 48  }
 0x1b5   :  { %380 = vrot.lane.b32.xlu2 %v2157_v57, %s2591_s25 }
 0x1f7   :  { %v188_v58 = vpop.permute.xlu2 %187 }
 0x1f8   :  { %1722 = vmatpush.xpose.msk.msrb.mxu0 %vm189_vm8, %v188_v58 }
 0x1fb   :  { %1723 = vmatmul.msk.f32.vlgmr.msrb.gmra.mxu0 %vm189_vm8, %v2149_v55 }
 0x1ff   :  { %v216_v59 = vpop.permute.xlu2 %215 }
 0x200   :  { %1724 = vmatpush.xpose.msk.msra.mxu2 %vm189_vm8, %v216_v59 }
 0x203   :  { %1725 = vmatmul.msk.f32.vlgmr.msra.gmra.mxu2 %vm189_vm8, %v2157_v57 }
 0x207   :  { %v383_v60 = vpop.permute.xlu2 %382 }
 0x208   :  { %1730 = vmatpush.xpose.msk.msrb.mxu2 %vm189_vm8, %v383_v60 }
 0x20f   :  { %v381_v61 = vpop.permute.xlu2 %380  ;;  %v355_v62 = vpop.permute.xlu0 %354 }
 0x210   :  { %1728 = vmatpush.xpose.msk.msra.mxu1 %vm189_vm8, %v355_v62  ;;  %1731 = vmatmul.msk.f32.vlgmr.msrb.gmra.mxu2 %vm189_vm8, %v381_v61  ;;  %v353_v63 = vpop.permute.xlu1 %352 }
 0x213   :  { %1729 = vmatmul.msk.f32.vlgmr.msra.gmra.mxu1 %vm189_vm8, %v353_v63 }
 0x278   :  { %v211_v1 = vpop.f32.mrf.mxu0 }
 0x279   :  { %v241_v2 = vmul.f32 0.25, %v211_v1 }
 0x27b   :  { %v249_v3 = vadd.f32 %v2178_v0, %v241_v2 }
 0x27d   :  { %v252_v4 = vsel %vm251_vm9, %v249_v3, -inf }
 0x27e   :  { %253 = vmax.xlane.f32.xlu2 %v252_v4 }
 0x286   :  { %v238_v6 = vpop.f32.mrf.mxu2 }
 0x287   :  { %v242_v7 = vmul.f32 0.25, %v238_v6 }
 0x289   :  { %v250_v8 = vadd.f32 %v2185_v5, %v242_v7 }
 0x28b   :  { %v255_v9 = vsel %vm251_vm9, %v250_v8, -inf }
 0x28c   :  { %256 = vmax.xlane.f32.xlu0 %v255_v9 }
 0x290   :  { %v377_v11 = vpop.f32.mrf.mxu1 }
 0x291   :  { %v408_v12 = vmul.f32 0.25, %v377_v11 }
 0x293   :  { %v405_v13 = vpop.f32.mrf.mxu2  ;;  %v410_v14 = vadd.f32 %v2178_v0, %v408_v12 }
 0x294   :  { %v409_v15 = vmul.f32 0.25, %v405_v13 }
 0x295   :  { %v412_v16 = vsel %vm251_vm9, %v410_v14, -inf }
 0x296   :  { %413 = vmax.xlane.f32.xlu1 %v412_v16  ;;  %v411_v17 = vadd.f32 %v2185_v5, %v409_v15 }
 0x298   :  { %v415_v18 = vsel %vm251_vm9, %v411_v17, -inf }
 0x299   :  { %416 = vmax.xlane.f32.xlu2 %v415_v18 }
 0x2f1   :  { %v254_v19 = vpop.xlane.xlu2 %253 }
 0x2f2   :  { %v258_v20 = vsub.f32 %v249_v3, %v254_v19 }
 0x2f4   :  { %v260_v21 = vmul.f32 1.442695, %v258_v20 }
 0x2f6   :  { %1857 = vpow2.f32 %v260_v21 }
 0x2fc   :  { %v1858_v22 = vpop.eup %1857 }
 0x2fd   :  { %v264_v23 = vsel %vm251_vm9, %v1858_v22, 0.0 }
 0x2fe   :  { %265 = vadd.xlane.f32.xlu0 %v264_v23 }
 0x2ff   :  { %v257_v24 = vpop.xlane.xlu0 %256 }
 0x300   :  { %v259_v25 = vsub.f32 %v250_v8, %v257_v24 }
 0x302   :  { %v262_v26 = vmul.f32 1.442695, %v259_v25 }
 0x304   :  { %1859 = vpow2.f32 %v262_v26 }
 0x309   :  { %v414_v27 = vpop.xlane.xlu1 %413 }
 0x30a   :  { %v2194_v28 = vpop.eup %1859  ;;  %v418_v29 = vsub.f32 %v410_v14, %v414_v27  ;;  %v183_v14 = vld [vmem:[%s2610_s29 + $0x8] sm:$0xff] }
 0x30b   :  { %v267_v30 = vsel %vm251_vm9, %v2194_v28, 0.0 }
 0x30c   :  { %v420_v31 = vmul.f32 1.442695, %v418_v29  ;;  %268 = vadd.xlane.f32.xlu2 %v267_v30  ;;  %v417_v32 = vpop.xlane.xlu2 %416 }
 0x30d   :  { %v419_v33 = vsub.f32 %v411_v17, %v417_v32 }
 0x30e   :  { %1861 = vpow2.f32 %v420_v31 }
 0x30f   :  { %v422_v34 = vmul.f32 1.442695, %v419_v33 }
 0x311   :  { %1863 = vpow2.f32 %v422_v34 }
 0x312   :  { %1807 = vrot.lane.b32.xlu0 %v1806_v35, %s2588_s27  ;;  %v182_v35 = vld [vmem:[%s2610_s29] sm:$0xff]  ;;  %s2613_s27 = smov 96  }
 0x314   :  { %v2201_v36 = vpop.eup %1861 }
 0x315   :  { %v424_v37 = vsel %vm251_vm9, %v2201_v36, 0.0 }
 0x316   :  { %425 = vadd.xlane.f32.xlu1 %v424_v37  ;;  %v185_v37 = vld [vmem:[%s2610_s29 + $0x18] sm:$0xff] }
 0x317   :  { %v2205_v38 = vpop.eup %1863  ;;  %532 = vmatpush.msra.mxu2 %v185_v37  ;;  %v696_v37 = vld [vmem:[%s2567_s12 + $0x38] sm:$0xff] }
 0x318   :  { %v427_v39 = vsel %vm251_vm9, %v2205_v38, 0.0 }
 0x319   :  { %428 = vadd.xlane.f32.xlu2 %v427_v39 }
 0x32f   :  { %460 = vrot.lane.b32.xlu1 %v2149_v55, %s2587_s28 }
 0x331   :  { %486 = vrot.lane.b32.xlu2 %v2157_v57, %s2587_s28  ;;  %s2614_s28 = smov 112  }
 0x371   :  { %v266_v40 = vpop.xlane.xlu0 %265 }
 0x372   :  { %1865 = vrcp.f32 %v266_v40  ;;  %v281_v45 = vand.u32 2147483648, %v266_v40  ;;  %v279_v46 = vand.u32 2147483647, %v266_v40  ;;  %vm275_vm11 = vweird.f32 %v266_v40 }
 0x374   :  { %v282_v50 = vor.u32 1.1754944e-38, %v281_v45  ;;  %vm280_vm13 = vcmp.eq.f32.partialorder %v279_v46, 8.507059e+37 }
 0x378   :  { %v1866_v41 = vpop.eup %1865 }
 0x379   :  { %v271_v42 = vmul.f32 %v1866_v41, %v266_v40  ;;  %vm276_vm10 = vweird.f32 %v1866_v41 }
 0x37a   :  { %vm277_vm12 = vmor %vm275_vm11, %vm276_vm10 }
 0x37b   :  { %v272_v43 = vsub.f32 1.0, %v271_v42  ;;  %v1833_v42 = vld [vmem:[%s2611_s4] ss:$0 sm:$0xff] }
 0x37d   :  { %v273_v44 = vmul.f32 %v1866_v41, %v272_v43 }
 0x37f   :  { %v269_v48 = vpop.xlane.xlu2 %268  ;;  %v274_v49 = vadd.f32 %v1866_v41, %v273_v44 }
 0x380   :  { %1867 = vrcp.f32 %v269_v48  ;;  %v296_v62 = vand.u32 2147483648, %v269_v48  ;;  %v294_v1 = vand.u32 2147483647, %v269_v48  ;;  %vm290_vm15 = vweird.f32 %v269_v48 }
 0x381   :  { %v278_v51 = vsel %vm277_vm12, %v1866_v41, %v274_v49 }
 0x382   :  { %v283_v53 = vsel %vm280_vm13, %v282_v50, %v278_v51  ;;  %v297_v4 = vor.u32 1.1754944e-38, %v296_v62  ;;  %vm295_vm2 = vcmp.eq.f32.partialorder %v294_v1, 8.507059e+37 }
 0x383   :  { %v284_v58 = vmul.f32 %v1858_v22, %v283_v53 }
 0x384   :  { %v1808_v54 = vpop.permute.xlu0 %1807 }
 0x385   :  { %v1809_v55 = vunpack.i.l.bf16 %v1808_v54  ;;  %v1810_v56 = vunpack.i.h.bf16 %v1808_v54 }
 0x386   :  { %v1868_v57 = vpop.eup %1867 }
 0x387   :  { %v286_v59 = vmul.f32 %v1868_v57, %v269_v48  ;;  %321 = vmatpush.msra.mxu3 %v1809_v55  ;;  %vm291_vm14 = vweird.f32 %v1868_v57 }
 0x388   :  { %1726 = vmatmul.msk.f32.vlgmr.msra.gmra.mxu3 %vm251_vm9, %v284_v58  ;;  %vm292_vm1 = vmor %vm290_vm15, %vm291_vm14 }
 0x389   :  { %v287_v60 = vsub.f32 1.0, %v286_v59  ;;  %347 = vmatpush.msrb.mxu3 %v1810_v56  ;;  %v426_v61 = vpop.xlane.xlu1 %425 }
 0x38a   :  { %1869 = vrcp.f32 %v426_v61  ;;  %v441_v21 = vand.u32 2147483648, %v426_v61  ;;  %vm435_vm5 = vweird.f32 %v426_v61  ;;  %v439_v24 = vand.u32 2147483647, %v426_v61 }
 0x38b   :  { %v288_v63 = vmul.f32 %v1868_v57, %v287_v60 }
 0x38c   :  { %v429_v2 = vpop.xlane.xlu2 %428  ;;  %vm440_vm12 = vcmp.eq.f32.partialorder %v439_v24, 8.507059e+37 }
 0x38d   :  { %v289_v3 = vadd.f32 %v1868_v57, %v288_v63  ;;  %1871 = vrcp.f32 %v429_v2  ;;  %v456_v20 = vand.u32 2147483648, %v429_v2  ;;  %v454_v23 = vand.u32 2147483647, %v429_v2 }
 0x38e   :  { %vm450_vm7 = vweird.f32 %v429_v2 }
 0x38f   :  { %v293_v6 = vsel %vm292_vm1, %v1868_v57, %v289_v3  ;;  %v457_v27 = vor.u32 1.1754944e-38, %v456_v20  ;;  %vm455_vm11 = vcmp.eq.f32.partialorder %v454_v23, 8.507059e+37  ;;  %v636_v3 = vld [vmem:[%s2565_s10 + $0x10] sm:$0xff] }
 0x390   :  { %v1870_v7 = vpop.eup %1869  ;;  %v298_v8 = vsel %vm295_vm2, %v297_v4, %v293_v6  ;;  %v635_v4 = vld [vmem:[%s2565_s10 + $0x8] sm:$0xff]  ;;  %v634_v6 = vld [vmem:[%s2565_s10] sm:$0xff] }
 0x391   :  { %v431_v9 = vmul.f32 %v1870_v7, %v426_v61  ;;  %v299_v11 = vmul.f32 %v2194_v28, %v298_v8  ;;  %vm436_vm3 = vweird.f32 %v1870_v7  ;;  %v442_v28 = vor.u32 1.1754944e-38, %v441_v21 }
 0x392   :  { %vm437_vm6 = vmor %vm435_vm5, %vm436_vm3 }
 0x393   :  { %v1872_v12 = vpop.eup %1871  ;;  %v432_v13 = vsub.f32 1.0, %v431_v9  ;;  %1727 = vmatmul.msk.f32.vlgmr.msrb.gmra.mxu3 %vm251_vm9, %v299_v11 }
 0x394   :  { %v446_v15 = vmul.f32 %v1872_v12, %v429_v2  ;;  %v487_v16 = vpop.permute.xlu2 %486  ;;  %vm451_vm4 = vweird.f32 %v1872_v12 }
 0x395   :  { %v433_v17 = vmul.f32 %v1870_v7, %v432_v13  ;;  %507 = vmatpush.msrb.mxu1 %v487_v16  ;;  %vm452_vm10 = vmor %vm450_vm7, %vm451_vm4  ;;  %vm701_vm4 = vcmask 523264  }
 0x396   :  { %v447_v18 = vsub.f32 1.0, %v446_v15 }
 0x397   :  { %561 = vmatpush.msra.mxu1 %v183_v14  ;;  %v434_v19 = vadd.f32 %v1870_v7, %v433_v17 }
 0x398   :  { %v448_v22 = vmul.f32 %v1872_v12, %v447_v18 }
 0x399   :  { %v438_v26 = vsel %vm437_vm6, %v1870_v7, %v434_v19  ;;  %562 = vmatpush.msra.mxu1 %v182_v35 }
 0x39a   :  { %v449_v25 = vadd.f32 %v1872_v12, %v448_v22  ;;  %v443_v31 = vsel %vm440_vm12, %v442_v28, %v438_v26  ;;  %v1834_v22 = vld [vmem:[%s2612_s1] ss:$0 sm:$0xff] }
 0x39b   :  { %v444_v34 = vmul.f32 %v2201_v36, %v443_v31  ;;  %v1835_v26 = vld [vmem:[%s2564_s9] ss:$0 sm:$0xff] }
 0x39c   :  { %v453_v29 = vsel %vm452_vm10, %v1872_v12, %v449_v25 }
 0x39d   :  { %v458_v30 = vsel %vm455_vm11, %v457_v27, %v453_v29 }
 0x39e   :  { %v459_v32 = vmul.f32 %v2205_v38, %v458_v30  ;;  %v184_v38 = vld [vmem:[%s2610_s29 + $0x10] sm:$0xff] }
 0x39f   :  { %533 = vmatpush.msra.mxu2 %v184_v38  ;;  %v695_v38 = vld [vmem:[%s2567_s12 + $0x30] sm:$0xff] }
 0x3a0   :  { %1733 = vmatmul.msk.f32.vlgmr.msrb.gmra.mxu1 %vm251_vm9, %v459_v32 }
 0x3a1   :  { %v461_v33 = vpop.permute.xlu1 %460  ;;  %716 = vmatpush.msrb.mxu1 %v696_v37 }
 0x3a2   :  { %481 = vmatpush.msra.mxu3 %v461_v33 }
 0x3a3   :  { %1732 = vmatmul.msk.f32.vlgmr.msra.gmra.mxu3 %vm251_vm9, %v444_v34  ;;  %717 = vmatpush.msrb.mxu1 %v695_v38 }
 0x40b   :  { %v323_v39 = vpop.f32.mrf.mxu3 }
 0x40c   :  { %1736 = vmatmul.msk.f32.vlgmr.msra.gmra.mxu1 %vm189_vm8, %v323_v39  ;;  %v694_v39 = vld [vmem:[%s2567_s12 + $0x28] sm:$0xff] }
 0x40d   :  { %718 = vmatpush.msrb.mxu1 %v694_v39 }
 0x416   :  { %v349_v36 = vpop.f32.mrf.mxu3 }
 0x417   :  { %1737 = vmatmul.msk.f32.gmra.mxu1 %vm189_vm8, %v349_v36  ;;  %v693_v36 = vld [vmem:[%s2567_s12 + $0x20] sm:$0xff] }
 0x418   :  { %719 = vmatpush.msrb.mxu1 %v693_v36 }
 0x41d   :  { %v509_v41 = vpop.f32.mrf.mxu1 }
 0x426   :  { %v483_v40 = vpop.f32.mrf.mxu3 }
 0x427   :  { %1734 = vmatmul.msk.f32.vlgmr.msra.gmra.mxu2 %vm189_vm8, %v483_v40  ;;  %v692_v40 = vld [vmem:[%s2567_s12 + $0x18] sm:$0xff] }
 0x428   :  { %720 = vmatpush.msrb.mxu1 %v692_v40 }
 0x42f   :  { %1735 = vmatmul.msk.f32.gmra.mxu2 %vm189_vm8, %v509_v41  ;;  %v691_v41 = vld [vmem:[%s2567_s12 + $0x10] sm:$0xff] }
 0x430   :  { %721 = vmatpush.msrb.mxu1 %v691_v41 }
 0x489   :  { %v564_v43 = vpop.f32.mrf.mxu1 }
 0x494   :  { %v567_v50 = vpop.f32.mrf.mxu1 }
 0x4aa   :  { %v535_v44 = vpop.f32.mrf.mxu2 }
 0x4ab   :  { %v565_v45 = vadd.f32 %v564_v43, %v535_v44  ;;  %v689_v43 = vld [vmem:[%s2567_s12] sm:$0xff] }
 0x4ac   :  { %v1836_v44 = vld [vmem:[%s2566_s11] ss:$0 sm:$0xff] }
 0x4ad   :  { %v574_v46 = vadd.f32 %v1833_v42, %v565_v45 }
 0x4af   :  { %v576_v48 = vadd.f32 %v574_v46, %v2138_v47 }
 0x4b1   :  { %v580_v49 = vsel %vm83_vm0, %v576_v48, 0.0 }
 0x4b2   :  { %581 = vadd.xlane.f32.xlu0 %v580_v49  ;;  %v538_v51 = vpop.f32.mrf.mxu2 }
 0x4b3   :  { %v568_v53 = vadd.f32 %v567_v50, %v538_v51 }
 0x4b5   :  { %v575_v54 = vadd.f32 %v1833_v42, %v568_v53  ;;  %v690_v42 = vld [vmem:[%s2567_s12 + $0x8] sm:$0xff] }
 0x4b6   :  { %722 = vmatpush.msrb.mxu1 %v690_v42 }
 0x4b7   :  { %v577_v55 = vadd.f32 %v575_v54, %v2142_v52  ;;  %v637_v52 = vld [vmem:[%s2565_s10 + $0x18] sm:$0xff] }
 0x4b8   :  { %660 = vmatpush.msrb.mxu3 %v637_v52  ;;  %723 = vmatpush.msrb.mxu1 %v689_v43  ;;  %v1838_v43 = vld [vmem:[%s2569_s14] ss:$0 sm:$0xff] }
 0x4b9   :  { %v583_v56 = vsel %vm83_vm0, %v577_v55, 0.0 }
 0x4ba   :  { %584 = vadd.xlane.f32.xlu1 %v583_v56  ;;  %661 = vmatpush.msrb.mxu3 %v636_v3 }
 0x4bc   :  { %662 = vmatpush.msrb.mxu3 %v635_v4  ;;  %v1837_v4 = vld [vmem:[%s2568_s13] ss:$0 sm:$0xff] }
 0x4be   :  { %663 = vmatpush.msrb.mxu3 %v634_v6 }
 0x525   :  { %v582_v57 = vpop.xlane.xlu0 %581 }
 0x526   :  { %v586_v58 = vmul.f32 %v582_v57, %v2112_v10 }
 0x528   :  { %v588_v59 = vsub.f32 %v576_v48, %v586_v58 }
 0x52a   :  { %v590_v60 = vmul.f32 %v588_v59, %v588_v59 }
 0x52c   :  { %v592_v61 = vsel %vm83_vm0, %v590_v60, 0.0 }
 0x52d   :  { %593 = vadd.xlane.f32.xlu2 %v592_v61  ;;  %v585_v47 = vpop.xlane.xlu1 %584 }
 0x52e   :  { %v587_v62 = vmul.f32 %v585_v47, %v2112_v10 }
 0x530   :  { %v589_v63 = vsub.f32 %v577_v55, %v587_v62 }
 0x532   :  { %v591_v1 = vmul.f32 %v589_v63, %v589_v63 }
 0x534   :  { %v595_v2 = vsel %vm83_vm0, %v591_v1, 0.0 }
 0x535   :  { %596 = vadd.xlane.f32.xlu0 %v595_v2 }
 0x5a0   :  { %v594_v7 = vpop.xlane.xlu2 %593 }
 0x5a1   :  { %v598_v8 = vmul.f32 %v594_v7, %v2112_v10 }
 0x5a3   :  { %v600_v9 = vadd.f32 1e-12, %v598_v8 }
 0x5a5   :  { %1873 = vrsqrt.f32 %v600_v9  ;;  %vm608_vm14 = vweird.f32 %v600_v9 }
 0x5a8   :  { %v597_v11 = vpop.xlane.xlu0 %596 }
 0x5a9   :  { %v599_v12 = vmul.f32 %v597_v11, %v2112_v10 }
 0x5ab   :  { %v1874_v13 = vpop.eup %1873  ;;  %v601_v14 = vadd.f32 1e-12, %v599_v12 }
 0x5ac   :  { %v603_v15 = vmul.f32 %v1874_v13, %v600_v9  ;;  %vm609_vm13 = vweird.f32 %v1874_v13 }
 0x5ad   :  { %1875 = vrsqrt.f32 %v601_v14  ;;  %vm610_vm15 = vmor %vm608_vm14, %vm609_vm13  ;;  %vm618_vm2 = vweird.f32 %v601_v14 }
 0x5ae   :  { %v604_v16 = vmul.f32 %v1874_v13, %v603_v15 }
 0x5b0   :  { %v605_v17 = vmul.f32 0.5, %v604_v16 }
 0x5b2   :  { %v606_v18 = vsub.f32 1.5, %v605_v17 }
 0x5b3   :  { %v1876_v19 = vpop.eup %1875 }
 0x5b4   :  { %v607_v20 = vmul.f32 %v1874_v13, %v606_v18  ;;  %v613_v21 = vmul.f32 %v1876_v19, %v601_v14  ;;  %vm619_vm1 = vweird.f32 %v1876_v19 }
 0x5b5   :  { %vm620_vm3 = vmor %vm618_vm2, %vm619_vm1 }
 0x5b6   :  { %v611_v23 = vsel %vm610_vm15, %v1874_v13, %v607_v20  ;;  %v614_v24 = vmul.f32 %v1876_v19, %v613_v21 }
 0x5b7   :  { %v622_v25 = vmul.f32 %v611_v23, %v588_v59 }
 0x5b8   :  { %v615_v27 = vmul.f32 0.5, %v614_v24 }
 0x5b9   :  { %v627_v28 = vmul.f32 %v1834_v22, %v622_v25  ;;  %v1745_v25 = vld [vmem:[%s2605_s0 + $0x38] sm:$0xff] }
 0x5ba   :  { %v616_v29 = vsub.f32 1.5, %v615_v27  ;;  %817 = vmatpush.msrb.mxu2 %v1745_v25  ;;  %v1743_v27 = vld [vmem:[%s2605_s0 + $0x28] sm:$0xff] }
 0x5bb   :  { %v632_v30 = vadd.f32 %v1835_v26, %v627_v28  ;;  %v1742_v28 = vld [vmem:[%s2605_s0 + $0x20] sm:$0xff] }
 0x5bc   :  { %v617_v31 = vmul.f32 %v1876_v19, %v616_v29 }
 0x5bd   :  { %1738 = vmatmul.msk.f32.vlgmr.msrb.gmra.mxu3 %vm83_vm0, %v632_v30 }
 0x5be   :  { %v621_v32 = vsel %vm620_vm3, %v1876_v19, %v617_v31 }
 0x5bf   :  { %v623_v33 = vmul.f32 %v621_v32, %v589_v63 }
 0x5c1   :  { %v628_v34 = vmul.f32 %v1834_v22, %v623_v33 }
 0x5c3   :  { %v633_v35 = vadd.f32 %v1835_v26, %v628_v34  ;;  %v1744_v26 = vld [vmem:[%s2605_s0 + $0x30] sm:$0xff] }
 0x5c4   :  { %818 = vmatpush.msrb.mxu2 %v1744_v26 }
 0x5c5   :  { %1739 = vmatmul.msk.f32.gmra.mxu3 %vm83_vm0, %v633_v35 }
 0x5c6   :  { %819 = vmatpush.msrb.mxu2 %v1743_v27 }
 0x5c8   :  { %820 = vmatpush.msrb.mxu2 %v1742_v28 }
 0x640   :  { %v665_v45 = vpop.f32.mrf.mxu3 }
 0x641   :  { %v666_v46 = vadd.f32 %v1836_v44, %v665_v45 }
 0x643   :  { %v673_v48 = vmul.f32 0.044715, %v666_v46  ;;  %v671_v47 = vmul.f32 0.5, %v666_v46 }
 0x645   :  { %v675_v49 = vmul.f32 %v673_v48, %v666_v46  ;;  %v1839_v48 = vld [vmem:[%s2570_s15] ss:$0 sm:$0xff] }
 0x647   :  { %v677_v50 = vmul.f32 %v675_v49, %v666_v46 }
 0x648   :  { %v668_v51 = vpop.f32.mrf.mxu3 }
 0x649   :  { %v679_v53 = vadd.f32 %v677_v50, %v666_v46  ;;  %v669_v54 = vadd.f32 %v1836_v44, %v668_v51 }
 0x64b   :  { %v681_v55 = vmul.f32 0.7978846, %v679_v53  ;;  %v674_v56 = vmul.f32 0.044715, %v669_v54  ;;  %v672_v2 = vmul.f32 0.5, %v669_v54 }
 0x64d   :  { %1877 = vtanh.f32 %v681_v55  ;;  %v676_v57 = vmul.f32 %v674_v56, %v669_v54 }
 0x64f   :  { %v678_v58 = vmul.f32 %v676_v57, %v669_v54 }
 0x651   :  { %v680_v59 = vadd.f32 %v678_v58, %v669_v54 }
 0x653   :  { %v1878_v60 = vpop.eup %1877  ;;  %v682_v61 = vmul.f32 0.7978846, %v680_v59  ;;  %v1840_v59 = vld [vmem:[%s2608_s7 + $0x1] ss:$0 sm:$0xff]  ;;  %s2616_s7 = smov 64  }
 0x654   :  { %v685_v62 = vadd.f32 1.0, %v1878_v60 }
 0x655   :  { %1879 = vtanh.f32 %v682_v61 }
 0x656   :  { %v687_v63 = vmul.f32 %v685_v62, %v671_v47 }
 0x658   :  { %1740 = vmatmul.msk.f32.vlgmr.msrb.gmra.mxu1 %vm701_vm4, %v687_v63 }
 0x65b   :  { %v1880_v1 = vpop.eup %1879 }
 0x65c   :  { %v686_v52 = vadd.f32 1.0, %v1880_v1 }
 0x65e   :  { %v688_v3 = vmul.f32 %v686_v52, %v672_v2 }
 0x660   :  { %1741 = vmatmul.msk.f32.gmra.mxu1 %vm701_vm4, %v688_v3 }
 0x6d5   :  { %v725_v6 = vpop.f32.mrf.mxu1 }
 0x6d6   :  { %v726_v7 = vadd.f32 %v1837_v4, %v725_v6 }
 0x6d8   :  { %v731_v8 = vadd.f32 %v726_v7, %v632_v30 }
 0x6da   :  { %v735_v9 = vsel %vm83_vm0, %v731_v8, 0.0 }
 0x6db   :  { %736 = vadd.xlane.f32.xlu0 %v735_v9 }
 0x6dd   :  { %v728_v11 = vpop.f32.mrf.mxu1 }
 0x6de   :  { %v729_v12 = vadd.f32 %v1837_v4, %v728_v11 }
 0x6e0   :  { %v732_v13 = vadd.f32 %v729_v12, %v633_v35 }
 0x6e2   :  { %v738_v14 = vsel %vm83_vm0, %v732_v13, 0.0 }
 0x6e3   :  { %739 = vadd.xlane.f32.xlu1 %v738_v14 }
 0x74e   :  { %v737_v15 = vpop.xlane.xlu0 %736 }
 0x74f   :  { %v741_v16 = vmul.f32 %v737_v15, %v2112_v10 }
 0x751   :  { %v743_v17 = vsub.f32 %v731_v8, %v741_v16 }
 0x753   :  { %v745_v18 = vmul.f32 %v743_v17, %v743_v17 }
 0x755   :  { %v747_v19 = vsel %vm83_vm0, %v745_v18, 0.0 }
 0x756   :  { %v740_v20 = vpop.xlane.xlu1 %739  ;;  %748 = vadd.xlane.f32.xlu2 %v747_v19 }
 0x757   :  { %v742_v21 = vmul.f32 %v740_v20, %v2112_v10 }
 0x759   :  { %v744_v22 = vsub.f32 %v732_v13, %v742_v21 }
 0x75b   :  { %v746_v23 = vmul.f32 %v744_v22, %v744_v22 }
 0x75d   :  { %v750_v24 = vsel %vm83_vm0, %v746_v23, 0.0 }
 0x75e   :  { %751 = vadd.xlane.f32.xlu0 %v750_v24 }
 0x7c9   :  { %v749_v29 = vpop.xlane.xlu2 %748 }
 0x7ca   :  { %v753_v30 = vmul.f32 %v749_v29, %v2112_v10 }
 0x7cc   :  { %v755_v31 = vadd.f32 1e-12, %v753_v30 }
 0x7ce   :  { %1881 = vrsqrt.f32 %v755_v31  ;;  %vm763_vm6 = vweird.f32 %v755_v31 }
 0x7d1   :  { %v752_v32 = vpop.xlane.xlu0 %751 }
 0x7d2   :  { %v754_v33 = vmul.f32 %v752_v32, %v2112_v10 }
 0x7d4   :  { %v1882_v34 = vpop.eup %1881  ;;  %v756_v35 = vadd.f32 1e-12, %v754_v33 }
 0x7d5   :  { %v758_v37 = vmul.f32 %v1882_v34, %v755_v31  ;;  %vm764_vm5 = vweird.f32 %v1882_v34 }
 0x7d6   :  { %1883 = vrsqrt.f32 %v756_v35  ;;  %vm765_vm7 = vmor %vm763_vm6, %vm764_vm5  ;;  %vm773_vm11 = vweird.f32 %v756_v35 }
 0x7d7   :  { %v759_v38 = vmul.f32 %v1882_v34, %v758_v37 }
 0x7d9   :  { %v760_v39 = vmul.f32 0.5, %v759_v38 }
 0x7db   :  { %v761_v36 = vsub.f32 1.5, %v760_v39 }
 0x7dc   :  { %v1884_v40 = vpop.eup %1883 }
 0x7dd   :  { %v762_v41 = vmul.f32 %v1882_v34, %v761_v36  ;;  %v768_v42 = vmul.f32 %v1884_v40, %v756_v35  ;;  %vm774_vm10 = vweird.f32 %v1884_v40 }
 0x7de   :  { %vm775_vm12 = vmor %vm773_vm11, %vm774_vm10 }
 0x7df   :  { %v766_v44 = vsel %vm765_vm7, %v1882_v34, %v762_v41  ;;  %v769_v45 = vmul.f32 %v1884_v40, %v768_v42 }
 0x7e0   :  { %v777_v46 = vmul.f32 %v766_v44, %v743_v17 }
 0x7e1   :  { %v770_v49 = vmul.f32 0.5, %v769_v45 }
 0x7e2   :  { %v782_v50 = vmul.f32 %v1838_v43, %v777_v46 }
 0x7e3   :  { %v771_v51 = vsub.f32 1.5, %v770_v49 }
 0x7e4   :  { %v2327_v53 = vadd.f32 %v1839_v48, %v782_v50 }
 0x7e5   :  { %v772_v54 = vmul.f32 %v1884_v40, %v771_v51 }
 0x7e6   :  { %1747 = vmatmul.msk.f32.vlgmr.msrb.gmra.mxu2 %vm83_vm0, %v2327_v53 }
 0x7e7   :  { %v776_v55 = vsel %vm775_vm12, %v1884_v40, %v772_v54 }
 0x7e8   :  { %v778_v56 = vmul.f32 %v776_v55, %v744_v22 }
 0x7ea   :  { %v783_v57 = vmul.f32 %v1838_v43, %v778_v56 }
 0x7ec   :  { %v2331_v58 = vadd.f32 %v1839_v48, %v783_v57  ;;  %v1750_v48 = vld [vmem:[%s2610_s29 + $0x28] sm:$0xff] }
 0x7ee   :  { %1748 = vmatmul.msk.f32.gmra.mxu2 %vm83_vm0, %v2331_v58 }
 0x869   :  { %v822_v60 = vpop.f32.mrf.mxu2 }
 0x86a   :  { %v2338_v61 = vadd.f32 %v1840_v59, %v822_v60 }
 0x86c   :  { %834 = vrot.lane.b32.xlu2 %v2338_v61, %s2613_s27 }
 0x871   :  { %v825_v47 = vpop.f32.mrf.mxu2 }
 0x872   :  { %v2342_v62 = vadd.f32 %v1840_v59, %v825_v47 }
 0x874   :  { %991 = vrot.lane.b32.xlu2 %v2338_v61, %s2614_s28  ;;  %1021 = vrot.lane.b32.xlu0 %v2342_v62, %s2615_s5  ;;  %v1811_v41 = vpack.i.bf16 %v2342_v62, %v2338_v61 }
 0x875   :  { %861 = vrot.lane.b32.xlu1 %v2342_v62, %s2613_s27 }
 0x87c   :  { %993 = vrot.lane.b32.xlu0 %v2338_v61, %s2615_s5 }
 0x87d   :  { %1019 = vrot.lane.b32.xlu1 %v2342_v62, %s2614_s28 }
 0x8c6   :  { %v835_v63 = vpop.permute.xlu2 %834 }
 0x8c7   :  { %1753 = vmatpush.xpose.msk.msra.mxu0 %vm189_vm8, %v835_v63 }
 0x8ca   :  { %1754 = vmatmul.msk.f32.vlgmr.msra.gmra.mxu0 %vm189_vm8, %v2338_v61 }
 0x8ce   :  { %v992_v4 = vpop.permute.xlu2 %991 }
 0x8e6   :  { %v1022_v1 = vpop.permute.xlu0 %1021 }
 0x8e7   :  { %v862_v2 = vpop.permute.xlu1 %861  ;;  %1761 = vmatpush.xpose.msk.msra.mxu2 %vm189_vm8, %v1022_v1 }
 0x8e8   :  { %1755 = vmatpush.xpose.msk.msra.mxu3 %vm189_vm8, %v862_v2 }
 0x8eb   :  { %1756 = vmatmul.msk.f32.vlgmr.msra.gmra.mxu3 %vm189_vm8, %v2342_v62  ;;  %1200 = vmatpush.msrb.mxu2 %v1750_v48 }
 0x8ee   :  { %v994_v52 = vpop.permute.xlu0 %993 }
 0x8ef   :  { %v1020_v3 = vpop.permute.xlu1 %1019  ;;  %1759 = vmatpush.xpose.msk.msra.mxu1 %vm189_vm8, %v994_v52 }
 0x8f0   :  { %1762 = vmatmul.msk.f32.vlgmr.msra.gmra.mxu2 %vm189_vm8, %v1020_v3 }
 0x8f2   :  { %1760 = vmatmul.msk.f32.vlgmr.msra.gmra.mxu1 %vm189_vm8, %v992_v4 }
 0x947   :  { %v857_v6 = vpop.f32.mrf.mxu0 }
 0x948   :  { %v887_v7 = vmul.f32 0.25, %v857_v6 }
 0x94a   :  { %v889_v8 = vadd.f32 %v2178_v0, %v887_v7 }
 0x94c   :  { %v891_v9 = vsel %vm251_vm9, %v889_v8, -inf }
 0x94d   :  { %892 = vmax.xlane.f32.xlu1 %v891_v9 }
 0x96e   :  { %v884_v11 = vpop.f32.mrf.mxu3 }
 0x96f   :  { %v888_v12 = vmul.f32 0.25, %v884_v11  ;;  %v1016_v13 = vpop.f32.mrf.mxu1 }
 0x970   :  { %v1047_v14 = vmul.f32 0.25, %v1016_v13 }
 0x971   :  { %v890_v15 = vadd.f32 %v2185_v5, %v888_v12 }
 0x972   :  { %v1049_v16 = vadd.f32 %v2178_v0, %v1047_v14 }
 0x973   :  { %v1044_v17 = vpop.f32.mrf.mxu2  ;;  %v894_v18 = vsel %vm251_vm9, %v890_v15, -inf }
 0x974   :  { %v1048_v19 = vmul.f32 0.25, %v1044_v17  ;;  %895 = vmax.xlane.f32.xlu0 %v894_v18  ;;  %v1051_v20 = vsel %vm251_vm9, %v1049_v16, -inf }
 0x975   :  { %1052 = vmax.xlane.f32.xlu2 %v1051_v20 }
 0x976   :  { %v1050_v21 = vadd.f32 %v2185_v5, %v1048_v19 }
 0x978   :  { %v1054_v22 = vsel %vm251_vm9, %v1050_v21, -inf }
 0x979   :  { %1055 = vmax.xlane.f32.xlu1 %v1054_v22 }
 0x9c0   :  { %v893_v23 = vpop.xlane.xlu1 %892 }
 0x9c1   :  { %v897_v24 = vsub.f32 %v889_v8, %v893_v23 }
 0x9c3   :  { %v899_v25 = vmul.f32 1.442695, %v897_v24 }
 0x9c5   :  { %1885 = vpow2.f32 %v899_v25 }
 0x9cb   :  { %v1886_v26 = vpop.eup %1885 }
 0x9cc   :  { %v903_v0 = vsel %vm251_vm9, %v1886_v26, 0.0 }
 0x9cd   :  { %904 = vadd.xlane.f32.xlu0 %v903_v0 }
 0x9e7   :  { %v896_v27 = vpop.xlane.xlu0 %895 }
 0x9e8   :  { %v898_v28 = vsub.f32 %v890_v15, %v896_v27  ;;  %v1053_v29 = vpop.xlane.xlu2 %1052 }
 0x9e9   :  { %v1057_v30 = vsub.f32 %v1049_v16, %v1053_v29 }
 0x9ea   :  { %v901_v31 = vmul.f32 1.442695, %v898_v28 }
 0x9eb   :  { %v1059_v32 = vmul.f32 1.442695, %v1057_v30 }
 0x9ec   :  { %1887 = vpow2.f32 %v901_v31  ;;  %v1056_v33 = vpop.xlane.xlu1 %1055 }
 0x9ed   :  { %1889 = vpow2.f32 %v1059_v32  ;;  %v1058_v5 = vsub.f32 %v1050_v21, %v1056_v33 }
 0x9ef   :  { %v1061_v34 = vmul.f32 1.442695, %v1058_v5 }
 0x9f1   :  { %1891 = vpow2.f32 %v1061_v34 }
 0x9f2   :  { %v2373_v35 = vpop.eup %1887 }
 0x9f3   :  { %v2375_v37 = vpop.eup %1889  ;;  %v906_v38 = vsel %vm251_vm9, %v2373_v35, 0.0 }
 0x9f4   :  { %907 = vadd.xlane.f32.xlu2 %v906_v38  ;;  %v1063_v39 = vsel %vm251_vm9, %v2375_v37, 0.0  ;;  %v1749_v38 = vld [vmem:[%s2610_s29 + $0x20] sm:$0xff] }
 0x9f5   :  { %1064 = vadd.xlane.f32.xlu1 %v1063_v39  ;;  %1201 = vmatpush.msrb.mxu2 %v1749_v38  ;;  %v1752_v39 = vld [vmem:[%s2610_s29 + $0x38] sm:$0xff]  ;;  %v1785_v38 = vld [vmem:[%s2567_s12 + $0x70] sm:$0xff] }
 0x9f6   :  { %1171 = vmatpush.msrb.mxu1 %v1752_v39  ;;  %v1784_v39 = vld [vmem:[%s2567_s12 + $0x68] sm:$0xff] }
 0x9f7   :  { %v2381_v36 = vpop.eup %1891 }
 0x9f8   :  { %v1066_v40 = vsel %vm251_vm9, %v2381_v36, 0.0 }
 0x9f9   :  { %1067 = vadd.xlane.f32.xlu0 %v1066_v40 }
 0xa0c   :  { %1812 = vrot.lane.b32.xlu2 %v1811_v41, %s2616_s7 }
 0xa0e   :  { %1817 = vrot.lane.b32.xlu1 %v1811_v41, %s2617_s30  ;;  %s1975_s30 = smov 1  }
 0xa40   :  { %v905_v42 = vpop.xlane.xlu0 %904 }
 0xa41   :  { %1893 = vrcp.f32 %v905_v42  ;;  %v920_v51 = vand.u32 2147483648, %v905_v42  ;;  %vm914_vm14 = vweird.f32 %v905_v42  ;;  %v918_v55 = vand.u32 2147483647, %v905_v42 }
 0xa43   :  { %v921_v57 = vor.u32 1.1754944e-38, %v920_v51  ;;  %vm919_vm1 = vcmp.eq.f32.partialorder %v918_v55, 8.507059e+37 }
 0xa47   :  { %v1894_v43 = vpop.eup %1893 }
 0xa48   :  { %v910_v44 = vmul.f32 %v1894_v43, %v905_v42  ;;  %vm915_vm13 = vweird.f32 %v1894_v43 }
 0xa49   :  { %vm916_vm15 = vmor %vm914_vm14, %vm915_vm13 }
 0xa4a   :  { %v911_v45 = vsub.f32 1.0, %v910_v44 }
 0xa4c   :  { %v912_v46 = vmul.f32 %v1894_v43, %v911_v45 }
 0xa4e   :  { %v913_v49 = vadd.f32 %v1894_v43, %v912_v46 }
 0xa50   :  { %v917_v56 = vsel %vm916_vm15, %v1894_v43, %v913_v49  ;;  %v1841_v43 = vld [vmem:[%s2611_s4 + $0x1] ss:$0 sm:$0xff] }
 0xa51   :  { %v922_v61 = vsel %vm919_vm1, %v921_v57, %v917_v56 }
 0xa52   :  { %v923_v4 = vmul.f32 %v1886_v26, %v922_v61 }
 0xa67   :  { %v908_v50 = vpop.xlane.xlu2 %907 }
 0xa68   :  { %1895 = vrcp.f32 %v908_v50  ;;  %v1065_v54 = vpop.xlane.xlu1 %1064  ;;  %v935_v6 = vand.u32 2147483648, %v908_v50  ;;  %v933_v11 = vand.u32 2147483647, %v908_v50  ;;  %vm929_vm3 = vweird.f32 %v908_v50 }
 0xa69   :  { %1897 = vrcp.f32 %v1065_v54  ;;  %vm1074_vm11 = vweird.f32 %v1065_v54  ;;  %v1080_v21 = vand.u32 2147483648, %v1065_v54  ;;  %v1078_v24 = vand.u32 2147483647, %v1065_v54 }
 0xa6a   :  { %v936_v15 = vor.u32 1.1754944e-38, %v935_v6  ;;  %vm934_vm6 = vcmp.eq.f32.partialorder %v933_v11, 8.507059e+37  ;;  %v1773_v6 = vld [vmem:[%s2565_s10 + $0x28] sm:$0xff] }
 0xa6b   :  { %v1081_v28 = vor.u32 1.1754944e-38, %v1080_v21  ;;  %vm1079_vm15 = vcmp.eq.f32.partialorder %v1078_v24, 8.507059e+37 }
 0xa6c   :  { %v1068_v59 = vpop.xlane.xlu0 %1067 }
 0xa6d   :  { %1899 = vrcp.f32 %v1068_v59  ;;  %v1095_v22 = vand.u32 2147483648, %v1068_v59  ;;  %vm1089_vm13 = vweird.f32 %v1068_v59  ;;  %v1093_v26 = vand.u32 2147483647, %v1068_v59 }
 0xa6e   :  { %v1896_v60 = vpop.eup %1895 }
 0xa6f   :  { %v1898_v47 = vpop.eup %1897  ;;  %v925_v62 = vmul.f32 %v1896_v60, %v908_v50  ;;  %v1813_v63 = vpop.permute.xlu2 %1812  ;;  %vm930_vm2 = vweird.f32 %v1896_v60  ;;  %v1096_v29 = vor.u32 1.1754944e-38, %v1095_v22  ;;  %vm1094_vm1 = vcmp.eq.f32.partialorder %v1093_v26, 8.507059e+37 }
 0xa70   :  { %v1070_v1 = vmul.f32 %v1898_v47, %v1065_v54  ;;  %v1815_v2 = vunpack.i.h.bf16 %v1813_v63  ;;  %v1814_v52 = vunpack.i.l.bf16 %v1813_v63  ;;  %vm931_vm5 = vmor %vm929_vm3, %vm930_vm2  ;;  %vm1075_vm7 = vweird.f32 %v1898_v47 }
 0xa71   :  { %v926_v3 = vsub.f32 1.0, %v925_v62  ;;  %vm1076_vm12 = vmor %vm1074_vm11, %vm1075_vm7 }
 0xa72   :  { %v1071_v7 = vsub.f32 1.0, %v1070_v1  ;;  %960 = vmatpush.msrb.mxu0 %v1814_v52  ;;  %986 = vmatpush.msrb.mxu3 %v1815_v2 }
 0xa73   :  { %v1900_v8 = vpop.eup %1899  ;;  %v927_v9 = vmul.f32 %v1896_v60, %v926_v3  ;;  %1757 = vmatmul.msk.f32.vlgmr.msrb.gmra.mxu0 %vm251_vm9, %v923_v4  ;;  %v1774_v4 = vld [vmem:[%s2565_s10 + $0x30] sm:$0xff] }
 0xa74   :  { %v1072_v12 = vmul.f32 %v1898_v47, %v1071_v7  ;;  %v1085_v13 = vmul.f32 %v1900_v8, %v1068_v59  ;;  %vm1090_vm10 = vweird.f32 %v1900_v8  ;;  %v1772_v7 = vld [vmem:[%s2565_s10 + $0x20] sm:$0xff] }
 0xa75   :  { %v928_v14 = vadd.f32 %v1896_v60, %v927_v9  ;;  %vm1091_vm14 = vmor %vm1089_vm13, %vm1090_vm10 }
 0xa76   :  { %v1086_v16 = vsub.f32 1.0, %v1085_v13  ;;  %v1073_v19 = vadd.f32 %v1898_v47, %v1072_v12 }
 0xa77   :  { %v932_v17 = vsel %vm931_vm5, %v1896_v60, %v928_v14 }
 0xa78   :  { %v937_v18 = vsel %vm934_vm6, %v936_v15, %v932_v17  ;;  %v1087_v20 = vmul.f32 %v1900_v8, %v1086_v16  ;;  %v1077_v0 = vsel %vm1076_vm12, %v1898_v47, %v1073_v19 }
 0xa79   :  { %v938_v23 = vmul.f32 %v2373_v35, %v937_v18  ;;  %v1082_v30 = vsel %vm1079_vm15, %v1081_v28, %v1077_v0  ;;  %v1843_v0 = vld [vmem:[%s2564_s9 + $0x1] ss:$0 sm:$0xff] }
 0xa7a   :  { %v1088_v25 = vadd.f32 %v1900_v8, %v1087_v20  ;;  %v1083_v34 = vmul.f32 %v2375_v37, %v1082_v30  ;;  %v1751_v37 = vld [vmem:[%s2610_s29 + $0x30] sm:$0xff] }
 0xa7b   :  { %1758 = vmatmul.msk.f32.vlgmr.msrb.gmra.mxu3 %vm251_vm9, %v938_v23  ;;  %1172 = vmatpush.msrb.mxu1 %v1751_v37  ;;  %v1842_v23 = vld [vmem:[%s2612_s1 + $0x1] ss:$0 sm:$0xff] }
 0xa7c   :  { %v1092_v27 = vsel %vm1091_vm14, %v1900_v8, %v1088_v25  ;;  %v1783_v37 = vld [vmem:[%s2567_s12 + $0x60] sm:$0xff]  ;;  %vm1447_vm14 = vcmask 1041409  }
 0xa7d   :  { %v1097_v31 = vsel %vm1094_vm1, %v1096_v29, %v1092_v27 }
 0xa7e   :  { %v1098_v35 = vmul.f32 %v2381_v36, %v1097_v31 }
 0xa80   :  { %v1818_v32 = vpop.permute.xlu1 %1817 }
 0xa81   :  { %v1820_v33 = vunpack.i.h.bf16 %v1818_v32  ;;  %v1819_v5 = vunpack.i.l.bf16 %v1818_v32 }
 0xa83   :  { %1120 = vmatpush.msra.mxu0 %v1819_v5  ;;  %1146 = vmatpush.msra.mxu3 %v1820_v33 }
 0xa84   :  { %1763 = vmatmul.msk.f32.vlgmr.msra.gmra.mxu0 %vm251_vm9, %v1083_v34  ;;  %1764 = vmatmul.msk.f32.vlgmr.msra.gmra.mxu3 %vm251_vm9, %v1098_v35  ;;  %v1786_v35 = vld [vmem:[%s2567_s12 + $0x78] sm:$0xff] }
 0xa85   :  { %1361 = vmatpush.msrb.mxu3 %v1786_v35 }
 0xa87   :  { %1362 = vmatpush.msrb.mxu3 %v1785_v38 }
 0xa89   :  { %1363 = vmatpush.msrb.mxu3 %v1784_v39 }
 0xa8b   :  { %1364 = vmatpush.msrb.mxu3 %v1783_v37 }
 0xaf0   :  { %v962_v36 = vpop.f32.mrf.mxu0 }
 0xaf1   :  { %1767 = vmatmul.msk.f32.vlgmr.msrb.gmra.mxu2 %vm189_vm8, %v962_v36  ;;  %v1782_v36 = vld [vmem:[%s2567_s12 + $0x58] sm:$0xff] }
 0xaf2   :  { %1365 = vmatpush.msrb.mxu3 %v1782_v36 }
 0xafe   :  { %v988_v40 = vpop.f32.mrf.mxu3 }
 0xaff   :  { %1768 = vmatmul.msk.f32.gmra.mxu2 %vm189_vm8, %v988_v40  ;;  %v1781_v40 = vld [vmem:[%s2567_s12 + $0x50] sm:$0xff] }
 0xb00   :  { %1366 = vmatpush.msrb.mxu3 %v1781_v40 }
 0xb01   :  { %v1122_v41 = vpop.f32.mrf.mxu0 }
 0xb02   :  { %1765 = vmatmul.msk.f32.vlgmr.msrb.gmra.mxu1 %vm189_vm8, %v1122_v41  ;;  %v1780_v41 = vld [vmem:[%s2567_s12 + $0x48] sm:$0xff] }
 0xb03   :  { %1367 = vmatpush.msrb.mxu3 %v1780_v41 }
 0xb07   :  { %v1148_v42 = vpop.f32.mrf.mxu3 }
 0xb0a   :  { %1766 = vmatmul.msk.f32.gmra.mxu1 %vm189_vm8, %v1148_v42  ;;  %v1779_v42 = vld [vmem:[%s2567_s12 + $0x40] sm:$0xff] }
 0xb0b   :  { %1368 = vmatpush.msrb.mxu3 %v1779_v42 }
 0xb74   :  { %v1203_v44 = vpop.f32.mrf.mxu2 }
 0xb7f   :  { %v1174_v45 = vpop.f32.mrf.mxu1 }
 0xb80   :  { %v1204_v46 = vadd.f32 %v1203_v44, %v1174_v45 }
 0xb82   :  { %v1214_v48 = vadd.f32 %v1841_v43, %v1204_v46  ;;  %v1206_v51 = vpop.f32.mrf.mxu2 }
 0xb84   :  { %v1216_v49 = vadd.f32 %v1214_v48, %v2327_v53 }
 0xb86   :  { %v1222_v50 = vsel %vm83_vm0, %v1216_v49, 0.0 }
 0xb87   :  { %1223 = vadd.xlane.f32.xlu0 %v1222_v50  ;;  %v1177_v54 = vpop.f32.mrf.mxu1 }
 0xb88   :  { %v1207_v55 = vadd.f32 %v1206_v51, %v1177_v54 }
 0xb8a   :  { %v1215_v56 = vadd.f32 %v1841_v43, %v1207_v55  ;;  %v1844_v43 = vld [vmem:[%s2566_s11 + $0x1] ss:$0 sm:$0xff] }
 0xb8c   :  { %v1217_v57 = vadd.f32 %v1215_v56, %v2331_v58  ;;  %v1775_v58 = vld [vmem:[%s2565_s10 + $0x38] sm:$0xff] }
 0xb8d   :  { %1304 = vmatpush.msrb.mxu0 %v1775_v58  ;;  %v1845_v58 = vld [vmem:[%s2568_s13 + $0x1] ss:$0 sm:$0xff] }
 0xb8e   :  { %v1225_v59 = vsel %vm83_vm0, %v1217_v57, 0.0 }
 0xb8f   :  { %1226 = vadd.xlane.f32.xlu0 %v1225_v59  ;;  %1305 = vmatpush.msrb.mxu0 %v1774_v4 }
 0xb91   :  { %1306 = vmatpush.msrb.mxu0 %v1773_v6 }
 0xb93   :  { %1307 = vmatpush.msrb.mxu0 %v1772_v7 }
 0xbfa   :  { %v1224_v60 = vpop.xlane.xlu0 %1223 }
 0xbfb   :  { %v1228_v61 = vmul.f32 %v1224_v60, %v2112_v10 }
 0xbfd   :  { %v1230_v47 = vsub.f32 %v1216_v49, %v1228_v61 }
 0xbff   :  { %v1232_v62 = vmul.f32 %v1230_v47, %v1230_v47 }
 0xc01   :  { %v1234_v63 = vsel %vm83_vm0, %v1232_v62, 0.0 }
 0xc02   :  { %1235 = vadd.xlane.f32.xlu0 %v1234_v63  ;;  %v1227_v53 = vpop.xlane.xlu0 %1226 }
 0xc03   :  { %v1229_v1 = vmul.f32 %v1227_v53, %v2112_v10 }
 0xc05   :  { %v1231_v2 = vsub.f32 %v1217_v57, %v1229_v1 }
 0xc07   :  { %v1233_v52 = vmul.f32 %v1231_v2, %v1231_v2 }
 0xc09   :  { %v1237_v3 = vsel %vm83_vm0, %v1233_v52, 0.0 }
 0xc0a   :  { %1238 = vadd.xlane.f32.xlu2 %v1237_v3 }
 0xc75   :  { %v1236_v8 = vpop.xlane.xlu0 %1235 }
 0xc76   :  { %v1240_v9 = vmul.f32 %v1236_v8, %v2112_v10 }
 0xc78   :  { %v1242_v11 = vadd.f32 1e-12, %v1240_v9 }
 0xc7a   :  { %1901 = vrsqrt.f32 %v1242_v11  ;;  %vm1250_vm9 = vweird.f32 %v1242_v11 }
 0xc7d   :  { %v1239_v12 = vpop.xlane.xlu2 %1238 }
 0xc7e   :  { %v1241_v13 = vmul.f32 %v1239_v12, %v2112_v10 }
 0xc80   :  { %v1902_v14 = vpop.eup %1901  ;;  %v1243_v15 = vadd.f32 1e-12, %v1241_v13 }
 0xc81   :  { %v1245_v16 = vmul.f32 %v1902_v14, %v1242_v11  ;;  %vm1251_vm8 = vweird.f32 %v1902_v14 }
 0xc82   :  { %1903 = vrsqrt.f32 %v1243_v15  ;;  %vm1252_vm2 = vmor %vm1250_vm9, %vm1251_vm8  ;;  %vm1260_vm5 = vweird.f32 %v1243_v15 }
 0xc83   :  { %v1246_v17 = vmul.f32 %v1902_v14, %v1245_v16 }
 0xc85   :  { %v1247_v18 = vmul.f32 0.5, %v1246_v17 }
 0xc87   :  { %v1248_v19 = vsub.f32 1.5, %v1247_v18 }
 0xc88   :  { %v1904_v20 = vpop.eup %1903 }
 0xc89   :  { %v1249_v21 = vmul.f32 %v1902_v14, %v1248_v19  ;;  %v1255_v22 = vmul.f32 %v1904_v20, %v1243_v15  ;;  %vm1261_vm3 = vweird.f32 %v1904_v20 }
 0xc8a   :  { %vm1262_vm6 = vmor %vm1260_vm5, %vm1261_vm3 }
 0xc8b   :  { %v1253_v24 = vsel %vm1252_vm2, %v1902_v14, %v1249_v21  ;;  %v1256_v25 = vmul.f32 %v1904_v20, %v1255_v22 }
 0xc8c   :  { %v1264_v26 = vmul.f32 %v1253_v24, %v1230_v47  ;;  %v1508_v24 = vld [vmem:[%s2575_s20 + $0x18] sm:$0xff] }
 0xc8d   :  { %v1257_v27 = vmul.f32 0.5, %v1256_v25  ;;  %1529 = vmatpush.msra.mxu0 %v1508_v24  ;;  %v1507_v25 = vld [vmem:[%s2575_s20 + $0x10] sm:$0xff] }
 0xc8e   :  { %v1269_v28 = vmul.f32 %v1842_v23, %v1264_v26  ;;  %v1506_v26 = vld [vmem:[%s2575_s20 + $0x8] sm:$0xff] }
 0xc8f   :  { %v1258_v29 = vsub.f32 1.5, %v1257_v27  ;;  %1530 = vmatpush.msra.mxu0 %v1507_v25  ;;  %v1439_v27 = vld [vmem:[%s2571_s16 + $0x18] sm:$0xff] }
 0xc90   :  { %v1274_v30 = vadd.f32 %v1843_v0, %v1269_v28  ;;  %v1438_v28 = vld [vmem:[%s2571_s16 + $0x10] sm:$0xff]  ;;  %1463 = vmatpush.msra.mxu1 %v1439_v27 }
 0xc91   :  { %v1259_v31 = vmul.f32 %v1904_v20, %v1258_v29  ;;  %1531 = vmatpush.msra.mxu0 %v1506_v26 }
 0xc92   :  { %1777 = vmatmul.msk.f32.vlgmr.msrb.gmra.mxu0 %vm83_vm0, %v1274_v30  ;;  %1464 = vmatpush.msra.mxu1 %v1438_v28 }
 0xc93   :  { %v1263_v32 = vsel %vm1262_vm6, %v1904_v20, %v1259_v31 }
 0xc94   :  { %v1265_v33 = vmul.f32 %v1263_v32, %v1231_v2 }
 0xc96   :  { %v1270_v5 = vmul.f32 %v1842_v23, %v1265_v33  ;;  %v1436_v33 = vld [vmem:[%s2571_s16] sm:$0xff] }
 0xc98   :  { %v1275_v34 = vadd.f32 %v1843_v0, %v1270_v5  ;;  %v1505_v0 = vld [vmem:[%s2575_s20] sm:$0xff]  ;;  %s1707_s20 = sshll.u32 %s2578_s23, 4  ;;  %s1708_s20 = int_to_ptr.hbm [resolvable:$true] %s1707_s20 }
 0xc99   :  { %1532 = vmatpush.msra.mxu0 %v1505_v0 }
 0xc9a   :  { %1778 = vmatmul.msk.f32.gmra.mxu0 %vm83_vm0, %v1275_v34 }
 0xd0f   :  { %v1309_v44 = vpop.f32.mrf.mxu0 }
 0xd10   :  { %v1310_v45 = vadd.f32 %v1844_v43, %v1309_v44  ;;  %v1846_v44 = vld [vmem:[%s2569_s14 + $0x1] ss:$0 sm:$0xff] }
 0xd12   :  { %v1317_v46 = vmul.f32 0.044715, %v1310_v45  ;;  %v1315_v62 = vmul.f32 0.5, %v1310_v45 }
 0xd14   :  { %v1319_v48 = vmul.f32 %v1317_v46, %v1310_v45 }
 0xd16   :  { %v1321_v49 = vmul.f32 %v1319_v48, %v1310_v45  ;;  %v1847_v48 = vld [vmem:[%s2570_s15 + $0x1] ss:$0 sm:$0xff] }
 0xd17   :  { %v1312_v50 = vpop.f32.mrf.mxu0 }
 0xd18   :  { %v1323_v51 = vadd.f32 %v1321_v49, %v1310_v45  ;;  %v1313_v54 = vadd.f32 %v1844_v43, %v1312_v50 }
 0xd1a   :  { %v1325_v55 = vmul.f32 0.7978846, %v1323_v51  ;;  %v1318_v56 = vmul.f32 0.044715, %v1313_v54  ;;  %v1316_v2 = vmul.f32 0.5, %v1313_v54 }
 0xd1c   :  { %1905 = vtanh.f32 %v1325_v55  ;;  %v1320_v57 = vmul.f32 %v1318_v56, %v1313_v54 }
 0xd1e   :  { %v1322_v59 = vmul.f32 %v1320_v57, %v1313_v54 }
 0xd20   :  { %v1324_v60 = vadd.f32 %v1322_v59, %v1313_v54 }
 0xd22   :  { %v1906_v61 = vpop.eup %1905  ;;  %v1326_v47 = vmul.f32 0.7978846, %v1324_v60 }
 0xd23   :  { %v1329_v63 = vadd.f32 1.0, %v1906_v61 }
 0xd24   :  { %1907 = vtanh.f32 %v1326_v47 }
 0xd25   :  { %v1331_v53 = vmul.f32 %v1329_v63, %v1315_v62  ;;  %v1475_v62 = vld [vmem:[%s2573_s18 + $0x18] sm:$0xff]  ;;  %v1474_v63 = vld [vmem:[%s2573_s18 + $0x10] sm:$0xff] }
 0xd26   :  { %1495 = vmatpush.msra.mxu2 %v1475_v62 }
 0xd27   :  { %1788 = vmatmul.msk.f32.vlgmr.msrb.gmra.mxu3 %vm701_vm4, %v1331_v53  ;;  %v1473_v53 = vld [vmem:[%s2573_s18 + $0x8] sm:$0xff] }
 0xd28   :  { %1496 = vmatpush.msra.mxu2 %v1474_v63 }
 0xd2a   :  { %v1908_v1 = vpop.eup %1907  ;;  %1497 = vmatpush.msra.mxu2 %v1473_v53 }
 0xd2b   :  { %v1330_v52 = vadd.f32 1.0, %v1908_v1  ;;  %v1472_v1 = vld [vmem:[%s2573_s18] sm:$0xff] }
 0xd2c   :  { %1498 = vmatpush.msra.mxu2 %v1472_v1 }
 0xd2d   :  { %v1332_v3 = vmul.f32 %v1330_v52, %v1316_v2  ;;  %v1848_v2 = vld [vmem:[%s2576_s21] ss:$0 sm:$0xff] }
 0xd2f   :  { %1789 = vmatmul.msk.f32.gmra.mxu3 %vm701_vm4, %v1332_v3 }
 0xdaa   :  { %v1370_v4 = vpop.f32.mrf.mxu3 }
 0xdab   :  { %v1371_v6 = vadd.f32 %v1845_v58, %v1370_v4 }
 0xdad   :  { %v1376_v7 = vadd.f32 %v1371_v6, %v1274_v30  ;;  %v1437_v30 = vld [vmem:[%s2571_s16 + $0x8] sm:$0xff] }
 0xdae   :  { %1465 = vmatpush.msra.mxu1 %v1437_v30 }
 0xdaf   :  { %v1382_v8 = vsel %vm83_vm0, %v1376_v7, 0.0 }
 0xdb0   :  { %1383 = vadd.xlane.f32.xlu0 %v1382_v8  ;;  %1466 = vmatpush.msra.mxu1 %v1436_v33  ;;  %v1849_v8 = vld [vmem:[%s2572_s17] ss:$0 sm:$0xff] }
 0xdb2   :  { %v1373_v9 = vpop.f32.mrf.mxu3 }
 0xdb3   :  { %v1374_v11 = vadd.f32 %v1845_v58, %v1373_v9 }
 0xdb5   :  { %v1377_v12 = vadd.f32 %v1374_v11, %v1275_v34 }
 0xdb7   :  { %v1385_v13 = vsel %vm83_vm0, %v1377_v12, 0.0 }
 0xdb8   :  { %1386 = vadd.xlane.f32.xlu1 %v1385_v13 }
 0xe23   :  { %v1384_v14 = vpop.xlane.xlu0 %1383 }
 0xe24   :  { %v1388_v15 = vmul.f32 %v1384_v14, %v2112_v10 }
 0xe26   :  { %v1390_v16 = vsub.f32 %v1376_v7, %v1388_v15 }
 0xe28   :  { %v1392_v17 = vmul.f32 %v1390_v16, %v1390_v16 }
 0xe2a   :  { %v1394_v18 = vsel %vm83_vm0, %v1392_v17, 0.0 }
 0xe2b   :  { %v1387_v19 = vpop.xlane.xlu1 %1386  ;;  %1395 = vadd.xlane.f32.xlu0 %v1394_v18  ;;  %v1656_v18 = vld [vmem:[%s2577_s22] sm:$0xff] }
 0xe2c   :  { %v1389_v20 = vmul.f32 %v1387_v19, %v2112_v10  ;;  %1660 = vrot.lane.b32.xlu1 %v1656_v18, %s1975_s30 }
 0xe2e   :  { %v1391_v21 = vsub.f32 %v1377_v12, %v1389_v20 }
 0xe30   :  { %v1393_v22 = vmul.f32 %v1391_v21, %v1391_v21 }
 0xe32   :  { %v1397_v23 = vsel %vm83_vm0, %v1393_v22, 0.0 }
 0xe33   :  { %1398 = vadd.xlane.f32.xlu0 %v1397_v23 }
 0xe9e   :  { %v1396_v29 = vpop.xlane.xlu0 %1395 }
 0xe9f   :  { %v1400_v31 = vmul.f32 %v1396_v29, %v2112_v10 }
 0xea1   :  { %v1402_v32 = vadd.f32 1e-12, %v1400_v31 }
 0xea3   :  { %1909 = vrsqrt.f32 %v1402_v32  ;;  %vm1410_vm7 = vweird.f32 %v1402_v32 }
 0xea6   :  { %v1399_v5 = vpop.xlane.xlu0 %1398 }
 0xea7   :  { %v1401_v34 = vmul.f32 %v1399_v5, %v2112_v10 }
 0xea9   :  { %v1910_v35 = vpop.eup %1909  ;;  %v1403_v38 = vadd.f32 1e-12, %v1401_v34 }
 0xeaa   :  { %v1405_v39 = vmul.f32 %v1910_v35, %v1402_v32  ;;  %vm1411_vm4 = vweird.f32 %v1910_v35  ;;  %v1657_v32 = vld [vmem:[%s2577_s22 + $0x8] sm:$0xff] }
 0xeab   :  { %1911 = vrsqrt.f32 %v1403_v38  ;;  %vm1412_vm10 = vmor %vm1410_vm7, %vm1411_vm4  ;;  %vm1420_vm12 = vweird.f32 %v1403_v38 }
 0xeac   :  { %v1406_v37 = vmul.f32 %v1910_v35, %v1405_v39 }
 0xeae   :  { %v1407_v36 = vmul.f32 0.5, %v1406_v37 }
 0xeb0   :  { %v1408_v40 = vsub.f32 1.5, %v1407_v36 }
 0xeb1   :  { %v1912_v41 = vpop.eup %1911 }
 0xeb2   :  { %v1409_v42 = vmul.f32 %v1910_v35, %v1408_v40  ;;  %v1415_v43 = vmul.f32 %v1912_v41, %v1403_v38  ;;  %vm1421_vm11 = vweird.f32 %v1912_v41 }
 0xeb3   :  { %vm1422_vm13 = vmor %vm1420_vm12, %vm1421_vm11  ;;  %vm1503_vm11 = vcmask 9216  }
 0xeb4   :  { %v1413_v45 = vsel %vm1412_vm10, %v1910_v35, %v1409_v42  ;;  %v1416_v46 = vmul.f32 %v1912_v41, %v1415_v43 }
 0xeb5   :  { %v1424_v10 = vmul.f32 %v1413_v45, %v1390_v16 }
 0xeb6   :  { %v1417_v49 = vmul.f32 0.5, %v1416_v46 }
 0xeb7   :  { %v1429_v50 = vmul.f32 %v1846_v44, %v1424_v10 }
 0xeb8   :  { %v1418_v51 = vsub.f32 1.5, %v1417_v49 }
 0xeb9   :  { %v1434_v54 = vadd.f32 %v1847_v48, %v1429_v50 }
 0xeba   :  { %v1419_v55 = vmul.f32 %v1912_v41, %v1418_v51 }
 0xebb   :  { %1794 = vmatmul.msk.f32.vlgmr.msra.gmra.mxu0 %vm83_vm0, %v1434_v54 }
 0xebc   :  { %v1423_v56 = vsel %vm1422_vm13, %v1912_v41, %v1419_v55 }
 0xebd   :  { %v1425_v57 = vmul.f32 %v1423_v56, %v1391_v21 }
 0xebf   :  { %v1430_v59 = vmul.f32 %v1846_v44, %v1425_v57 }
 0xec1   :  { %v1435_v60 = vadd.f32 %v1847_v48, %v1430_v59 }
 0xec3   :  { %v1446_v61 = vrot.slane %v1435_v60, 7  ;;  %1795 = vmatmul.msk.f32.gmra.mxu0 %vm83_vm0, %v1435_v60 }
 0xec5   :  { %v1448_v47 = vsel %vm1447_vm14, %v1446_v61, %v1434_v54 }
 0xec6   :  { %1792 = vmatmul.msk.f32.vlgmr.msra.gmra.mxu1 %vm83_vm0, %v1448_v47 }
 0xf38   :  { %v1534_v52 = vpop.f32.mrf.mxu0 }
 0xf39   :  { %v1535_v3 = vadd.f32 %v1848_v2, %v1534_v52 }
 0xf3b   :  { %v1542_v58 = vand.u32 2147483647, %v1535_v3  ;;  %v1540_v23 = vmax.f32 %v1535_v3, 0.0 }
 0xf3d   :  { %v1544_v4 = vsub.f32 0.0, %v1542_v58 }
 0xf3f   :  { %v1546_v6 = vmul.f32 1.442695, %v1544_v4 }
 0xf40   :  { %v1537_v7 = vpop.f32.mrf.mxu0 }
 0xf41   :  { %1913 = vpow2.f32 %v1546_v6  ;;  %v1538_v9 = vadd.f32 %v1848_v2, %v1537_v7  ;;  %v1976_v2 = vmov 1  }
 0xf42   :  { %1822 = vset.pattern.permute.xlu2 %v1976_v2  ;;  %1821 = vset.pattern.permute.xlu0 %v1976_v2 }
 0xf43   :  { %v1543_v11 = vand.u32 2147483647, %v1538_v9  ;;  %v1468_v12 = vpop.f32.mrf.mxu1  ;;  %v1541_v28 = vmax.f32 %v1538_v9, 0.0 }
 0xf44   :  { %v1469_v13 = vadd.f32 %v1849_v8, %v1468_v12 }
 0xf45   :  { %v1545_v14 = vsub.f32 0.0, %v1543_v11 }
 0xf46   :  { %1915 = vtanh.f32 %v1469_v13 }
 0xf47   :  { %v1914_v15 = vpop.eup %1913  ;;  %v1548_v16 = vmul.f32 1.442695, %v1545_v14 }
 0xf48   :  { %v1550_v17 = vadd.f32 1.0, %v1914_v15 }
 0xf49   :  { %1917 = vpow2.f32 %v1548_v16  ;;  %v1850_v16 = vld [vmem:[%s2574_s19] ss:$0 sm:$0xff]  ;;  %s1977_s19 = smov [#allocation2]  }
 0xf4a   :  { %1919 = vlog2.f32 %v1550_v17  ;;  %s1705_s25 = sshll.u32 %s1977_s19, 4  ;;  %s1706_s25 = int_to_ptr.vmem [resolvable:$true] %s1705_s25 }
 0xf4c   :  { %v1916_v19 = vpop.eup %1915 }
 0xf4d   :  { %1793 = vmatmul.msk.f32.vlgmr.msra.gmra.mxu2 %vm83_vm0, %v1916_v19 }
 0xf4f   :  { %v1918_v20 = vpop.eup %1917 }
 0xf50   :  { %v1920_v21 = vpop.eup %1919  ;;  %v1551_v22 = vadd.f32 1.0, %v1918_v20 }
 0xf51   :  { %v1553_v24 = vmul.f32 0.6931472, %v1920_v21 }
 0xf52   :  { %1921 = vlog2.f32 %v1551_v22 }
 0xf53   :  { %v1556_v25 = vadd.f32 %v1553_v24, %v1540_v23 }
 0xf55   :  { %v1558_v26 = vmax.f32 %v1556_v25, 0.0001 }
 0xf57   :  { %v1560_v0 = vmin.f32 %v1558_v26, 10000.0 }
 0xf58   :  { %v1922_v27 = vpop.eup %1921 }
 0xf59   :  { %v1555_v29 = vmul.f32 0.6931472, %v1922_v27  ;;  %1608 = vrot.lane.b32.xlu0 %v1560_v0, %s1975_s30  ;;  %v1573_v50 = vand.u32 2147483648, %v1560_v0  ;;  %vm1567_vm2 = vweird.f32 %v1560_v0  ;;  %v1571_v51 = vand.u32 2147483647, %v1560_v0 }
 0xf5b   :  { %v1557_v30 = vadd.f32 %v1555_v29, %v1541_v28  ;;  %v1574_v55 = vor.u32 1.1754944e-38, %v1573_v50  ;;  %vm1572_vm5 = vcmp.eq.f32.partialorder %v1571_v51, 8.507059e+37 }
 0xf5d   :  { %v1559_v31 = vmax.f32 %v1557_v30, 0.0001 }
 0xf5f   :  { %v1561_v33 = vmin.f32 %v1559_v31, 10000.0 }
 0xf61   :  { %1610 = vrot.lane.b32.xlu2 %v1561_v33, %s1975_s30  ;;  %1662 = vrot.lane.b32.xlu0 %v1657_v32, %s1975_s30  ;;  %1923 = vrcp.f32 %v1561_v33  ;;  %v1588_v40 = vand.u32 2147483648, %v1561_v33  ;;  %vm1582_vm15 = vweird.f32 %v1561_v33  ;;  %v1586_v41 = vand.u32 2147483647, %v1561_v33 }
 0xf62   :  { %1925 = vrcp.f32 %v1560_v0 }
 0xf63   :  { %v1589_v44 = vor.u32 1.1754944e-38, %v1588_v40  ;;  %vm1587_vm8 = vcmp.eq.f32.partialorder %v1586_v41, 8.507059e+37 }
 0xf67   :  { %v1924_v5 = vpop.eup %1923 }
 0xf68   :  { %v1578_v34 = vmul.f32 %v1924_v5, %v1561_v33  ;;  %v1926_v39 = vpop.eup %1925  ;;  %vm1583_vm0 = vweird.f32 %v1924_v5 }
 0xf69   :  { %v1563_v36 = vmul.f32 %v1926_v39, %v1560_v0  ;;  %vm1584_vm1 = vmor %vm1582_vm15, %vm1583_vm0  ;;  %vm1568_vm9 = vweird.f32 %v1926_v39 }
 0xf6a   :  { %v1579_v35 = vsub.f32 1.0, %v1578_v34  ;;  %vm1569_vm3 = vmor %vm1567_vm2, %vm1568_vm9  ;;  %vm1697_vm9 = vcmask 15360  }
 0xf6b   :  { %v1564_v43 = vsub.f32 1.0, %v1563_v36 }
 0xf6c   :  { %v1580_v38 = vmul.f32 %v1924_v5, %v1579_v35 }
 0xf6d   :  { %v1565_v46 = vmul.f32 %v1926_v39, %v1564_v43 }
 0xf6e   :  { %v1581_v37 = vadd.f32 %v1924_v5, %v1580_v38 }
 0xf6f   :  { %v1566_v48 = vadd.f32 %v1926_v39, %v1565_v46  ;;  %v1661_v46 = vpop.permute.xlu1 %1660 }
 0xf70   :  { %v1585_v42 = vsel %vm1584_vm1, %v1924_v5, %v1581_v37 }
 0xf71   :  { %v1590_v45 = vsel %vm1587_vm8, %v1589_v44, %v1585_v42  ;;  %v1570_v54 = vsel %vm1569_vm3, %v1926_v39, %v1566_v48 }
 0xf72   :  { %v1591_v10 = vmul.f32 -0.6931472, %v1590_v45  ;;  %v1575_v56 = vsel %vm1572_vm5, %v1574_v55, %v1570_v54 }
 0xf73   :  { %v1576_v57 = vmul.f32 -0.6931472, %v1575_v56  ;;  %v1672_v56 = vlaneseq }
 0xf74   :  { %v1594_v49 = vmul.f32 1.442695, %v1591_v10 }
 0xf75   :  { %v1592_v61 = vmul.f32 1.442695, %v1576_v57  ;;  %v1673_v57 = vand.u32 127, %v1672_v56 }
 0xf76   :  { %1927 = vpow2.f32 %v1594_v49  ;;  %v1978_v49 = vmov 0.0  }
 0xf77   :  { %1929 = vpow2.f32 %v1592_v61  ;;  %vm1674_vm8 = vcmp.eq.s32.totalorder %v1673_v57, 0 }
 0xf7c   :  { %v1928_v59 = vpop.eup %1927 }
 0xf7d   :  { %v1597_v60 = vsub.f32 1.0, %v1928_v59  ;;  %v1930_v53 = vpop.eup %1929 }
 0xf7e   :  { %v1596_v58 = vsub.f32 1.0, %v1930_v53 }
 0xf7f   :  { %v1599_v62 = vmax.f32 %v1597_v60, 1e-12 }
 0xf80   :  { %v1598_v11 = vmax.f32 %v1596_v58, 1e-12 }
 0xf81   :  { %v1601_v63 = vmin.f32 %v1599_v62, 1.0 }
 0xf82   :  { %v1600_v18 = vmin.f32 %v1598_v11, 1.0 }
 0xfbb   :  { %v1611_v47 = vpop.permute.xlu2 %1610 }
 0xfbc   :  { %1931 = vrcp.f32 %v1611_v47  ;;  %v1640_v6 = vand.u32 2147483648, %v1611_v47  ;;  %v1638_v7 = vand.u32 2147483647, %v1611_v47  ;;  %vm1634_vm4 = vweird.f32 %v1611_v47 }
 0xfbd   :  { %1933 = vlog2.f32 %v1601_v63 }
 0xfbe   :  { %v1641_v12 = vor.u32 1.1754944e-38, %v1640_v6  ;;  %vm1639_vm10 = vcmp.eq.f32.partialorder %v1638_v7, 8.507059e+37 }
 0xfc2   :  { %v1932_v1 = vpop.eup %1931 }
 0xfc3   :  { %v1630_v52 = vmul.f32 %v1932_v1, %v1611_v47  ;;  %vm1635_vm6 = vweird.f32 %v1932_v1  ;;  %v1934_v8 = vpop.eup %1933 }
 0xfc4   :  { %vm1636_vm7 = vmor %vm1634_vm4, %vm1635_vm6  ;;  %v1605_v15 = vmul.f32 0.6931472, %v1934_v8 }
 0xfc5   :  { %v1631_v3 = vsub.f32 1.0, %v1630_v52 }
 0xfc7   :  { %v1632_v4 = vmul.f32 %v1932_v1, %v1631_v3 }
 0xfc9   :  { %v1633_v9 = vadd.f32 %v1932_v1, %v1632_v4 }
 0xfcb   :  { %v1609_v13 = vpop.permute.xlu0 %1608  ;;  %v1637_v14 = vsel %vm1636_vm7, %v1932_v1, %v1633_v9 }
 0xfcc   :  { %1935 = vrcp.f32 %v1609_v13  ;;  %v1642_v17 = vsel %vm1639_vm10, %v1641_v12, %v1637_v14  ;;  %v1625_v26 = vand.u32 2147483648, %v1609_v13  ;;  %v1623_v28 = vand.u32 2147483647, %v1609_v13 }
 0xfcd   :  { %v1643_v19 = vmul.f32 %v1642_v17, %v1605_v15  ;;  %1937 = vlog2.f32 %v1600_v18  ;;  %vm1619_vm13 = vweird.f32 %v1609_v13 }
 0xfce   :  { %v1626_v32 = vor.u32 1.1754944e-38, %v1625_v26  ;;  %vm1624_vm0 = vcmp.eq.f32.partialorder %v1623_v28, 8.507059e+37 }
 0xfcf   :  { %v1646_v21 = vmul.f32 1.442695, %v1643_v19 }
 0xfd0   :  { %v1500_v20 = vpop.f32.mrf.mxu2 }
 0xfd1   :  { %v1501_v22 = vadd.f32 %v1850_v16, %v1500_v20  ;;  %1939 = vpow2.f32 %v1646_v21 }
 0xfd2   :  { %v1936_v23 = vpop.eup %1935 }
 0xfd3   :  { %v1615_v24 = vmul.f32 %v1936_v23, %v1609_v13  ;;  %1504 = vst.msk [vmem:[#allocation2] sm:$0x3] %vm1503_vm11, %v1501_v22  ;;  %v1938_v0 = vpop.eup %1937  ;;  %vm1620_vm12 = vweird.f32 %v1936_v23  ;;  %v1663_v37 = vpop.permute.xlu0 %1662 }
 0xfd4   :  { %vm1621_vm14 = vmor %vm1619_vm13, %vm1620_vm12  ;;  %v1603_v5 = vmul.f32 0.6931472, %v1938_v0  ;;  %1710 = dma.vmem_to_hbm [thread:$0]  %s1706_s25, 32, %s1708_s20, [#allocation3]  }
 0xfd5   :  { %v1616_v25 = vsub.f32 1.0, %v1615_v24 }
 0xfd7   :  { %v1617_v27 = vmul.f32 %v1936_v23, %v1616_v25  ;;  %v1940_v29 = vpop.eup %1939 }
 0xfd8   :  { %v1649_v31 = vmul.f32 1.2, %v1940_v29 }
 0xfd9   :  { %v1618_v30 = vadd.f32 %v1936_v23, %v1617_v27 }
 0xfda   :  { %v1651_v33 = vadd.f32 -0.1, %v1649_v31 }
 0xfdb   :  { %v1622_v34 = vsel %vm1621_vm14, %v1936_v23, %v1618_v30 }
 0xfdc   :  { %v1627_v35 = vsel %vm1624_vm0, %v1626_v32, %v1622_v34  ;;  %v1653_v38 = vmax.f32 %v1651_v33, 0.0 }
 0xfdd   :  { %v1628_v39 = vmul.f32 %v1627_v35, %v1603_v5 }
 0xfde   :  { %v1655_v36 = vmin.f32 %v1653_v38, 1.0 }
 0xfdf   :  { %v1644_v40 = vmul.f32 1.442695, %v1628_v39 }
 0xfe0   :  { %v1667_v41 = vmul.f32 %v1663_v37, %v1655_v36 }
 0xfe1   :  { %1941 = vpow2.f32 %v1644_v40 }
 0xfe2   :  { %1682 = vperm.xlu2 %1822, %v1667_v41   ;;  %vm1669_vm15 = vcmp.ge.f32.partialorder %v1667_v41, 0.5 }
 0xfe3   :  { %v1671_v50 = vsel %vm1669_vm15, 1.0, %v1978_v49 }
 0xfe7   :  { %v1942_v42 = vpop.eup %1941 }
 0xfe8   :  { %v1648_v43 = vmul.f32 1.2, %v1942_v42 }
 0xfea   :  { %v1650_v44 = vadd.f32 -0.1, %v1648_v43 }
 0xfec   :  { %v1652_v45 = vmax.f32 %v1650_v44, 0.0 }
 0xfee   :  { %v1654_v10 = vmin.f32 %v1652_v45, 1.0 }
 0xff0   :  { %v1666_v48 = vmul.f32 %v1661_v46, %v1654_v10 }
 0xff2   :  { %vm1668_vm1 = vcmp.ge.f32.partialorder %v1666_v48, 0.5  ;;  %1677 = vperm.xlu0 %1821, %v1666_v48  }
 0xff3   :  { %v1670_v51 = vsel %vm1668_vm1, 1.0, %v1978_v49 }
 0xff4   :  { %v1823_v54 = vpack.i.bf16 %v1671_v50, %v1670_v51 }
 0xff6   :  { %1824 = vperm.xlu2 %1822, %v1823_v54  }
0x103c   :  { %v1683_v55 = vpop.permute.xlu2 %1682 }
0x1050   :  { %v1825_v59 = vpop.permute.xlu2 %1824 }
0x1051   :  { %v1827_v60 = vunpack.i.h.bf16 %v1825_v59  ;;  %v1826_v47 = vunpack.i.l.bf16 %v1825_v59 }
0x1053   :  { %v1696_v61 = vsel %vm1674_vm8, %v1683_v55, %v1827_v60 }
0x1054   :  { %1699 = vst.msk [vmem:[%s2579_s24 + $0x8] sm:$0xff] %vm1697_vm9, %v1696_v61 }
0x1064   :  { %v1678_v62 = vpop.permute.xlu0 %1677 }
0x1065   :  { %v1695_v63 = vsel %vm1674_vm8, %v1678_v62, %v1826_v47 }
0x1066   :  { %1698 = vst.msk [vmem:[%s2579_s24] sm:$0xff] %vm1697_vm9, %v1695_v63 }
0x1067   :  { %1967 = dma.done.wait [#allocation3], 32  }
0x1068   :  { %1968 = vsyncadd [#allocation3], 4294967264 }
0x1069   :  { %1719 = vsyncpa [#allocation3], 1 }

</bundles_post_ra>
